<compile_context>
chip_gen: v6e
topology: v6e:2x2x1
jax: 0.10.0
libtpu: 0.0.40
codegen_flags: <defaults>
</compile_context>

<pallas_src>
import functools

import jax
import jax.numpy as jnp
from jax import lax
from jax.experimental import pallas as pl
from jax.experimental.pallas import tpu as pltpu


# ----------------------------- fused Pallas kernel -----------------------------

def _convvit_kernel(x_ref,
                    w11, b11, w12, b12, w21, b21, w22, b22,
                    wp, bp, cp, wqkv, bqkv, wo, bo, gamma, beta, wh, bh,
                    o_ref,
                    pad1, pad2, pad3, pad4, ps1, ps2,
                    *, scale, eps):
    """One batch element per grid step; all intermediates stay in VMEM/vregs."""

    def fill_padded(pad_ref, x_hwc):
        # zero-init the 1-pixel halo every step (parallel grid -> no pl.when
        # init trick), then write the interior.
        H, W, _ = x_hwc.shape
        pad_ref[...] = jnp.zeros(pad_ref.shape, pad_ref.dtype)
        pad_ref[1:H + 1, 1:W + 1, :] = x_hwc

    def conv3x3_relu(pad_ref, w_ref, b_ref):
        # im2col: one (H*W, 9*Ci) x (9*Ci, Co) matmul (bf16 inputs, f32 acc).
        Hp, Wp, Ci = pad_ref.shape
        H, W = Hp - 2, Wp - 2
        taps = []
        for kh in range(3):                       # static 3x3 unroll, kh/kw-major
            for kw in range(3):
                taps.append(pad_ref[kh:kh + H, kw:kw + W, :]
                            .reshape(H * W, Ci).astype(jnp.bfloat16))
        patches = jnp.concatenate(taps, axis=1)                    # (H*W, 9*Ci)
        acc = jnp.dot(patches, w_ref[...],
                      preferred_element_type=jnp.float32)          # (H*W, Co)
        return jnp.maximum(acc + b_ref[...], 0.0)

    def maxpool2x2(o_flat, ps_ref, H, W, C):
        # H-pool: pairwise max over the (free) leading axis.
        a = jnp.max(o_flat.reshape(H // 2, 2, W, C), axis=1)       # (H/2, W, C)
        ps_ref[...] = a.reshape((H // 2) * W, C)
        # W-pool: stride-2 sublane reads -> rows ordered as h2*(W/2) + w2.
        half = (H // 2) * (W // 2)
        return jnp.maximum(ps_ref[pl.ds(0, half, 2), :],
                           ps_ref[pl.ds(1, half, 2), :])           # (H/2*W/2, C)

    # ---- DownConv block 1: 16x16x4 -> 16x16x16 -> 8x8x16 ----
    fill_padded(pad1, x_ref[0])
    h = conv3x3_relu(pad1, w11, b11)                               # (256, 16)
    fill_padded(pad2, h.reshape(16, 16, 16))
    h = conv3x3_relu(pad2, w12, b12)                               # (256, 16)
    h = maxpool2x2(h, ps1, 16, 16, 16)                             # (64, 16)

    # ---- DownConv block 2: 8x8x16 -> 8x8x32 -> 4x4x32 ----
    fill_padded(pad3, h.reshape(8, 8, 16))
    h = conv3x3_relu(pad3, w21, b21)                               # (64, 32)
    fill_padded(pad4, h.reshape(8, 8, 32))
    h = conv3x3_relu(pad4, w22, b22)                               # (64, 32)
    patches = maxpool2x2(h, ps2, 8, 8, 32)                         # (16, 32) row-major (h, w)

    # ---- ViT head: 1x1 proj + ReLU, cls/pos, 1-head cross-attn, proj, LN, head ----
    D = wo.shape[0]
    N = cp.shape[0]
    tok = jnp.maximum(jnp.dot(patches.astype(jnp.bfloat16), wp[...],
                              preferred_element_type=jnp.float32) + bp[...], 0.0)
    # cp row 0 = cls_token + pos_embed[0]; rows 1.. = pos_embed[1:]
    xt = jnp.concatenate([cp[0:1, :], tok + cp[1:N, :]], axis=0)           # (N, D)
    qkv = jnp.dot(xt.astype(jnp.bfloat16), wqkv[...],
                  preferred_element_type=jnp.float32) + bqkv[...]          # (N, 3D)
    q = qkv[0:1, 0:D]                       # token 0 attends all tokens
    k = qkv[:, D:2 * D]
    v = qkv[:, 2 * D:3 * D]
    s = lax.dot_general(q, k, (((1,), (1,)), ((), ())),
                        preferred_element_type=jnp.float32) * scale        # (1, N)
    s = s - jnp.max(s, axis=-1, keepdims=True)
    e = jnp.exp(s)
    attn = e * pl.reciprocal(jnp.sum(e, axis=-1, keepdims=True), approx=True)
    o = jnp.dot(attn, v, preferred_element_type=jnp.float32)               # (1, D)
    o = jnp.dot(o, wo[...], preferred_element_type=jnp.float32) + bo[...]
    mu = jnp.mean(o, axis=-1, keepdims=True)
    var = jnp.mean((o - mu) ** 2, axis=-1, keepdims=True)
    normed = (o - mu) * lax.rsqrt(var + eps) * gamma[...] + beta[...]
    o_ref[0] = jnp.dot(normed, wh[...],
                       preferred_element_type=jnp.float32) + bh[...]       # (1, NC)
    # TODO(synk): DropPatch / attn_drop / proj_drop are identity at inference
    # (drop_patch=False by default), so they are intentionally omitted.


# ------------------------------ wrapper / glue --------------------------------

def _const2d_spec(a):
    return pl.BlockSpec(a.shape, lambda i: (0, 0))


def pack_params(p):
    """One-time reshape/cast of parameters into kernel-ready arrays."""
    (w11, b11, w12, b12), (w21, b21, w22, b22) = p["blocks"]
    wmat = lambda w: w.reshape(-1, w.shape[-1]).astype(jnp.bfloat16)   # (3,3,Ci,Co)->(9Ci,Co)
    row = lambda b: b.reshape(1, -1).astype(jnp.float32)
    D = p["wq"].shape[0]
    cp = p["pos"].astype(jnp.float32).at[0:1, :].add(p["cls"])          # cls folded into pos[0]
    wqkv = jnp.concatenate([p["wq"], p["wk"], p["wv"]], axis=1).astype(jnp.bfloat16)
    bqkv = jnp.concatenate([p["bq"], p["bk"], p["bv"]]).reshape(1, 3 * D).astype(jnp.float32)
    return (wmat(w11), row(b11), wmat(w12), row(b12),
            wmat(w21), row(b21), wmat(w22), row(b22),
            p["wp"].astype(jnp.bfloat16), row(p["bp"]), cp,
            wqkv, bqkv,
            p["wo"].astype(jnp.float32), row(p["bo"]),
            p["gamma"].reshape(1, D).astype(jnp.float32),
            p["beta"].reshape(1, D).astype(jnp.float32),
            p["wh"].astype(jnp.float32), row(p["bh"]))


@jax.jit
def conv_vit_forward(x_nchw, packed):
    """ConvVitV1.forward: (B, 4, 16, 16) NCHW -> (B, num_classes)."""
    B, Cin, H, W = x_nchw.shape
    assert (Cin, H, W) == (4, 16, 16), "fused kernel is specialized to this config"
    x = jnp.transpose(x_nchw, (0, 2, 3, 1)).astype(jnp.float32)    # NCHW -> NHWC (tiny, once)
    D = packed[10].shape[1]      # cp: (1+P, D)
    NC = packed[18].shape[1]     # bh: (1, NC)
    kern = functools.partial(_convvit_kernel, scale=float(D) ** -0.5, eps=1e-5)
    in_specs = [pl.BlockSpec((1, H, W, Cin), lambda i: (i, 0, 0, 0))]
    in_specs += [_const2d_spec(a) for a in packed]
    out = pl.pallas_call(
        kern,
        out_shape=jax.ShapeDtypeStruct((B, 1, NC), jnp.float32),
        grid=(B,),
        in_specs=in_specs,
        out_specs=pl.BlockSpec((1, 1, NC), lambda i: (i, 0, 0)),
        scratch_shapes=[
            pltpu.VMEM((18, 18, 4), jnp.float32),    # padded 16x16x4 (halo in VMEM)
            pltpu.VMEM((18, 18, 16), jnp.float32),   # padded 16x16x16
            pltpu.VMEM((10, 10, 16), jnp.float32),   # padded 8x8x16
            pltpu.VMEM((10, 10, 32), jnp.float32),   # padded 8x8x32
            pltpu.VMEM((128, 16), jnp.float32),      # H-pooled block-1 activations
            pltpu.VMEM((32, 32), jnp.float32),       # H-pooled block-2 activations
        ],
        compiler_params=pltpu.CompilerParams(dimension_semantics=("parallel",)),
    )(x, *packed)
    return out[:, 0, :]


# ------------------------------ params / reference -----------------------------

def init_params(key, in_channel, depth, out_channel, num_classes, img_size):
    keys = iter(jax.random.split(key, 64))
    rnd = lambda shape, s=0.1: jax.random.normal(next(keys), shape, jnp.float32) * s
    blocks = []
    c = in_channel
    for _ in range(depth):
        co = max(16, c * 2)
        blocks.append((rnd((3, 3, c, co)), rnd((co,)),
                       rnd((3, 3, co, co)), rnd((co,))))
        c = co
    num_patches = (img_size // (2 ** depth)) ** 2
    D = out_channel
    return {
        "blocks": blocks,
        "wp": rnd((c, D)), "bp": rnd((D,)),
        "cls": rnd((1, D)), "pos": rnd((1 + num_patches, D)),
        "wq": rnd((D, D)), "bq": rnd((D,)),
        "wk": rnd((D, D)), "bk": rnd((D,)),
        "wv": rnd((D, D)), "bv": rnd((D,)),
        "gamma": 1.0 + rnd((D,)), "beta": rnd((D,)),
        "wo": rnd((D, D)), "bo": rnd((D,)),
        "wh": rnd((D, num_classes)), "bh": rnd((num_classes,)),
    }


def reference_forward(x_nchw, p):
    HI = lax.Precision.HIGHEST
    x = jnp.transpose(x_nchw, (0, 2, 3, 1))
    for (w1, b1, w2, b2) in p["blocks"]:
        for (w, b) in ((w1, b1), (w2, b2)):
            x = jnp.maximum(
                lax.conv_general_dilated(x, w, (1, 1), ((1, 1), (1, 1)),
                                         dimension_numbers=("NHWC", "HWIO", "NHWC"),
                                         precision=HI) + b, 0.0)
        x = lax.reduce_window(x, -jnp.inf, lax.max, (1, 2, 2, 1), (1, 2, 2, 1), "VALID")
    B, Hf, Wf, Cf = x.shape
    tok = jnp.maximum(jnp.einsum("bpc,cd->bpd", x.reshape(B, Hf * Wf, Cf),
                                 p["wp"], precision=HI) + p["bp"], 0.0)
    cls = jnp.broadcast_to(p["cls"][None], (B, 1, p["cls"].shape[-1]))
    xt = jnp.concatenate([cls, tok], axis=1) + p["pos"][None]
    D = p["wq"].shape[0]
    scale = float(D) ** -0.5
    q = jnp.einsum("bnd,de->bne", xt[:, 0:1], p["wq"], precision=HI) + p["bq"]
    k = jnp.einsum("bnd,de->bne", xt, p["wk"], precision=HI) + p["bk"]
    v = jnp.einsum("bnd,de->bne", xt, p["wv"], precision=HI) + p["bv"]
    attn = jax.nn.softmax(jnp.einsum("bqd,bkd->bqk", q, k, precision=HI) * scale, -1)
    o = jnp.einsum("bqk,bkd->bqd", attn, v, precision=HI)
    o = jnp.einsum("bqd,de->bqe", o, p["wo"], precision=HI) + p["bo"]
    mu = jnp.mean(o, axis=-1, keepdims=True)
    var = jnp.mean((o - mu) ** 2, axis=-1, keepdims=True)
    normed = (o - mu) / jnp.sqrt(var + 1e-5) * p["gamma"] + p["beta"]
    return jnp.dot(normed[:, 0], p["wh"], precision=HI) + p["bh"]


# ---------------------------------- main -----------------------------------

if __name__ == "__main__":
    key = jax.random.PRNGKey(0)
    kx, kp = jax.random.split(key)
    B, Cin, S = 2, 4, 16
    x = jax.random.normal(kx, (B, Cin, S, S), jnp.float32)   # NCHW like PyTorch
    params = init_params(kp, in_channel=Cin, depth=2, out_channel=32,
                         num_classes=2, img_size=S)
    packed = pack_params(params)

    logits = conv_vit_forward(x, packed)
    jax.block_until_ready(logits)
    assert logits.shape == (B, 2), logits.shape

    ref = reference_forward(x, params)
    err = float(jnp.max(jnp.abs(logits - ref)))
    # bf16 MXU inputs (f32 accumulation) vs. an f32 HIGHEST-precision reference;
    # typical error is a few 1e-3 on these logits.
    if err < 2e-2:
        print("KERNEL_OK")
    else:
        raise SystemExit(f"mismatch vs reference: max abs err = {err}")
</pallas_src>

<mosaic_0001>
module attributes {stable_mosaic.version = 11 : i64} {
  func.func @_convvit_kernel(%arg0: i32, %arg1: memref<1x16x16x4xf32, #tpu.memory_space<vmem>>, %arg2: memref<36x16xbf16, #tpu.memory_space<vmem>>, %arg3: memref<1x16xf32, #tpu.memory_space<vmem>>, %arg4: memref<144x16xbf16, #tpu.memory_space<vmem>>, %arg5: memref<1x16xf32, #tpu.memory_space<vmem>>, %arg6: memref<144x32xbf16, #tpu.memory_space<vmem>>, %arg7: memref<1x32xf32, #tpu.memory_space<vmem>>, %arg8: memref<288x32xbf16, #tpu.memory_space<vmem>>, %arg9: memref<1x32xf32, #tpu.memory_space<vmem>>, %arg10: memref<32x32xbf16, #tpu.memory_space<vmem>>, %arg11: memref<1x32xf32, #tpu.memory_space<vmem>>, %arg12: memref<17x32xf32, #tpu.memory_space<vmem>>, %arg13: memref<32x96xbf16, #tpu.memory_space<vmem>>, %arg14: memref<1x96xf32, #tpu.memory_space<vmem>>, %arg15: memref<32x32xf32, #tpu.memory_space<vmem>>, %arg16: memref<1x32xf32, #tpu.memory_space<vmem>>, %arg17: memref<1x32xf32, #tpu.memory_space<vmem>>, %arg18: memref<1x32xf32, #tpu.memory_space<vmem>>, %arg19: memref<32x2xf32, #tpu.memory_space<vmem>>, %arg20: memref<1x2xf32, #tpu.memory_space<vmem>>, %arg21: memref<1x1x2xf32, #tpu.memory_space<vmem>>, %arg22: memref<18x18x4xf32, #tpu.memory_space<vmem>>, %arg23: memref<18x18x16xf32, #tpu.memory_space<vmem>>, %arg24: memref<10x10x16xf32, #tpu.memory_space<vmem>>, %arg25: memref<10x10x32xf32, #tpu.memory_space<vmem>>, %arg26: memref<128x16xf32, #tpu.memory_space<vmem>>, %arg27: memref<32x32xf32, #tpu.memory_space<vmem>>) attributes {dimension_semantics = [#tpu.dimension_semantics<parallel>], iteration_bounds = array<i64: 2>, scalar_prefetch = 0 : i64, scratch_operands = 6 : i64, tpu.core_type = #tpu.core_type<tc>, window_params = [{transform_indices = @transform_0, window_bounds = array<i64: 1, 16, 16, 4>}, {pipeline_mode = #tpu.pipeline_mode<synchronous>, transform_indices = @transform_1, window_bounds = array<i64: 36, 16>}, {pipeline_mode = #tpu.pipeline_mode<synchronous>, transform_indices = @transform_2, window_bounds = array<i64: 1, 16>}, {pipeline_mode = #tpu.pipeline_mode<synchronous>, transform_indices = @transform_3, window_bounds = array<i64: 144, 16>}, {pipeline_mode = #tpu.pipeline_mode<synchronous>, transform_indices = @transform_4, window_bounds = array<i64: 1, 16>}, {pipeline_mode = #tpu.pipeline_mode<synchronous>, transform_indices = @transform_5, window_bounds = array<i64: 144, 32>}, {pipeline_mode = #tpu.pipeline_mode<synchronous>, transform_indices = @transform_6, window_bounds = array<i64: 1, 32>}, {pipeline_mode = #tpu.pipeline_mode<synchronous>, transform_indices = @transform_7, window_bounds = array<i64: 288, 32>}, {pipeline_mode = #tpu.pipeline_mode<synchronous>, transform_indices = @transform_8, window_bounds = array<i64: 1, 32>}, {pipeline_mode = #tpu.pipeline_mode<synchronous>, transform_indices = @transform_9, window_bounds = array<i64: 32, 32>}, {pipeline_mode = #tpu.pipeline_mode<synchronous>, transform_indices = @transform_10, window_bounds = array<i64: 1, 32>}, {pipeline_mode = #tpu.pipeline_mode<synchronous>, transform_indices = @transform_11, window_bounds = array<i64: 17, 32>}, {pipeline_mode = #tpu.pipeline_mode<synchronous>, transform_indices = @transform_12, window_bounds = array<i64: 32, 96>}, {pipeline_mode = #tpu.pipeline_mode<synchronous>, transform_indices = @transform_13, window_bounds = array<i64: 1, 96>}, {pipeline_mode = #tpu.pipeline_mode<synchronous>, transform_indices = @transform_14, window_bounds = array<i64: 32, 32>}, {pipeline_mode = #tpu.pipeline_mode<synchronous>, transform_indices = @transform_15, window_bounds = array<i64: 1, 32>}, {pipeline_mode = #tpu.pipeline_mode<synchronous>, transform_indices = @transform_16, window_bounds = array<i64: 1, 32>}, {pipeline_mode = #tpu.pipeline_mode<synchronous>, transform_indices = @transform_17, window_bounds = array<i64: 1, 32>}, {pipeline_mode = #tpu.pipeline_mode<synchronous>, transform_indices = @transform_18, window_bounds = array<i64: 32, 2>}, {pipeline_mode = #tpu.pipeline_mode<synchronous>, transform_indices = @transform_19, window_bounds = array<i64: 1, 2>}, {transform_indices = @transform_20, window_bounds = array<i64: 1, 1, 2>}]} {
    %c0 = arith.constant 0 : index
    %c0_0 = arith.constant 0 : index
    %c0_1 = arith.constant 0 : index
    %c0_2 = arith.constant 0 : index
    %0 = vector.load %arg1[%c0, %c0_0, %c0_1, %c0_2] : memref<1x16x16x4xf32, #tpu.memory_space<vmem>>, vector<1x16x16x4xf32>
    %1 = vector.shape_cast %0 : vector<1x16x16x4xf32> to vector<16x16x4xf32>
    %cst = arith.constant 0.000000e+00 : f32
    %2 = vector.broadcast %cst : f32 to vector<18x18x4xf32>
    %c0_3 = arith.constant 0 : index
    %c0_4 = arith.constant 0 : index
    %c0_5 = arith.constant 0 : index
    %3 = vector.load %arg22[%c0_3, %c0_4, %c0_5] : memref<18x18x4xf32, #tpu.memory_space<vmem>>, vector<18x18x4xf32>
    tpu.vector_store %arg22[%c0_3, %c0_4, %c0_5], %2 {strides = array<i32>} : memref<18x18x4xf32, #tpu.memory_space<vmem>>, vector<18x18x4xf32>,
    %c1 = arith.constant 1 : index
    %c1_6 = arith.constant 1 : index
    %c0_7 = arith.constant 0 : index
    %4 = vector.load %arg22[%c1, %c1_6, %c0_7] : memref<18x18x4xf32, #tpu.memory_space<vmem>>, vector<16x16x4xf32>
    tpu.vector_store %arg22[%c1, %c1_6, %c0_7], %1 {strides = array<i32>} : memref<18x18x4xf32, #tpu.memory_space<vmem>>, vector<16x16x4xf32>,
    %c0_8 = arith.constant 0 : index
    %c0_9 = arith.constant 0 : index
    %c0_10 = arith.constant 0 : index
    %5 = vector.load %arg22[%c0_8, %c0_9, %c0_10] : memref<18x18x4xf32, #tpu.memory_space<vmem>>, vector<16x16x4xf32>
    %6 = vector.shape_cast %5 : vector<16x16x4xf32> to vector<256x4xf32>
    %7 = arith.truncf %6 : vector<256x4xf32> to vector<256x4xbf16>
    %c0_11 = arith.constant 0 : index
    %c1_12 = arith.constant 1 : index
    %c0_13 = arith.constant 0 : index
    %8 = vector.load %arg22[%c0_11, %c1_12, %c0_13] : memref<18x18x4xf32, #tpu.memory_space<vmem>>, vector<16x16x4xf32>
    %9 = vector.shape_cast %8 : vector<16x16x4xf32> to vector<256x4xf32>
    %10 = arith.truncf %9 : vector<256x4xf32> to vector<256x4xbf16>
    %c0_14 = arith.constant 0 : index
    %c2 = arith.constant 2 : index
    %c0_15 = arith.constant 0 : index
    %11 = vector.load %arg22[%c0_14, %c2, %c0_15] : memref<18x18x4xf32, #tpu.memory_space<vmem>>, vector<16x16x4xf32>
    %12 = vector.shape_cast %11 : vector<16x16x4xf32> to vector<256x4xf32>
    %13 = arith.truncf %12 : vector<256x4xf32> to vector<256x4xbf16>
    %c1_16 = arith.constant 1 : index
    %c0_17 = arith.constant 0 : index
    %c0_18 = arith.constant 0 : index
    %14 = vector.load %arg22[%c1_16, %c0_17, %c0_18] : memref<18x18x4xf32, #tpu.memory_space<vmem>>, vector<16x16x4xf32>
    %15 = vector.shape_cast %14 : vector<16x16x4xf32> to vector<256x4xf32>
    %16 = arith.truncf %15 : vector<256x4xf32> to vector<256x4xbf16>
    %c1_19 = arith.constant 1 : index
    %c1_20 = arith.constant 1 : index
    %c0_21 = arith.constant 0 : index
    %17 = vector.load %arg22[%c1_19, %c1_20, %c0_21] : memref<18x18x4xf32, #tpu.memory_space<vmem>>, vector<16x16x4xf32>
    %18 = vector.shape_cast %17 : vector<16x16x4xf32> to vector<256x4xf32>
    %19 = arith.truncf %18 : vector<256x4xf32> to vector<256x4xbf16>
    %c1_22 = arith.constant 1 : index
    %c2_23 = arith.constant 2 : index
    %c0_24 = arith.constant 0 : index
    %20 = vector.load %arg22[%c1_22, %c2_23, %c0_24] : memref<18x18x4xf32, #tpu.memory_space<vmem>>, vector<16x16x4xf32>
    %21 = vector.shape_cast %20 : vector<16x16x4xf32> to vector<256x4xf32>
    %22 = arith.truncf %21 : vector<256x4xf32> to vector<256x4xbf16>
    %c2_25 = arith.constant 2 : index
    %c0_26 = arith.constant 0 : index
    %c0_27 = arith.constant 0 : index
    %23 = vector.load %arg22[%c2_25, %c0_26, %c0_27] : memref<18x18x4xf32, #tpu.memory_space<vmem>>, vector<16x16x4xf32>
    %24 = vector.shape_cast %23 : vector<16x16x4xf32> to vector<256x4xf32>
    %25 = arith.truncf %24 : vector<256x4xf32> to vector<256x4xbf16>
    %c2_28 = arith.constant 2 : index
    %c1_29 = arith.constant 1 : index
    %c0_30 = arith.constant 0 : index
    %26 = vector.load %arg22[%c2_28, %c1_29, %c0_30] : memref<18x18x4xf32, #tpu.memory_space<vmem>>, vector<16x16x4xf32>
    %27 = vector.shape_cast %26 : vector<16x16x4xf32> to vector<256x4xf32>
    %28 = arith.truncf %27 : vector<256x4xf32> to vector<256x4xbf16>
    %c2_31 = arith.constant 2 : index
    %c2_32 = arith.constant 2 : index
    %c0_33 = arith.constant 0 : index
    %29 = vector.load %arg22[%c2_31, %c2_32, %c0_33] : memref<18x18x4xf32, #tpu.memory_space<vmem>>, vector<16x16x4xf32>
    %30 = vector.shape_cast %29 : vector<16x16x4xf32> to vector<256x4xf32>
    %31 = arith.truncf %30 : vector<256x4xf32> to vector<256x4xbf16>
    %32 = tpu.concatenate %7, %10, %13, %16, %19, %22, %25, %28, %31 in 1 : vector<256x4xbf16>, vector<256x4xbf16>, vector<256x4xbf16>, vector<256x4xbf16>, vector<256x4xbf16>, vector<256x4xbf16>, vector<256x4xbf16>, vector<256x4xbf16>, vector<256x4xbf16> -> vector<256x36xbf16>
    %c0_34 = arith.constant 0 : index
    %c0_35 = arith.constant 0 : index
    %33 = vector.load %arg2[%c0_34, %c0_35] : memref<36x16xbf16, #tpu.memory_space<vmem>>, vector<36x16xbf16>
    %cst_36 = arith.constant dense<0.000000e+00> : vector<256x16xf32>
    %34 = tpu.matmul %32, %33, %cst_36 {dimension_numbers = #tpu.dot_dimension_numbers<[1], [0], [0], [1], [0, 0, 1, 1], [], []>} : vector<256x36xbf16>, vector<36x16xbf16>, vector<256x16xf32> -> vector<256x16xf32>
    %c0_37 = arith.constant 0 : index
    %c0_38 = arith.constant 0 : index
    %35 = vector.load %arg3[%c0_37, %c0_38] : memref<1x16xf32, #tpu.memory_space<vmem>>, vector<1x16xf32>
    %36 = vector.broadcast %35 : vector<1x16xf32> to vector<256x16xf32>
    %37 = arith.addf %34, %36 : vector<256x16xf32>
    %cst_39 = arith.constant 0.000000e+00 : f32
    %38 = vector.broadcast %cst_39 : f32 to vector<256x16xf32>
    %39 = arith.maximumf %37, %38 : vector<256x16xf32>
    %40 = vector.shape_cast %39 : vector<256x16xf32> to vector<16x16x16xf32>
    %cst_40 = arith.constant 0.000000e+00 : f32
    %41 = vector.broadcast %cst_40 : f32 to vector<18x18x16xf32>
    %c0_41 = arith.constant 0 : index
    %c0_42 = arith.constant 0 : index
    %c0_43 = arith.constant 0 : index
    %42 = vector.load %arg23[%c0_41, %c0_42, %c0_43] : memref<18x18x16xf32, #tpu.memory_space<vmem>>, vector<18x18x16xf32>
    tpu.vector_store %arg23[%c0_41, %c0_42, %c0_43], %41 {strides = array<i32>} : memref<18x18x16xf32, #tpu.memory_space<vmem>>, vector<18x18x16xf32>,
    %c1_44 = arith.constant 1 : index
    %c1_45 = arith.constant 1 : index
    %c0_46 = arith.constant 0 : index
    %43 = vector.load %arg23[%c1_44, %c1_45, %c0_46] : memref<18x18x16xf32, #tpu.memory_space<vmem>>, vector<16x16x16xf32>
    tpu.vector_store %arg23[%c1_44, %c1_45, %c0_46], %40 {strides = array<i32>} : memref<18x18x16xf32, #tpu.memory_space<vmem>>, vector<16x16x16xf32>,
    %c0_47 = arith.constant 0 : index
    %c0_48 = arith.constant 0 : index
    %c0_49 = arith.constant 0 : index
    %44 = vector.load %arg23[%c0_47, %c0_48, %c0_49] : memref<18x18x16xf32, #tpu.memory_space<vmem>>, vector<16x16x16xf32>
    %45 = vector.shape_cast %44 : vector<16x16x16xf32> to vector<256x16xf32>
    %46 = arith.truncf %45 : vector<256x16xf32> to vector<256x16xbf16>
    %c0_50 = arith.constant 0 : index
    %c1_51 = arith.constant 1 : index
    %c0_52 = arith.constant 0 : index
    %47 = vector.load %arg23[%c0_50, %c1_51, %c0_52] : memref<18x18x16xf32, #tpu.memory_space<vmem>>, vector<16x16x16xf32>
    %48 = vector.shape_cast %47 : vector<16x16x16xf32> to vector<256x16xf32>
    %49 = arith.truncf %48 : vector<256x16xf32> to vector<256x16xbf16>
    %c0_53 = arith.constant 0 : index
    %c2_54 = arith.constant 2 : index
    %c0_55 = arith.constant 0 : index
    %50 = vector.load %arg23[%c0_53, %c2_54, %c0_55] : memref<18x18x16xf32, #tpu.memory_space<vmem>>, vector<16x16x16xf32>
    %51 = vector.shape_cast %50 : vector<16x16x16xf32> to vector<256x16xf32>
    %52 = arith.truncf %51 : vector<256x16xf32> to vector<256x16xbf16>
    %c1_56 = arith.constant 1 : index
    %c0_57 = arith.constant 0 : index
    %c0_58 = arith.constant 0 : index
    %53 = vector.load %arg23[%c1_56, %c0_57, %c0_58] : memref<18x18x16xf32, #tpu.memory_space<vmem>>, vector<16x16x16xf32>
    %54 = vector.shape_cast %53 : vector<16x16x16xf32> to vector<256x16xf32>
    %55 = arith.truncf %54 : vector<256x16xf32> to vector<256x16xbf16>
    %c1_59 = arith.constant 1 : index
    %c1_60 = arith.constant 1 : index
    %c0_61 = arith.constant 0 : index
    %56 = vector.load %arg23[%c1_59, %c1_60, %c0_61] : memref<18x18x16xf32, #tpu.memory_space<vmem>>, vector<16x16x16xf32>
    %57 = vector.shape_cast %56 : vector<16x16x16xf32> to vector<256x16xf32>
    %58 = arith.truncf %57 : vector<256x16xf32> to vector<256x16xbf16>
    %c1_62 = arith.constant 1 : index
    %c2_63 = arith.constant 2 : index
    %c0_64 = arith.constant 0 : index
    %59 = vector.load %arg23[%c1_62, %c2_63, %c0_64] : memref<18x18x16xf32, #tpu.memory_space<vmem>>, vector<16x16x16xf32>
    %60 = vector.shape_cast %59 : vector<16x16x16xf32> to vector<256x16xf32>
    %61 = arith.truncf %60 : vector<256x16xf32> to vector<256x16xbf16>
    %c2_65 = arith.constant 2 : index
    %c0_66 = arith.constant 0 : index
    %c0_67 = arith.constant 0 : index
    %62 = vector.load %arg23[%c2_65, %c0_66, %c0_67] : memref<18x18x16xf32, #tpu.memory_space<vmem>>, vector<16x16x16xf32>
    %63 = vector.shape_cast %62 : vector<16x16x16xf32> to vector<256x16xf32>
    %64 = arith.truncf %63 : vector<256x16xf32> to vector<256x16xbf16>
    %c2_68 = arith.constant 2 : index
    %c1_69 = arith.constant 1 : index
    %c0_70 = arith.constant 0 : index
    %65 = vector.load %arg23[%c2_68, %c1_69, %c0_70] : memref<18x18x16xf32, #tpu.memory_space<vmem>>, vector<16x16x16xf32>
    %66 = vector.shape_cast %65 : vector<16x16x16xf32> to vector<256x16xf32>
    %67 = arith.truncf %66 : vector<256x16xf32> to vector<256x16xbf16>
    %c2_71 = arith.constant 2 : index
    %c2_72 = arith.constant 2 : index
    %c0_73 = arith.constant 0 : index
    %68 = vector.load %arg23[%c2_71, %c2_72, %c0_73] : memref<18x18x16xf32, #tpu.memory_space<vmem>>, vector<16x16x16xf32>
    %69 = vector.shape_cast %68 : vector<16x16x16xf32> to vector<256x16xf32>
    %70 = arith.truncf %69 : vector<256x16xf32> to vector<256x16xbf16>
    %71 = tpu.concatenate %46, %49, %52, %55, %58, %61, %64, %67, %70 in 1 : vector<256x16xbf16>, vector<256x16xbf16>, vector<256x16xbf16>, vector<256x16xbf16>, vector<256x16xbf16>, vector<256x16xbf16>, vector<256x16xbf16>, vector<256x16xbf16>, vector<256x16xbf16> -> vector<256x144xbf16>
    %c0_74 = arith.constant 0 : index
    %c0_75 = arith.constant 0 : index
    %72 = vector.load %arg4[%c0_74, %c0_75] : memref<144x16xbf16, #tpu.memory_space<vmem>>, vector<144x16xbf16>
    %cst_76 = arith.constant dense<0.000000e+00> : vector<256x16xf32>
    %73 = tpu.matmul %71, %72, %cst_76 {dimension_numbers = #tpu.dot_dimension_numbers<[1], [0], [0], [1], [0, 0, 1, 1], [], []>} : vector<256x144xbf16>, vector<144x16xbf16>, vector<256x16xf32> -> vector<256x16xf32>
    %c0_77 = arith.constant 0 : index
    %c0_78 = arith.constant 0 : index
    %74 = vector.load %arg5[%c0_77, %c0_78] : memref<1x16xf32, #tpu.memory_space<vmem>>, vector<1x16xf32>
    %75 = vector.broadcast %74 : vector<1x16xf32> to vector<256x16xf32>
    %76 = arith.addf %73, %75 : vector<256x16xf32>
    %cst_79 = arith.constant 0.000000e+00 : f32
    %77 = vector.broadcast %cst_79 : f32 to vector<256x16xf32>
    %78 = arith.maximumf %76, %77 : vector<256x16xf32>
    %79 = vector.shape_cast %78 : vector<256x16xf32> to vector<8x2x16x16xf32>
    %cst_80 = arith.constant dense<0xFF800000> : vector<8x16x16xf32>
    %80 = vector.multi_reduction <maximumf>, %79, %cst_80 [1] : vector<8x2x16x16xf32> to vector<8x16x16xf32>
    %81 = vector.shape_cast %80 : vector<8x16x16xf32> to vector<128x16xf32>
    %c0_81 = arith.constant 0 : index
    %c0_82 = arith.constant 0 : index
    %82 = vector.load %arg26[%c0_81, %c0_82] : memref<128x16xf32, #tpu.memory_space<vmem>>, vector<128x16xf32>
    tpu.vector_store %arg26[%c0_81, %c0_82], %81 {strides = array<i32>} : memref<128x16xf32, #tpu.memory_space<vmem>>, vector<128x16xf32>,
    %c0_83 = arith.constant 0 : index
    %c0_84 = arith.constant 0 : index
    %83 = tpu.strided_load %arg26[%c0_83, %c0_84] {strides = array<i32: 2, 1>} : memref<128x16xf32, #tpu.memory_space<vmem>>, vector<64x16xf32>
    %c1_85 = arith.constant 1 : index
    %c0_86 = arith.constant 0 : index
    %84 = tpu.strided_load %arg26[%c1_85, %c0_86] {strides = array<i32: 2, 1>} : memref<128x16xf32, #tpu.memory_space<vmem>>, vector<64x16xf32>
    %85 = arith.maximumf %83, %84 : vector<64x16xf32>
    %86 = vector.shape_cast %85 : vector<64x16xf32> to vector<8x8x16xf32>
    %cst_87 = arith.constant 0.000000e+00 : f32
    %87 = vector.broadcast %cst_87 : f32 to vector<10x10x16xf32>
    %c0_88 = arith.constant 0 : index
    %c0_89 = arith.constant 0 : index
    %c0_90 = arith.constant 0 : index
    %88 = vector.load %arg24[%c0_88, %c0_89, %c0_90] : memref<10x10x16xf32, #tpu.memory_space<vmem>>, vector<10x10x16xf32>
    tpu.vector_store %arg24[%c0_88, %c0_89, %c0_90], %87 {strides = array<i32>} : memref<10x10x16xf32, #tpu.memory_space<vmem>>, vector<10x10x16xf32>,
    %c1_91 = arith.constant 1 : index
    %c1_92 = arith.constant 1 : index
    %c0_93 = arith.constant 0 : index
    %89 = vector.load %arg24[%c1_91, %c1_92, %c0_93] : memref<10x10x16xf32, #tpu.memory_space<vmem>>, vector<8x8x16xf32>
    tpu.vector_store %arg24[%c1_91, %c1_92, %c0_93], %86 {strides = array<i32>} : memref<10x10x16xf32, #tpu.memory_space<vmem>>, vector<8x8x16xf32>,
    %c0_94 = arith.constant 0 : index
    %c0_95 = arith.constant 0 : index
    %c0_96 = arith.constant 0 : index
    %90 = vector.load %arg24[%c0_94, %c0_95, %c0_96] : memref<10x10x16xf32, #tpu.memory_space<vmem>>, vector<8x8x16xf32>
    %91 = vector.shape_cast %90 : vector<8x8x16xf32> to vector<64x16xf32>
    %92 = arith.truncf %91 : vector<64x16xf32> to vector<64x16xbf16>
    %c0_97 = arith.constant 0 : index
    %c1_98 = arith.constant 1 : index
    %c0_99 = arith.constant 0 : index
    %93 = vector.load %arg24[%c0_97, %c1_98, %c0_99] : memref<10x10x16xf32, #tpu.memory_space<vmem>>, vector<8x8x16xf32>
    %94 = vector.shape_cast %93 : vector<8x8x16xf32> to vector<64x16xf32>
    %95 = arith.truncf %94 : vector<64x16xf32> to vector<64x16xbf16>
    %c0_100 = arith.constant 0 : index
    %c2_101 = arith.constant 2 : index
    %c0_102 = arith.constant 0 : index
    %96 = vector.load %arg24[%c0_100, %c2_101, %c0_102] : memref<10x10x16xf32, #tpu.memory_space<vmem>>, vector<8x8x16xf32>
    %97 = vector.shape_cast %96 : vector<8x8x16xf32> to vector<64x16xf32>
    %98 = arith.truncf %97 : vector<64x16xf32> to vector<64x16xbf16>
    %c1_103 = arith.constant 1 : index
    %c0_104 = arith.constant 0 : index
    %c0_105 = arith.constant 0 : index
    %99 = vector.load %arg24[%c1_103, %c0_104, %c0_105] : memref<10x10x16xf32, #tpu.memory_space<vmem>>, vector<8x8x16xf32>
    %100 = vector.shape_cast %99 : vector<8x8x16xf32> to vector<64x16xf32>
    %101 = arith.truncf %100 : vector<64x16xf32> to vector<64x16xbf16>
    %c1_106 = arith.constant 1 : index
    %c1_107 = arith.constant 1 : index
    %c0_108 = arith.constant 0 : index
    %102 = vector.load %arg24[%c1_106, %c1_107, %c0_108] : memref<10x10x16xf32, #tpu.memory_space<vmem>>, vector<8x8x16xf32>
    %103 = vector.shape_cast %102 : vector<8x8x16xf32> to vector<64x16xf32>
    %104 = arith.truncf %103 : vector<64x16xf32> to vector<64x16xbf16>
    %c1_109 = arith.constant 1 : index
    %c2_110 = arith.constant 2 : index
    %c0_111 = arith.constant 0 : index
    %105 = vector.load %arg24[%c1_109, %c2_110, %c0_111] : memref<10x10x16xf32, #tpu.memory_space<vmem>>, vector<8x8x16xf32>
    %106 = vector.shape_cast %105 : vector<8x8x16xf32> to vector<64x16xf32>
    %107 = arith.truncf %106 : vector<64x16xf32> to vector<64x16xbf16>
    %c2_112 = arith.constant 2 : index
    %c0_113 = arith.constant 0 : index
    %c0_114 = arith.constant 0 : index
    %108 = vector.load %arg24[%c2_112, %c0_113, %c0_114] : memref<10x10x16xf32, #tpu.memory_space<vmem>>, vector<8x8x16xf32>
    %109 = vector.shape_cast %108 : vector<8x8x16xf32> to vector<64x16xf32>
    %110 = arith.truncf %109 : vector<64x16xf32> to vector<64x16xbf16>
    %c2_115 = arith.constant 2 : index
    %c1_116 = arith.constant 1 : index
    %c0_117 = arith.constant 0 : index
    %111 = vector.load %arg24[%c2_115, %c1_116, %c0_117] : memref<10x10x16xf32, #tpu.memory_space<vmem>>, vector<8x8x16xf32>
    %112 = vector.shape_cast %111 : vector<8x8x16xf32> to vector<64x16xf32>
    %113 = arith.truncf %112 : vector<64x16xf32> to vector<64x16xbf16>
    %c2_118 = arith.constant 2 : index
    %c2_119 = arith.constant 2 : index
    %c0_120 = arith.constant 0 : index
    %114 = vector.load %arg24[%c2_118, %c2_119, %c0_120] : memref<10x10x16xf32, #tpu.memory_space<vmem>>, vector<8x8x16xf32>
    %115 = vector.shape_cast %114 : vector<8x8x16xf32> to vector<64x16xf32>
    %116 = arith.truncf %115 : vector<64x16xf32> to vector<64x16xbf16>
    %117 = tpu.concatenate %92, %95, %98, %101, %104, %107, %110, %113, %116 in 1 : vector<64x16xbf16>, vector<64x16xbf16>, vector<64x16xbf16>, vector<64x16xbf16>, vector<64x16xbf16>, vector<64x16xbf16>, vector<64x16xbf16>, vector<64x16xbf16>, vector<64x16xbf16> -> vector<64x144xbf16>
    %c0_121 = arith.constant 0 : index
    %c0_122 = arith.constant 0 : index
    %118 = vector.load %arg6[%c0_121, %c0_122] : memref<144x32xbf16, #tpu.memory_space<vmem>>, vector<144x32xbf16>
    %cst_123 = arith.constant dense<0.000000e+00> : vector<64x32xf32>
    %119 = tpu.matmul %117, %118, %cst_123 {dimension_numbers = #tpu.dot_dimension_numbers<[1], [0], [0], [1], [0, 0, 1, 1], [], []>} : vector<64x144xbf16>, vector<144x32xbf16>, vector<64x32xf32> -> vector<64x32xf32>
    %c0_124 = arith.constant 0 : index
    %c0_125 = arith.constant 0 : index
    %120 = vector.load %arg7[%c0_124, %c0_125] : memref<1x32xf32, #tpu.memory_space<vmem>>, vector<1x32xf32>
    %121 = vector.broadcast %120 : vector<1x32xf32> to vector<64x32xf32>
    %122 = arith.addf %119, %121 : vector<64x32xf32>
    %cst_126 = arith.constant 0.000000e+00 : f32
    %123 = vector.broadcast %cst_126 : f32 to vector<64x32xf32>
    %124 = arith.maximumf %122, %123 : vector<64x32xf32>
    %125 = vector.shape_cast %124 : vector<64x32xf32> to vector<8x8x32xf32>
    %cst_127 = arith.constant 0.000000e+00 : f32
    %126 = vector.broadcast %cst_127 : f32 to vector<10x10x32xf32>
    %c0_128 = arith.constant 0 : index
    %c0_129 = arith.constant 0 : index
    %c0_130 = arith.constant 0 : index
    %127 = vector.load %arg25[%c0_128, %c0_129, %c0_130] : memref<10x10x32xf32, #tpu.memory_space<vmem>>, vector<10x10x32xf32>
    tpu.vector_store %arg25[%c0_128, %c0_129, %c0_130], %126 {strides = array<i32>} : memref<10x10x32xf32, #tpu.memory_space<vmem>>, vector<10x10x32xf32>,
    %c1_131 = arith.constant 1 : index
    %c1_132 = arith.constant 1 : index
    %c0_133 = arith.constant 0 : index
    %128 = vector.load %arg25[%c1_131, %c1_132, %c0_133] : memref<10x10x32xf32, #tpu.memory_space<vmem>>, vector<8x8x32xf32>
    tpu.vector_store %arg25[%c1_131, %c1_132, %c0_133], %125 {strides = array<i32>} : memref<10x10x32xf32, #tpu.memory_space<vmem>>, vector<8x8x32xf32>,
    %c0_134 = arith.constant 0 : index
    %c0_135 = arith.constant 0 : index
    %c0_136 = arith.constant 0 : index
    %129 = vector.load %arg25[%c0_134, %c0_135, %c0_136] : memref<10x10x32xf32, #tpu.memory_space<vmem>>, vector<8x8x32xf32>
    %130 = vector.shape_cast %129 : vector<8x8x32xf32> to vector<64x32xf32>
    %131 = arith.truncf %130 : vector<64x32xf32> to vector<64x32xbf16>
    %c0_137 = arith.constant 0 : index
    %c1_138 = arith.constant 1 : index
    %c0_139 = arith.constant 0 : index
    %132 = vector.load %arg25[%c0_137, %c1_138, %c0_139] : memref<10x10x32xf32, #tpu.memory_space<vmem>>, vector<8x8x32xf32>
    %133 = vector.shape_cast %132 : vector<8x8x32xf32> to vector<64x32xf32>
    %134 = arith.truncf %133 : vector<64x32xf32> to vector<64x32xbf16>
    %c0_140 = arith.constant 0 : index
    %c2_141 = arith.constant 2 : index
    %c0_142 = arith.constant 0 : index
    %135 = vector.load %arg25[%c0_140, %c2_141, %c0_142] : memref<10x10x32xf32, #tpu.memory_space<vmem>>, vector<8x8x32xf32>
    %136 = vector.shape_cast %135 : vector<8x8x32xf32> to vector<64x32xf32>
    %137 = arith.truncf %136 : vector<64x32xf32> to vector<64x32xbf16>
    %c1_143 = arith.constant 1 : index
    %c0_144 = arith.constant 0 : index
    %c0_145 = arith.constant 0 : index
    %138 = vector.load %arg25[%c1_143, %c0_144, %c0_145] : memref<10x10x32xf32, #tpu.memory_space<vmem>>, vector<8x8x32xf32>
    %139 = vector.shape_cast %138 : vector<8x8x32xf32> to vector<64x32xf32>
    %140 = arith.truncf %139 : vector<64x32xf32> to vector<64x32xbf16>
    %c1_146 = arith.constant 1 : index
    %c1_147 = arith.constant 1 : index
    %c0_148 = arith.constant 0 : index
    %141 = vector.load %arg25[%c1_146, %c1_147, %c0_148] : memref<10x10x32xf32, #tpu.memory_space<vmem>>, vector<8x8x32xf32>
    %142 = vector.shape_cast %141 : vector<8x8x32xf32> to vector<64x32xf32>
    %143 = arith.truncf %142 : vector<64x32xf32> to vector<64x32xbf16>
    %c1_149 = arith.constant 1 : index
    %c2_150 = arith.constant 2 : index
    %c0_151 = arith.constant 0 : index
    %144 = vector.load %arg25[%c1_149, %c2_150, %c0_151] : memref<10x10x32xf32, #tpu.memory_space<vmem>>, vector<8x8x32xf32>
    %145 = vector.shape_cast %144 : vector<8x8x32xf32> to vector<64x32xf32>
    %146 = arith.truncf %145 : vector<64x32xf32> to vector<64x32xbf16>
    %c2_152 = arith.constant 2 : index
    %c0_153 = arith.constant 0 : index
    %c0_154 = arith.constant 0 : index
    %147 = vector.load %arg25[%c2_152, %c0_153, %c0_154] : memref<10x10x32xf32, #tpu.memory_space<vmem>>, vector<8x8x32xf32>
    %148 = vector.shape_cast %147 : vector<8x8x32xf32> to vector<64x32xf32>
    %149 = arith.truncf %148 : vector<64x32xf32> to vector<64x32xbf16>
    %c2_155 = arith.constant 2 : index
    %c1_156 = arith.constant 1 : index
    %c0_157 = arith.constant 0 : index
    %150 = vector.load %arg25[%c2_155, %c1_156, %c0_157] : memref<10x10x32xf32, #tpu.memory_space<vmem>>, vector<8x8x32xf32>
    %151 = vector.shape_cast %150 : vector<8x8x32xf32> to vector<64x32xf32>
    %152 = arith.truncf %151 : vector<64x32xf32> to vector<64x32xbf16>
    %c2_158 = arith.constant 2 : index
    %c2_159 = arith.constant 2 : index
    %c0_160 = arith.constant 0 : index
    %153 = vector.load %arg25[%c2_158, %c2_159, %c0_160] : memref<10x10x32xf32, #tpu.memory_space<vmem>>, vector<8x8x32xf32>
    %154 = vector.shape_cast %153 : vector<8x8x32xf32> to vector<64x32xf32>
    %155 = arith.truncf %154 : vector<64x32xf32> to vector<64x32xbf16>
    %156 = tpu.concatenate %131, %134, %137, %140, %143, %146, %149, %152, %155 in 1 : vector<64x32xbf16>, vector<64x32xbf16>, vector<64x32xbf16>, vector<64x32xbf16>, vector<64x32xbf16>, vector<64x32xbf16>, vector<64x32xbf16>, vector<64x32xbf16>, vector<64x32xbf16> -> vector<64x288xbf16>
    %c0_161 = arith.constant 0 : index
    %c0_162 = arith.constant 0 : index
    %157 = vector.load %arg8[%c0_161, %c0_162] : memref<288x32xbf16, #tpu.memory_space<vmem>>, vector<288x32xbf16>
    %cst_163 = arith.constant dense<0.000000e+00> : vector<64x32xf32>
    %158 = tpu.matmul %156, %157, %cst_163 {dimension_numbers = #tpu.dot_dimension_numbers<[1], [0], [0], [1], [0, 0, 1, 1], [], []>} : vector<64x288xbf16>, vector<288x32xbf16>, vector<64x32xf32> -> vector<64x32xf32>
    %c0_164 = arith.constant 0 : index
    %c0_165 = arith.constant 0 : index
    %159 = vector.load %arg9[%c0_164, %c0_165] : memref<1x32xf32, #tpu.memory_space<vmem>>, vector<1x32xf32>
    %160 = vector.broadcast %159 : vector<1x32xf32> to vector<64x32xf32>
    %161 = arith.addf %158, %160 : vector<64x32xf32>
    %cst_166 = arith.constant 0.000000e+00 : f32
    %162 = vector.broadcast %cst_166 : f32 to vector<64x32xf32>
    %163 = arith.maximumf %161, %162 : vector<64x32xf32>
    %164 = vector.shape_cast %163 : vector<64x32xf32> to vector<4x2x8x32xf32>
    %cst_167 = arith.constant dense<0xFF800000> : vector<4x8x32xf32>
    %165 = vector.multi_reduction <maximumf>, %164, %cst_167 [1] : vector<4x2x8x32xf32> to vector<4x8x32xf32>
    %166 = vector.shape_cast %165 : vector<4x8x32xf32> to vector<32x32xf32>
    %c0_168 = arith.constant 0 : index
    %c0_169 = arith.constant 0 : index
    %167 = vector.load %arg27[%c0_168, %c0_169] : memref<32x32xf32, #tpu.memory_space<vmem>>, vector<32x32xf32>
    tpu.vector_store %arg27[%c0_168, %c0_169], %166 {strides = array<i32>} : memref<32x32xf32, #tpu.memory_space<vmem>>, vector<32x32xf32>,
    %c0_170 = arith.constant 0 : index
    %c0_171 = arith.constant 0 : index
    %168 = tpu.strided_load %arg27[%c0_170, %c0_171] {strides = array<i32: 2, 1>} : memref<32x32xf32, #tpu.memory_space<vmem>>, vector<16x32xf32>
    %c1_172 = arith.constant 1 : index
    %c0_173 = arith.constant 0 : index
    %169 = tpu.strided_load %arg27[%c1_172, %c0_173] {strides = array<i32: 2, 1>} : memref<32x32xf32, #tpu.memory_space<vmem>>, vector<16x32xf32>
    %170 = arith.maximumf %168, %169 : vector<16x32xf32>
    %171 = arith.truncf %170 : vector<16x32xf32> to vector<16x32xbf16>
    %c0_174 = arith.constant 0 : index
    %c0_175 = arith.constant 0 : index
    %172 = vector.load %arg10[%c0_174, %c0_175] : memref<32x32xbf16, #tpu.memory_space<vmem>>, vector<32x32xbf16>
    %cst_176 = arith.constant dense<0.000000e+00> : vector<16x32xf32>
    %173 = tpu.matmul %171, %172, %cst_176 {dimension_numbers = #tpu.dot_dimension_numbers<[1], [0], [0], [1], [0, 0, 1, 1], [], []>} : vector<16x32xbf16>, vector<32x32xbf16>, vector<16x32xf32> -> vector<16x32xf32>
    %c0_177 = arith.constant 0 : index
    %c0_178 = arith.constant 0 : index
    %174 = vector.load %arg11[%c0_177, %c0_178] : memref<1x32xf32, #tpu.memory_space<vmem>>, vector<1x32xf32>
    %175 = vector.broadcast %174 : vector<1x32xf32> to vector<16x32xf32>
    %176 = arith.addf %173, %175 : vector<16x32xf32>
    %cst_179 = arith.constant 0.000000e+00 : f32
    %177 = vector.broadcast %cst_179 : f32 to vector<16x32xf32>
    %178 = arith.maximumf %176, %177 : vector<16x32xf32>
    %c0_180 = arith.constant 0 : index
    %c0_181 = arith.constant 0 : index
    %179 = vector.load %arg12[%c0_180, %c0_181] : memref<17x32xf32, #tpu.memory_space<vmem>>, vector<1x32xf32>
    %c1_182 = arith.constant 1 : index
    %c0_183 = arith.constant 0 : index
    %180 = vector.load %arg12[%c1_182, %c0_183] : memref<17x32xf32, #tpu.memory_space<vmem>>, vector<16x32xf32>
    %181 = arith.addf %178, %180 : vector<16x32xf32>
    %182 = tpu.concatenate %179, %181 in 0 : vector<1x32xf32>, vector<16x32xf32> -> vector<17x32xf32>
    %183 = arith.truncf %182 : vector<17x32xf32> to vector<17x32xbf16>
    %c0_184 = arith.constant 0 : index
    %c0_185 = arith.constant 0 : index
    %184 = vector.load %arg13[%c0_184, %c0_185] : memref<32x96xbf16, #tpu.memory_space<vmem>>, vector<32x96xbf16>
    %cst_186 = arith.constant dense<0.000000e+00> : vector<17x96xf32>
    %185 = tpu.matmul %183, %184, %cst_186 {dimension_numbers = #tpu.dot_dimension_numbers<[1], [0], [0], [1], [0, 0, 1, 1], [], []>} : vector<17x32xbf16>, vector<32x96xbf16>, vector<17x96xf32> -> vector<17x96xf32>
    %c0_187 = arith.constant 0 : index
    %c0_188 = arith.constant 0 : index
    %186 = vector.load %arg14[%c0_187, %c0_188] : memref<1x96xf32, #tpu.memory_space<vmem>>, vector<1x96xf32>
    %187 = vector.broadcast %186 : vector<1x96xf32> to vector<17x96xf32>
    %188 = arith.addf %185, %187 : vector<17x96xf32>
    %189 = vector.extract_strided_slice %188 {offsets = [0, 0], sizes = [1, 32], strides = [1, 1]} : vector<17x96xf32> to vector<1x32xf32>
    %190 = vector.extract_strided_slice %188 {offsets = [0, 32], sizes = [17, 32], strides = [1, 1]} : vector<17x96xf32> to vector<17x32xf32>
    %191 = vector.extract_strided_slice %188 {offsets = [0, 64], sizes = [17, 32], strides = [1, 1]} : vector<17x96xf32> to vector<17x32xf32>
    %cst_189 = arith.constant dense<0.000000e+00> : vector<1x17xf32>
    %192 = tpu.matmul %189, %190, %cst_189 {dimension_numbers = #tpu.dot_dimension_numbers<[1], [1], [0], [0], [0, 0, 1, 0], [], []>} : vector<1x32xf32>, vector<17x32xf32>, vector<1x17xf32> -> vector<1x17xf32>
    %cst_190 = arith.constant 0.176776692 : f32
    %193 = vector.broadcast %cst_190 : f32 to vector<1x17xf32>
    %194 = arith.mulf %192, %193 : vector<1x17xf32>
    %cst_191 = arith.constant dense<0xFF800000> : vector<1xf32>
    %195 = vector.multi_reduction <maximumf>, %194, %cst_191 [1] : vector<1x17xf32> to vector<1xf32>
    %196 = vector.shape_cast %195 : vector<1xf32> to vector<1x1xf32>
    %197 = vector.broadcast %196 : vector<1x1xf32> to vector<1x17xf32>
    %198 = arith.subf %194, %197 : vector<1x17xf32>
    %199 = math.exp %198 : vector<1x17xf32>
    %cst_192 = arith.constant dense<0.000000e+00> : vector<1xf32>
    %200 = vector.multi_reduction <add>, %199, %cst_192 [1] : vector<1x17xf32> to vector<1xf32>
    %201 = vector.shape_cast %200 : vector<1xf32> to vector<1x1xf32>
    %202 = tpu.reciprocal %201 {approx = true} : vector<1x1xf32> -> vector<1x1xf32>
    %203 = vector.broadcast %202 : vector<1x1xf32> to vector<1x17xf32>
    %204 = arith.mulf %199, %203 : vector<1x17xf32>
    %cst_193 = arith.constant dense<0.000000e+00> : vector<1x32xf32>
    %205 = tpu.matmul %204, %191, %cst_193 {dimension_numbers = #tpu.dot_dimension_numbers<[1], [0], [0], [1], [0, 0, 1, 1], [], []>} : vector<1x17xf32>, vector<17x32xf32>, vector<1x32xf32> -> vector<1x32xf32>
    %c0_194 = arith.constant 0 : index
    %c0_195 = arith.constant 0 : index
    %206 = vector.load %arg15[%c0_194, %c0_195] : memref<32x32xf32, #tpu.memory_space<vmem>>, vector<32x32xf32>
    %cst_196 = arith.constant dense<0.000000e+00> : vector<1x32xf32>
    %207 = tpu.matmul %205, %206, %cst_196 {dimension_numbers = #tpu.dot_dimension_numbers<[1], [0], [0], [1], [0, 0, 1, 1], [], []>} : vector<1x32xf32>, vector<32x32xf32>, vector<1x32xf32> -> vector<1x32xf32>
    %c0_197 = arith.constant 0 : index
    %c0_198 = arith.constant 0 : index
    %208 = vector.load %arg16[%c0_197, %c0_198] : memref<1x32xf32, #tpu.memory_space<vmem>>, vector<1x32xf32>
    %209 = arith.addf %207, %208 : vector<1x32xf32>
    %cst_199 = arith.constant dense<0.000000e+00> : vector<1xf32>
    %210 = vector.multi_reduction <add>, %209, %cst_199 [1] : vector<1x32xf32> to vector<1xf32>
    %211 = vector.shape_cast %210 : vector<1xf32> to vector<1x1xf32>
    %cst_200 = arith.constant 3.200000e+01 : f32
    %212 = vector.broadcast %cst_200 : f32 to vector<1x1xf32>
    %213 = arith.divf %211, %212 : vector<1x1xf32>
    %214 = vector.broadcast %213 : vector<1x1xf32> to vector<1x32xf32>
    %215 = arith.subf %209, %214 : vector<1x32xf32>
    %216 = arith.mulf %215, %215 : vector<1x32xf32>
    %cst_201 = arith.constant dense<0.000000e+00> : vector<1xf32>
    %217 = vector.multi_reduction <add>, %216, %cst_201 [1] : vector<1x32xf32> to vector<1xf32>
    %218 = vector.shape_cast %217 : vector<1xf32> to vector<1x1xf32>
    %cst_202 = arith.constant 3.200000e+01 : f32
    %219 = vector.broadcast %cst_202 : f32 to vector<1x1xf32>
    %220 = arith.divf %218, %219 : vector<1x1xf32>
    %221 = vector.broadcast %213 : vector<1x1xf32> to vector<1x32xf32>
    %222 = arith.subf %209, %221 : vector<1x32xf32>
    %cst_203 = arith.constant 9.99999974E-6 : f32
    %223 = vector.broadcast %cst_203 : f32 to vector<1x1xf32>
    %224 = arith.addf %220, %223 : vector<1x1xf32>
    %225 = math.rsqrt %224 : vector<1x1xf32>
    %226 = vector.broadcast %225 : vector<1x1xf32> to vector<1x32xf32>
    %227 = arith.mulf %222, %226 : vector<1x32xf32>
    %c0_204 = arith.constant 0 : index
    %c0_205 = arith.constant 0 : index
    %228 = vector.load %arg17[%c0_204, %c0_205] : memref<1x32xf32, #tpu.memory_space<vmem>>, vector<1x32xf32>
    %229 = arith.mulf %227, %228 : vector<1x32xf32>
    %c0_206 = arith.constant 0 : index
    %c0_207 = arith.constant 0 : index
    %230 = vector.load %arg18[%c0_206, %c0_207] : memref<1x32xf32, #tpu.memory_space<vmem>>, vector<1x32xf32>
    %231 = arith.addf %229, %230 : vector<1x32xf32>
    %c0_208 = arith.constant 0 : index
    %c0_209 = arith.constant 0 : index
    %232 = vector.load %arg19[%c0_208, %c0_209] : memref<32x2xf32, #tpu.memory_space<vmem>>, vector<32x2xf32>
    %cst_210 = arith.constant dense<0.000000e+00> : vector<1x2xf32>
    %233 = tpu.matmul %231, %232, %cst_210 {dimension_numbers = #tpu.dot_dimension_numbers<[1], [0], [0], [1], [0, 0, 1, 1], [], []>} : vector<1x32xf32>, vector<32x2xf32>, vector<1x2xf32> -> vector<1x2xf32>
    %c0_211 = arith.constant 0 : index
    %c0_212 = arith.constant 0 : index
    %234 = vector.load %arg20[%c0_211, %c0_212] : memref<1x2xf32, #tpu.memory_space<vmem>>, vector<1x2xf32>
    %235 = arith.addf %233, %234 : vector<1x2xf32>
    %c0_213 = arith.constant 0 : index
    %c0_214 = arith.constant 0 : index
    %c0_215 = arith.constant 0 : index
    %236 = vector.load %arg21[%c0_213, %c0_214, %c0_215] : memref<1x1x2xf32, #tpu.memory_space<vmem>>, vector<1x1x2xf32>
    %237 = vector.shape_cast %236 : vector<1x1x2xf32> to vector<1x2xf32>
    %238 = vector.shape_cast %235 : vector<1x2xf32> to vector<1x1x2xf32>
    tpu.vector_store %arg21[%c0_213, %c0_214, %c0_215], %238 {strides = array<i32>} : memref<1x1x2xf32, #tpu.memory_space<vmem>>, vector<1x1x2xf32>,
    return
  }
  func.func @transform_0(%arg0: i32) -> (i32, i32, i32, i32) {
    %c0_i32 = arith.constant 0 : i32
    %c0_i32_0 = arith.constant 0 : i32
    %c0_i32_1 = arith.constant 0 : i32
    %c0_i32_2 = arith.constant 0 : i32
    return %arg0, %c0_i32, %c0_i32_0, %c0_i32_1 : i32, i32, i32, i32
  }
  func.func @transform_1(%arg0: i32) -> (i32, i32) {
    %c0_i32 = arith.constant 0 : i32
    %c0_i32_0 = arith.constant 0 : i32
    %c0_i32_1 = arith.constant 0 : i32
    return %c0_i32, %c0_i32_0 : i32, i32
  }
  func.func @transform_2(%arg0: i32) -> (i32, i32) {
    %c0_i32 = arith.constant 0 : i32
    %c0_i32_0 = arith.constant 0 : i32
    %c0_i32_1 = arith.constant 0 : i32
    return %c0_i32, %c0_i32_0 : i32, i32
  }
  func.func @transform_3(%arg0: i32) -> (i32, i32) {
    %c0_i32 = arith.constant 0 : i32
    %c0_i32_0 = arith.constant 0 : i32
    %c0_i32_1 = arith.constant 0 : i32
    return %c0_i32, %c0_i32_0 : i32, i32
  }
  func.func @transform_4(%arg0: i32) -> (i32, i32) {
    %c0_i32 = arith.constant 0 : i32
    %c0_i32_0 = arith.constant 0 : i32
    %c0_i32_1 = arith.constant 0 : i32
    return %c0_i32, %c0_i32_0 : i32, i32
  }
  func.func @transform_5(%arg0: i32) -> (i32, i32) {
    %c0_i32 = arith.constant 0 : i32
    %c0_i32_0 = arith.constant 0 : i32
    %c0_i32_1 = arith.constant 0 : i32
    return %c0_i32, %c0_i32_0 : i32, i32
  }
  func.func @transform_6(%arg0: i32) -> (i32, i32) {
    %c0_i32 = arith.constant 0 : i32
    %c0_i32_0 = arith.constant 0 : i32
    %c0_i32_1 = arith.constant 0 : i32
    return %c0_i32, %c0_i32_0 : i32, i32
  }
  func.func @transform_7(%arg0: i32) -> (i32, i32) {
    %c0_i32 = arith.constant 0 : i32
    %c0_i32_0 = arith.constant 0 : i32
    %c0_i32_1 = arith.constant 0 : i32
    return %c0_i32, %c0_i32_0 : i32, i32
  }
  func.func @transform_8(%arg0: i32) -> (i32, i32) {
    %c0_i32 = arith.constant 0 : i32
    %c0_i32_0 = arith.constant 0 : i32
    %c0_i32_1 = arith.constant 0 : i32
    return %c0_i32, %c0_i32_0 : i32, i32
  }
  func.func @transform_9(%arg0: i32) -> (i32, i32) {
    %c0_i32 = arith.constant 0 : i32
    %c0_i32_0 = arith.constant 0 : i32
    %c0_i32_1 = arith.constant 0 : i32
    return %c0_i32, %c0_i32_0 : i32, i32
  }
  func.func @transform_10(%arg0: i32) -> (i32, i32) {
    %c0_i32 = arith.constant 0 : i32
    %c0_i32_0 = arith.constant 0 : i32
    %c0_i32_1 = arith.constant 0 : i32
    return %c0_i32, %c0_i32_0 : i32, i32
  }
  func.func @transform_11(%arg0: i32) -> (i32, i32) {
    %c0_i32 = arith.constant 0 : i32
    %c0_i32_0 = arith.constant 0 : i32
    %c0_i32_1 = arith.constant 0 : i32
    return %c0_i32, %c0_i32_0 : i32, i32
  }
  func.func @transform_12(%arg0: i32) -> (i32, i32) {
    %c0_i32 = arith.constant 0 : i32
    %c0_i32_0 = arith.constant 0 : i32
    %c0_i32_1 = arith.constant 0 : i32
    return %c0_i32, %c0_i32_0 : i32, i32
  }
  func.func @transform_13(%arg0: i32) -> (i32, i32) {
    %c0_i32 = arith.constant 0 : i32
    %c0_i32_0 = arith.constant 0 : i32
    %c0_i32_1 = arith.constant 0 : i32
    return %c0_i32, %c0_i32_0 : i32, i32
  }
  func.func @transform_14(%arg0: i32) -> (i32, i32) {
    %c0_i32 = arith.constant 0 : i32
    %c0_i32_0 = arith.constant 0 : i32
    %c0_i32_1 = arith.constant 0 : i32
    return %c0_i32, %c0_i32_0 : i32, i32
  }
  func.func @transform_15(%arg0: i32) -> (i32, i32) {
    %c0_i32 = arith.constant 0 : i32
    %c0_i32_0 = arith.constant 0 : i32
    %c0_i32_1 = arith.constant 0 : i32
    return %c0_i32, %c0_i32_0 : i32, i32
  }
  func.func @transform_16(%arg0: i32) -> (i32, i32) {
    %c0_i32 = arith.constant 0 : i32
    %c0_i32_0 = arith.constant 0 : i32
    %c0_i32_1 = arith.constant 0 : i32
    return %c0_i32, %c0_i32_0 : i32, i32
  }
  func.func @transform_17(%arg0: i32) -> (i32, i32) {
    %c0_i32 = arith.constant 0 : i32
    %c0_i32_0 = arith.constant 0 : i32
    %c0_i32_1 = arith.constant 0 : i32
    return %c0_i32, %c0_i32_0 : i32, i32
  }
  func.func @transform_18(%arg0: i32) -> (i32, i32) {
    %c0_i32 = arith.constant 0 : i32
    %c0_i32_0 = arith.constant 0 : i32
    %c0_i32_1 = arith.constant 0 : i32
    return %c0_i32, %c0_i32_0 : i32, i32
  }
  func.func @transform_19(%arg0: i32) -> (i32, i32) {
    %c0_i32 = arith.constant 0 : i32
    %c0_i32_0 = arith.constant 0 : i32
    %c0_i32_1 = arith.constant 0 : i32
    return %c0_i32, %c0_i32_0 : i32, i32
  }
  func.func @transform_20(%arg0: i32) -> (i32, i32, i32) {
    %c0_i32 = arith.constant 0 : i32
    %c0_i32_0 = arith.constant 0 : i32
    %c0_i32_1 = arith.constant 0 : i32
    return %arg0, %c0_i32, %c0_i32_0 : i32, i32, i32
  }
}

</mosaic_0001>

<bundles_post_ra>
// kernel: conv_vit_forward.1
= control target key start
LH: loop header
LB: loop body
LE: loop exit
PB: predicated region body
PF: predicated region fallthrough
CT: control target
= control target key end

     0   :  { %s7805_s0 = inlined_call_operand.vmem [shape: f32[2,16,16,4], index: 0, kind: input, shape index: {}]   ;;  %s7806_s1 = inlined_call_operand.vmem [shape: bf16[36,16], index: 1, kind: input, shape index: {}]   ;;  %s7807_s2 = inlined_call_operand.vmem [shape: f32[1,16], index: 2, kind: input, shape index: {}]   ;;  %s7808_s3 = inlined_call_operand.vmem [shape: bf16[144,16], index: 3, kind: input, shape index: {}]   ;;  %s7809_s4 = inlined_call_operand.vmem [shape: f32[1,16], index: 4, kind: input, shape index: {}]   ;;  %s7810_s5 = inlined_call_operand.vmem [shape: bf16[144,32], index: 5, kind: input, shape index: {}]   ;;  %s7811_s6 = inlined_call_operand.vmem [shape: f32[1,32], index: 6, kind: input, shape index: {}]   ;;  %s7812_s7 = inlined_call_operand.vmem [shape: bf16[288,32], index: 7, kind: input, shape index: {}]   ;;  %s7813_s8 = inlined_call_operand.vmem [shape: f32[1,32], index: 8, kind: input, shape index: {}]   ;;  %s7814_s9 = inlined_call_operand.vmem [shape: bf16[32,32], index: 9, kind: input, shape index: {}]   ;;  %s7815_s10 = inlined_call_operand.vmem [shape: f32[1,32], index: 10, kind: input, shape index: {}]   ;;  %s7816_s11 = inlined_call_operand.vmem [shape: f32[17,32], index: 11, kind: input, shape index: {}]   ;;  %s7817_s12 = inlined_call_operand.vmem [shape: bf16[32,96], index: 12, kind: input, shape index: {}]   ;;  %s7818_s13 = inlined_call_operand.vmem [shape: f32[1,96], index: 13, kind: input, shape index: {}]   ;;  %s7819_s14 = inlined_call_operand.vmem [shape: f32[32,32], index: 14, kind: input, shape index: {}]   ;;  %s7820_s15 = inlined_call_operand.vmem [shape: f32[1,32], index: 15, kind: input, shape index: {}]   ;;  %s7821_s16 = inlined_call_operand.vmem [shape: f32[1,32], index: 16, kind: input, shape index: {}]   ;;  %s7822_s17 = inlined_call_operand.vmem [shape: f32[1,32], index: 17, kind: input, shape index: {}]   ;;  %s7823_s18 = inlined_call_operand.vmem [shape: f32[32,2], index: 18, kind: input, shape index: {}]   ;;  %s7824_s19 = inlined_call_operand.vmem [shape: f32[1,2], index: 19, kind: input, shape index: {}]   ;;  %s7825_s20 = inlined_call_operand.hbm [shape: f32[2,1,2], index: 20, kind: output, shape index: {}]  }
   0x1   :  { %7861 = sst [smem:[#allocation16_spill]] %s7805_s0 }
   0x2   :  { %7862 = sst [smem:[#allocation17_spill]] %s7806_s1 }
   0x3   :  { %7863 = sst [smem:[#allocation18_spill]] %s7807_s2 }
   0x4   :  { %7864 = sst [smem:[#allocation19_spill]] %s7808_s3 }
   0x5   :  { %7865 = sst [smem:[#allocation20_spill]] %s7809_s4 }
   0x6   :  { %7866 = sst [smem:[#allocation21_spill]] %s7810_s5 }
   0x7   :  { %7867 = sst [smem:[#allocation22_spill]] %s7811_s6 }
   0x8   :  { %25 = vsyncpa [#allocation9], 0 }
   0x9   :  { %27 = vsyncpa [#allocation9 + $0x1], 0  ;;  %s5882_s1 = smov 0   ;;  %s5884_s22 = smov 0  }
   0xa   :  { %s5886_s23 = smov 0   ;;  %s5888_s24 = smov 0  }
   0xb LB: > { %7868 = sst [smem:[#allocation11_spill]] %s5746_s1  ;;  %s5903_s2 = sadd.s32 4294967295, %s5758_s24   ;;  %s5758_s24 = sphi %s5888_s24, %s7897_s24   ;;  %s5754_s23 = sphi %s5886_s23, %s7899_s23   ;;  %s5750_s22 = sphi %s5884_s22, %s7901_s22   ;;  %s5746_s1 = sphi %s5882_s1, %s7900_s1  }
   0xc   : > { %7869 = sst [smem:[#allocation12_spill]] %s5754_s23  ;;  %s5287_s25 = sadd.s32 4294967294, %s5758_s24  }
   0xd   : > { %s5907_s3 = sadd.s32 1, %s5758_s24   ;;  %s465_s26 = sadd.s32 1, %s5754_s23 }
   0xe   : > { %7870 = sst [smem:[#allocation13_spill]] %s5907_s3  ;;  %s462_s27 = ssub.s32 %s5758_s24, %s5907_s3 }
   0xf   : > { %p475_p0 = scmp.ne.s32.totalorder %s5754_s23, %s5750_s22  ;;  %p463_p1 = scmp.eq.s32.totalorder %s462_s27, 0 }
  0x10   : > { %p476_p2 = scmp.eq.s32.totalorder %s5903_s2, 1  ;;  %p481_p3 = scmp.ne.s32.totalorder %s5750_s22, %s5746_s1 }
  0x11   : > { %p482_p4 = scmp.eq.s32.totalorder %s5287_s25, 1  ;;  %p5290_p7 = scmp.ge.s32.totalorder %s5758_s24, 1 }
  0x12   : > { %s5918_s28 = scalar_select %p463_p1, %s5754_s23, %s465_s26  }
  0x13   : > { %p5920_p5 = por %p476_p2, %p475_p0  ;;  %p5924_p6 = por %p482_p4, %p481_p3 }
  0x14   : > { %7871 = sst [smem:[#allocation14_spill]] %s5918_s28  ;;  %p565_p8 = scmp.lt.s32.totalorder %s5758_s24, 3 }
  0x15   : > { %s7873_s29 = scalar_select %p5924_p6, 1, 0 }
  0x16   : > { %p566_p9 = pnand %p5290_p7, %p565_p8 }
  0x17   : > { %7874 = sst [smem:[#allocation15_spill]] %s7873_s29  ;;  %p622_p10 = scmp.lt.s32.totalorder (!%p566_p9), %s5903_s2, 1 }
  0x18   : > { %569 = sbr.rel (%p566_p9) target bundleno = 3656 (0xe48), region = 100  ;;  %s7875_s26 = sld [smem:[#allocation16_spill]] (!%p566_p9) }
  0x19   : > { %s7830_s21 = smov (!%p566_p9), 12   ;;  %s7828_s25 = smov (!%p566_p9), 16  }
  0x1a   : > { %s7840_s28 = smov (!%p566_p9), 28   ;;  %s7883_s23 = smov (!%p566_p9), 28  }
  0x1b   : > { %s7884_s3 = smov (!%p566_p9), 32   ;;  %s7888_s5 = sld [smem:[#allocation21_spill]] (!%p566_p9) }
  0x1c   : > { %s7894_s6 = sld [smem:[#allocation22_spill]] (!%p566_p9) }
  0x1d   : > { %vm660_vm0 = vcmask 31744   ;;  %vm663_vm1 = vcmask 25600   ;;  %v5760_v0 = vmov 0.0   ;;  %s623_s30 = scalar_select %p622_p10, %s5903_s2, 1  ;;  %vm1680_vm2 = vcmask 130048  }
  0x1e   : > { %661 = vst.msk [vmem:[#allocation2] sm:$0xff] %vm660_vm0, %v5760_v0  ;;  %662 = vst.msk [vmem:[#allocation2 + $0x8] sm:$0xff] %vm660_vm0, %v5760_v0  ;;  %vm1812_vm3 = vcmask 261120   ;;  %vm1905_vm4 = vcmask 1041408   ;;  %vm1614_vm5 = vcmask 64512   ;;  %vm1647_vm6 = vcmask 97280  }
  0x1f   : > { %664 = vst.msk [vmem:[#allocation2 + $0x10] sm:$0x3] %vm663_vm1, %v5760_v0  ;;  %667 = vst.msk [vmem:[#allocation2 + $0x28] sm:$0x3] %vm663_vm1, %v5760_v0  ;;  %s5396_s0 = sshll.u32 %s623_s30, 8  ;;  %s7832_s30 = smov 8  }
  0x20   : > { %665 = vst.msk [vmem:[#allocation2 + $0x18] sm:$0xff] %vm660_vm0, %v5760_v0  ;;  %666 = vst.msk [vmem:[#allocation2 + $0x20] sm:$0xff] %vm660_vm0, %v5760_v0  ;;  %s6043_s27 = scalar_lea.vmem %s7875_s26, %s5396_s0  ;;  %s7834_s0 = smov 4   ;;  %vm1713_vm7 = vcmask 162816   ;;  %vm1746_vm8 = vcmask 195584   ;;  %vm1779_vm9 = vcmask 228352  }
  0x21   : > { %668 = vst.msk [vmem:[#allocation2 + $0x30] sm:$0xff] %vm660_vm0, %v5760_v0  ;;  %669 = vst.msk [vmem:[#allocation2 + $0x38] sm:$0xff] %vm660_vm0, %v5760_v0  ;;  %v628_v1 = vld [vmem:[%s6043_s27] sm:$0xff]  ;;  %v629_v2 = vld [vmem:[%s6043_s27 + $0x8] sm:$0xff]  ;;  %s7836_s26 = smov 20   ;;  %vm1872_vm10 = vcmask 293888  }
  0x22   : > { %670 = vst.msk [vmem:[#allocation2 + $0x40] sm:$0x3] %vm663_vm1, %v5760_v0  ;;  %673 = vst.msk [vmem:[#allocation2 + $0x58] sm:$0x3] %vm663_vm1, %v5760_v0  ;;  %v630_v3 = vld [vmem:[%s6043_s27 + $0x10] sm:$0xff]  ;;  %v631_v9 = vld [vmem:[%s6043_s27 + $0x18] sm:$0xff] }
  0x23   : > { %671 = vst.msk [vmem:[#allocation2 + $0x48] sm:$0xff] %vm660_vm0, %v5760_v0  ;;  %672 = vst.msk [vmem:[#allocation2 + $0x50] sm:$0xff] %vm660_vm0, %v5760_v0  ;;  %v632_v10 = vld [vmem:[%s6043_s27 + $0x20] sm:$0xff]  ;;  %v633_v12 = vld [vmem:[%s6043_s27 + $0x28] sm:$0xff]  ;;  %vm2104_vm11 = vcmask 123904   ;;  %vm3039_vm12 = vcmask 392192  }
  0x24   : > { %674 = vst.msk [vmem:[#allocation2 + $0x60] sm:$0xff] %vm660_vm0, %v5760_v0  ;;  %675 = vst.msk [vmem:[#allocation2 + $0x68] sm:$0xff] %vm660_vm0, %v5760_v0  ;;  %v634_v13 = vld [vmem:[%s6043_s27 + $0x30] sm:$0xff]  ;;  %v635_v14 = vld [vmem:[%s6043_s27 + $0x38] sm:$0xff]  ;;  %vm3072_vm13 = vcmask 523264   ;;  %vm3105_vm14 = vcmask 654336  }
  0x25   : > { %676 = vst.msk [vmem:[#allocation2 + $0x70] sm:$0x3] %vm663_vm1, %v5760_v0  ;;  %679 = vst.msk [vmem:[#allocation2 + $0x88] sm:$0x3] %vm663_vm1, %v5760_v0  ;;  %v845_v4 = vld [vmem:[#allocation2 + $0x2] sm:$0xff]  ;;  %v638_v17 = vld [vmem:[%s6043_s27 + $0x50] sm:$0xff] }
  0x26   : > { %677 = vst.msk [vmem:[#allocation2 + $0x78] sm:$0xff] %vm660_vm0, %v5760_v0  ;;  %678 = vst.msk [vmem:[#allocation2 + $0x80] sm:$0xff] %vm660_vm0, %v5760_v0  ;;  %v846_v5 = vld [vmem:[#allocation2 + $0xa] sm:$0xff]  ;;  %v797_v6 = vld [vmem:[#allocation2 + $0x1] sm:$0xff]  ;;  %vm3138_vm15 = vcmask 785408  }
  0x27   : > { %680 = vst.msk [vmem:[#allocation2 + $0x90] sm:$0xff] %vm660_vm0, %v5760_v0  ;;  %681 = vst.msk [vmem:[#allocation2 + $0x98] sm:$0xff] %vm660_vm0, %v5760_v0  ;;  %v877_v7 = vpack.c.bf16 %v846_v5, %v845_v4  ;;  %v798_v8 = vld [vmem:[#allocation2 + $0x9] sm:$0xff]  ;;  %v636_v15 = vld [vmem:[%s6043_s27 + $0x40] sm:$0xff] }
  0x28   : > { %682 = vst.msk [vmem:[#allocation2 + $0xa0] sm:$0x3] %vm663_vm1, %v5760_v0  ;;  %685 = vst.msk [vmem:[#allocation2 + $0xb8] sm:$0x3] %vm663_vm1, %v5760_v0  ;;  %v829_v11 = vpack.c.bf16 %v798_v8, %v797_v6  ;;  %v637_v16 = vld [vmem:[%s6043_s27 + $0x48] sm:$0xff]  ;;  %v639_v18 = vld [vmem:[%s6043_s27 + $0x58] sm:$0xff] }
  0x29   : > { %683 = vst.msk [vmem:[#allocation2 + $0xa8] sm:$0xff] %vm660_vm0, %v5760_v0  ;;  %684 = vst.msk [vmem:[#allocation2 + $0xb0] sm:$0xff] %vm660_vm0, %v5760_v0  ;;  %1246 = vrot.lane.b32.xlu1 %v877_v7, %s7832_s30  ;;  %v640_v19 = vld [vmem:[%s6043_s27 + $0x60] sm:$0xff]  ;;  %v641_v20 = vld [vmem:[%s6043_s27 + $0x68] sm:$0xff] }
  0x2a   : > { %686 = vst.msk [vmem:[#allocation2 + $0xc0] sm:$0xff] %vm660_vm0, %v5760_v0  ;;  %687 = vst.msk [vmem:[#allocation2 + $0xc8] sm:$0xff] %vm660_vm0, %v5760_v0  ;;  %1198 = vrot.lane.b32.xlu0 %v829_v11, %s7834_s0  ;;  %v642_v21 = vld [vmem:[%s6043_s27 + $0x70] sm:$0xff]  ;;  %v643_v22 = vld [vmem:[%s6043_s27 + $0x78] sm:$0xff] }
  0x2b   : > { %688 = vst.msk [vmem:[#allocation2 + $0xd0] sm:$0x3] %vm663_vm1, %v5760_v0  ;;  %691 = vst.msk [vmem:[#allocation2 + $0xe8] sm:$0x3] %vm663_vm1, %v5760_v0  ;;  %v644_v23 = vld [vmem:[%s6043_s27 + $0x80] sm:$0xff]  ;;  %v645_v24 = vld [vmem:[%s6043_s27 + $0x88] sm:$0xff] }
  0x2c   : > { %689 = vst.msk [vmem:[#allocation2 + $0xd8] sm:$0xff] %vm660_vm0, %v5760_v0  ;;  %690 = vst.msk [vmem:[#allocation2 + $0xe0] sm:$0xff] %vm660_vm0, %v5760_v0  ;;  %v646_v50 = vld [vmem:[%s6043_s27 + $0x90] sm:$0xff]  ;;  %v647_v51 = vld [vmem:[%s6043_s27 + $0x98] sm:$0xff] }
  0x2d   : > { %692 = vst.msk [vmem:[#allocation2 + $0xf0] sm:$0xff] %vm660_vm0, %v5760_v0  ;;  %693 = vst.msk [vmem:[#allocation2 + $0xf8] sm:$0xff] %vm660_vm0, %v5760_v0  ;;  %v648_v55 = vld [vmem:[%s6043_s27 + $0xa0] sm:$0xff]  ;;  %v649_v58 = vld [vmem:[%s6043_s27 + $0xa8] sm:$0xff] }
  0x2e   : > { %694 = vst.msk [vmem:[#allocation2 + $0x100] sm:$0x3] %vm663_vm1, %v5760_v0  ;;  %697 = vst.msk [vmem:[#allocation2 + $0x118] sm:$0x3] %vm663_vm1, %v5760_v0  ;;  %v650_v62 = vld [vmem:[%s6043_s27 + $0xb0] sm:$0xff]  ;;  %v651_v63 = vld [vmem:[%s6043_s27 + $0xb8] sm:$0xff] }
  0x2f   : > { %695 = vst.msk [vmem:[#allocation2 + $0x108] sm:$0xff] %vm660_vm0, %v5760_v0  ;;  %696 = vst.msk [vmem:[#allocation2 + $0x110] sm:$0xff] %vm660_vm0, %v5760_v0  ;;  %v652_v7 = vld [vmem:[%s6043_s27 + $0xc0] sm:$0xff] }
  0x30   : > { %698 = vst.msk [vmem:[#allocation2 + $0x120] sm:$0xff] %vm660_vm0, %v5760_v0  ;;  %699 = vst.msk [vmem:[#allocation2 + $0x128] sm:$0xff] %vm660_vm0, %v5760_v0 }
  0x31   : > { %700 = vst.msk [vmem:[#allocation2 + $0x130] sm:$0x3] %vm663_vm1, %v5760_v0  ;;  %703 = vst.msk [vmem:[#allocation2 + $0x148] sm:$0x3] %vm663_vm1, %v5760_v0 }
  0x32   : > { %701 = vst.msk [vmem:[#allocation2 + $0x138] sm:$0xff] %vm660_vm0, %v5760_v0  ;;  %702 = vst.msk [vmem:[#allocation2 + $0x140] sm:$0xff] %vm660_vm0, %v5760_v0 }
  0x33   : > { %704 = vst.msk [vmem:[#allocation2 + $0x150] sm:$0xff] %vm660_vm0, %v5760_v0  ;;  %705 = vst.msk [vmem:[#allocation2 + $0x158] sm:$0xff] %vm660_vm0, %v5760_v0 }
  0x34   : > { %706 = vst.msk [vmem:[#allocation2 + $0x160] sm:$0x3] %vm663_vm1, %v5760_v0  ;;  %709 = vst.msk [vmem:[#allocation2 + $0x178] sm:$0x3] %vm663_vm1, %v5760_v0 }
  0x35   : > { %707 = vst.msk [vmem:[#allocation2 + $0x168] sm:$0xff] %vm660_vm0, %v5760_v0  ;;  %708 = vst.msk [vmem:[#allocation2 + $0x170] sm:$0xff] %vm660_vm0, %v5760_v0 }
  0x36   : > { %710 = vst.msk [vmem:[#allocation2 + $0x180] sm:$0xff] %vm660_vm0, %v5760_v0  ;;  %711 = vst.msk [vmem:[#allocation2 + $0x188] sm:$0xff] %vm660_vm0, %v5760_v0 }
  0x37   : > { %712 = vst.msk [vmem:[#allocation2 + $0x190] sm:$0x3] %vm663_vm1, %v5760_v0  ;;  %715 = vst.msk [vmem:[#allocation2 + $0x1a8] sm:$0x3] %vm663_vm1, %v5760_v0  ;;  %vm4094_vm1 = vcmask 254976  }
  0x38   : > { %713 = vst.msk [vmem:[#allocation2 + $0x198] sm:$0xff] %vm660_vm0, %v5760_v0  ;;  %714 = vst.msk [vmem:[#allocation2 + $0x1a0] sm:$0xff] %vm660_vm0, %v5760_v0 }
  0x39   : > { %717 = vst.msk [vmem:[#allocation2 + $0x19] sm:$0xff] %vm660_vm0, %v628_v1  ;;  %718 = vst.msk [vmem:[#allocation2 + $0x21] sm:$0xff] %vm660_vm0, %v629_v2 }
  0x3a   : > { %719 = vst.msk [vmem:[#allocation2 + $0x31] sm:$0xff] %vm660_vm0, %v630_v3  ;;  %720 = vst.msk [vmem:[#allocation2 + $0x39] sm:$0xff] %vm660_vm0, %v631_v9 }
  0x3b   : > { %721 = vst.msk [vmem:[#allocation2 + $0x49] sm:$0xff] %vm660_vm0, %v632_v10  ;;  %722 = vst.msk [vmem:[#allocation2 + $0x51] sm:$0xff] %vm660_vm0, %v633_v12  ;;  %v653_v10 = vld [vmem:[%s6043_s27 + $0xc8] sm:$0xff] }
  0x3c   : > { %723 = vst.msk [vmem:[#allocation2 + $0x61] sm:$0xff] %vm660_vm0, %v634_v13  ;;  %724 = vst.msk [vmem:[#allocation2 + $0x69] sm:$0xff] %vm660_vm0, %v635_v14 }
  0x3d   : > { %725 = vst.msk [vmem:[#allocation2 + $0x79] sm:$0xff] %vm660_vm0, %v636_v15  ;;  %726 = vst.msk [vmem:[#allocation2 + $0x81] sm:$0xff] %vm660_vm0, %v637_v16 }
  0x3e   : > { %727 = vst.msk [vmem:[#allocation2 + $0x91] sm:$0xff] %vm660_vm0, %v638_v17  ;;  %728 = vst.msk [vmem:[#allocation2 + $0x99] sm:$0xff] %vm660_vm0, %v639_v18 }
  0x3f   : > { %2102 = vst.msk [vmem:[#allocation3] sm:$0xff] %vm1680_vm2, %v5760_v0  ;;  %2103 = vst.msk [vmem:[#allocation3 + $0x8] sm:$0xff] %vm1680_vm2, %v5760_v0 }
  0x40   : > { %2106 = vst.msk [vmem:[#allocation3 + $0x18] sm:$0xff] %vm1680_vm2, %v5760_v0  ;;  %2107 = vst.msk [vmem:[#allocation3 + $0x20] sm:$0xff] %vm1680_vm2, %v5760_v0  ;;  %v847_v25 = vld [vmem:[#allocation2 + $0x1a] sm:$0xff]  ;;  %v848_v26 = vld [vmem:[#allocation2 + $0x22] sm:$0xff] }
  0x41   : > { %2109 = vst.msk [vmem:[#allocation3 + $0x30] sm:$0xff] %vm1680_vm2, %v5760_v0  ;;  %2110 = vst.msk [vmem:[#allocation3 + $0x38] sm:$0xff] %vm1680_vm2, %v5760_v0  ;;  %v799_v27 = vld [vmem:[#allocation2 + $0x19] sm:$0xff]  ;;  %v878_v28 = vpack.c.bf16 %v848_v26, %v847_v25  ;;  %v800_v29 = vld [vmem:[#allocation2 + $0x21] sm:$0xff] }
  0x42   : > { %2112 = vst.msk [vmem:[#allocation3 + $0x48] sm:$0xff] %vm1680_vm2, %v5760_v0  ;;  %2113 = vst.msk [vmem:[#allocation3 + $0x50] sm:$0xff] %vm1680_vm2, %v5760_v0  ;;  %v895_v30 = vld [vmem:[#allocation2 + $0x30] sm:$0xff]  ;;  %v893_v31 = vld [vmem:[#allocation2 + $0x18] sm:$0xff]  ;;  %v830_v32 = vpack.c.bf16 %v800_v29, %v799_v27 }
  0x43   : > { %2115 = vst.msk [vmem:[#allocation3 + $0x60] sm:$0xff] %vm1680_vm2, %v5760_v0  ;;  %2116 = vst.msk [vmem:[#allocation3 + $0x68] sm:$0xff] %vm1680_vm2, %v5760_v0  ;;  %v896_v33 = vld [vmem:[#allocation2 + $0x38] sm:$0xff]  ;;  %v894_v34 = vld [vmem:[#allocation2 + $0x20] sm:$0xff]  ;;  %1248 = vrot.lane.b32.xlu1 %v878_v28, %s7832_s30  ;;  %s7876_s30 = sld [smem:[#allocation17_spill]] }
  0x44   : > { %2118 = vst.msk [vmem:[#allocation3 + $0x78] sm:$0xff] %vm1680_vm2, %v5760_v0  ;;  %2119 = vst.msk [vmem:[#allocation3 + $0x80] sm:$0xff] %vm1680_vm2, %v5760_v0  ;;  %v6176_v35 = vpack.c.bf16 %v896_v33, %v895_v30  ;;  %1200 = vrot.lane.b32.xlu0 %v830_v32, %s7834_s0  ;;  %v6179_v36 = vpack.c.bf16 %v894_v34, %v893_v31  ;;  %v943_v37 = vld [vmem:[#allocation2 + $0x31] sm:$0xff]  ;;  %v944_v38 = vld [vmem:[#allocation2 + $0x39] sm:$0xff]  ;;  %s7842_s0 = smov 24  }
  0x45   : > { %2121 = vst.msk [vmem:[#allocation3 + $0x90] sm:$0xff] %vm1680_vm2, %v5760_v0  ;;  %2122 = vst.msk [vmem:[#allocation3 + $0x98] sm:$0xff] %vm1680_vm2, %v5760_v0  ;;  %v6183_v39 = vpack.c.bf16 %v944_v38, %v943_v37  ;;  %v991_v40 = vld [vmem:[#allocation2 + $0x32] sm:$0xff]  ;;  %v992_v41 = vld [vmem:[#allocation2 + $0x3a] sm:$0xff] }
  0x46   : > { %2124 = vst.msk [vmem:[#allocation3 + $0xa8] sm:$0xff] %vm1680_vm2, %v5760_v0  ;;  %2125 = vst.msk [vmem:[#allocation3 + $0xb0] sm:$0xff] %vm1680_vm2, %v5760_v0  ;;  %v6189_v42 = vpack.c.bf16 %v992_v41, %v991_v40  ;;  %v1040_v43 = vld [vmem:[#allocation2 + $0x48] sm:$0xff]  ;;  %v1041_v44 = vld [vmem:[#allocation2 + $0x50] sm:$0xff] }
  0x47   : > { %2127 = vst.msk [vmem:[#allocation3 + $0xc0] sm:$0xff] %vm1680_vm2, %v5760_v0  ;;  %2128 = vst.msk [vmem:[#allocation3 + $0xc8] sm:$0xff] %vm1680_vm2, %v5760_v0  ;;  %1296 = vrot.lane.b32.xlu1 %v6176_v35, %s7830_s21  ;;  %v6214_v45 = vpack.c.bf16 %v1041_v44, %v1040_v43  ;;  %v1088_v46 = vld [vmem:[#allocation2 + $0x49] sm:$0xff]  ;;  %v1089_v47 = vld [vmem:[#allocation2 + $0x51] sm:$0xff] }
  0x48   : > { %2130 = vst.msk [vmem:[#allocation3 + $0xd8] sm:$0xff] %vm1680_vm2, %v5760_v0  ;;  %2131 = vst.msk [vmem:[#allocation3 + $0xe0] sm:$0xff] %vm1680_vm2, %v5760_v0  ;;  %1294 = vrot.lane.b32.xlu0 %v6179_v36, %s7830_s21  ;;  %v1136_v48 = vld [vmem:[#allocation2 + $0x4a] sm:$0xff]  ;;  %v1119_v52 = vpack.c.bf16 %v1089_v47, %v1088_v46  ;;  %v1137_v53 = vld [vmem:[#allocation2 + $0x52] sm:$0xff]  ;;  %s7877_s21 = smov 4  }
  0x49   : > { %2133 = vst.msk [vmem:[#allocation3 + $0xf0] sm:$0xff] %vm1680_vm2, %v5760_v0  ;;  %2134 = vst.msk [vmem:[#allocation3 + $0xf8] sm:$0xff] %vm1680_vm2, %v5760_v0  ;;  %v5649_v49 = vld [vmem:[%s7876_s30 + $0x10] ss:$0 sps:$4 sm:$0x33]   ;;  %v5650_v54 = vld [vmem:[%s7876_s30 + $0x8] sm:$0xff]   ;;  %v1167_v59 = vpack.c.bf16 %v1137_v53, %v1136_v48 }
  0x4a   : > { %2136 = vst.msk [vmem:[#allocation3 + $0x108] sm:$0xff] %vm1680_vm2, %v5760_v0  ;;  %2137 = vst.msk [vmem:[#allocation3 + $0x110] sm:$0xff] %vm1680_vm2, %v5760_v0  ;;  %5593 = vmatprep.subr.msk.bf16.mxu0 %vm1905_vm4, %v5649_v49  ;;  %v1907_v56 = vsel %vm1905_vm4, %v5649_v49, 0  ;;  %v5651_v57 = vld [vmem:[%s7876_s30] sm:$0xff]   ;;  %v900_v61 = vld [vmem:[#allocation2 + $0x68] sm:$0xff]  ;;  %s7882_s30 = smov 24  }
  0x4b   : > { %2139 = vst.msk [vmem:[#allocation3 + $0x120] sm:$0xff] %vm1680_vm2, %v5760_v0  ;;  %2140 = vst.msk [vmem:[#allocation3 + $0x128] sm:$0xff] %vm1680_vm2, %v5760_v0  ;;  %1344 = vrot.lane.b32.xlu1 %v6183_v39, %s7828_s25  ;;  %5488 = vmatpush3.bf16.msra.mxu0 %v1907_v56  ;;  %v899_v60 = vld [vmem:[#allocation2 + $0x60] sm:$0xff]  ;;  %v948_v2 = vld [vmem:[#allocation2 + $0x69] sm:$0xff]  ;;  %vm4771_vm4 = vcmask 1040384  }
  0x4c   : > { %2142 = vst.msk [vmem:[#allocation3 + $0x138] sm:$0xff] %vm1680_vm2, %v5760_v0  ;;  %2143 = vst.msk [vmem:[#allocation3 + $0x140] sm:$0xff] %vm1680_vm2, %v5760_v0  ;;  %1342 = vrot.lane.b32.xlu0 %v830_v32, %s7828_s25  ;;  %5489 = vmatprep.subr.bf16.mxu0 %v5650_v54  ;;  %v947_v1 = vld [vmem:[#allocation2 + $0x61] sm:$0xff]  ;;  %s7878_s25 = smov 8   ;;  %v6252_v3 = vpack.c.bf16 %v900_v61, %v899_v60  ;;  %v996_v5 = vld [vmem:[#allocation2 + $0x6a] sm:$0xff] }
  0x4d   : > { %2145 = vst.msk [vmem:[#allocation3 + $0x150] sm:$0xff] %vm1680_vm2, %v5760_v0  ;;  %2146 = vst.msk [vmem:[#allocation3 + $0x158] sm:$0xff] %vm1680_vm2, %v5760_v0  ;;  %v995_v4 = vld [vmem:[#allocation2 + $0x62] sm:$0xff]  ;;  %v976_v6 = vpack.c.bf16 %v948_v2, %v947_v1  ;;  %v1044_v8 = vld [vmem:[#allocation2 + $0x78] sm:$0xff] }
  0x4e   : > { %2148 = vst.msk [vmem:[#allocation3 + $0x168] sm:$0xff] %vm1680_vm2, %v5760_v0  ;;  %2149 = vst.msk [vmem:[#allocation3 + $0x170] sm:$0xff] %vm1680_vm2, %v5760_v0  ;;  %v1045_v9 = vld [vmem:[#allocation2 + $0x80] sm:$0xff]  ;;  %v1024_v11 = vpack.c.bf16 %v996_v5, %v995_v4  ;;  %v999_v27 = vld [vmem:[#allocation2 + $0x92] sm:$0xff] }
  0x4f   : > { %2151 = vst.msk [vmem:[#allocation3 + $0x180] sm:$0xff] %vm1680_vm2, %v5760_v0  ;;  %2152 = vst.msk [vmem:[#allocation3 + $0x188] sm:$0xff] %vm1680_vm2, %v5760_v0  ;;  %1392 = vrot.lane.b32.xlu1 %v6189_v42, %s7836_s26  ;;  %5490 = vmatpush3.bf16.msra.mxu0 %v5650_v54  ;;  %v1092_v12 = vld [vmem:[#allocation2 + $0x79] sm:$0xff]  ;;  %v1093_v13 = vld [vmem:[#allocation2 + $0x81] sm:$0xff]  ;;  %v6267_v14 = vpack.c.bf16 %v1045_v9, %v1044_v8 }
  0x50   : > { %2154 = vst.msk [vmem:[#allocation3 + $0x198] sm:$0xff] %vm1680_vm2, %v5760_v0  ;;  %2155 = vst.msk [vmem:[#allocation3 + $0x1a0] sm:$0xff] %vm1680_vm2, %v5760_v0  ;;  %1390 = vrot.lane.b32.xlu0 %v878_v28, %s7836_s26  ;;  %5491 = vmatprep.subr.bf16.mxu0 %v5651_v57  ;;  %s7838_s26 = smov 32   ;;  %v1140_v15 = vld [vmem:[#allocation2 + $0x7a] sm:$0xff]  ;;  %v1121_v16 = vpack.c.bf16 %v1093_v13, %v1092_v12  ;;  %v1141_v17 = vld [vmem:[#allocation2 + $0x82] sm:$0xff] }
  0x51   : > { %3643 = vst.msk [vmem:[#allocation4] sm:$0xff] %vm1680_vm2, %v5760_v0  ;;  %3645 = vst.msk [vmem:[#allocation4 + $0x10] sm:$0xff] %vm1680_vm2, %v5760_v0  ;;  %v1169_v18 = vpack.c.bf16 %v1141_v17, %v1140_v15  ;;  %v952_v25 = vld [vmem:[#allocation2 + $0x99] sm:$0xff]  ;;  %v657_v30 = vld [vmem:[%s6043_s27 + $0xe8] sm:$0xff] }
  0x52   : > { %3647 = vst.msk [vmem:[#allocation4 + $0x20] sm:$0xff] %vm1680_vm2, %v5760_v0  ;;  %3649 = vst.msk [vmem:[#allocation4 + $0x30] sm:$0xff] %vm1680_vm2, %v5760_v0  ;;  %v1000_v28 = vld [vmem:[#allocation2 + $0x9a] sm:$0xff]  ;;  %v658_v43 = vld [vmem:[%s6043_s27 + $0xf0] sm:$0xff] }
  0x53   : > { %3651 = vst.msk [vmem:[#allocation4 + $0x40] sm:$0xff] %vm1680_vm2, %v5760_v0  ;;  %3653 = vst.msk [vmem:[#allocation4 + $0x50] sm:$0xff] %vm1680_vm2, %v5760_v0  ;;  %1440 = vrot.lane.b32.xlu1 %v6214_v45, %s7842_s0  ;;  %5492 = vmatpush3.bf16.msra.mxu0 %v5651_v57  ;;  %v656_v29 = vld [vmem:[%s6043_s27 + $0xe0] sm:$0xff]  ;;  %v1026_v31 = vpack.c.bf16 %v1000_v28, %v999_v27  ;;  %v659_v44 = vld [vmem:[%s6043_s27 + $0xf8] sm:$0xff] }
  0x54   : > { %3655 = vst.msk [vmem:[#allocation4 + $0x60] sm:$0xff] %vm1680_vm2, %v5760_v0  ;;  %3657 = vst.msk [vmem:[#allocation4 + $0x70] sm:$0xff] %vm1680_vm2, %v5760_v0  ;;  %1438 = vrot.lane.b32.xlu0 %v6176_v35, %s7842_s0  ;;  %s7881_s0 = smov 20  }
  0x55   : > { %3659 = vst.msk [vmem:[#allocation4 + $0x80] sm:$0xff] %vm1680_vm2, %v5760_v0  ;;  %3661 = vst.msk [vmem:[#allocation4 + $0x90] sm:$0xff] %vm1680_vm2, %v5760_v0 }
  0x56   : > { %729 = vst.msk [vmem:[#allocation2 + $0xa9] sm:$0xff] %vm660_vm0, %v640_v19  ;;  %730 = vst.msk [vmem:[#allocation2 + $0xb1] sm:$0xff] %vm660_vm0, %v641_v20  ;;  %v654_v19 = vld [vmem:[%s6043_s27 + $0xd0] sm:$0xff]  ;;  %v655_v20 = vld [vmem:[%s6043_s27 + $0xd8] sm:$0xff]  ;;  %s7856_s27 = smov 48  }
  0x57   : > { %731 = vst.msk [vmem:[#allocation2 + $0xc1] sm:$0xff] %vm660_vm0, %v642_v21  ;;  %732 = vst.msk [vmem:[#allocation2 + $0xc9] sm:$0xff] %vm660_vm0, %v643_v22  ;;  %1488 = vrot.lane.b32.xlu1 %v1119_v52, %s7840_s28  ;;  %v903_v21 = vld [vmem:[#allocation2 + $0x90] sm:$0xff]  ;;  %v904_v22 = vld [vmem:[#allocation2 + $0x98] sm:$0xff] }
  0x58   : > { %733 = vst.msk [vmem:[#allocation2 + $0xd9] sm:$0xff] %vm660_vm0, %v644_v23  ;;  %734 = vst.msk [vmem:[#allocation2 + $0xe1] sm:$0xff] %vm660_vm0, %v645_v24  ;;  %1486 = vrot.lane.b32.xlu0 %v6183_v39, %s7840_s28  ;;  %s7880_s28 = smov 16   ;;  %v930_v23 = vpack.c.bf16 %v904_v22, %v903_v21  ;;  %v951_v24 = vld [vmem:[#allocation2 + $0x91] sm:$0xff] }
  0x59   : > { %4093 = vst.msk [vmem:[#allocation5] sm:$0xff] %vm1812_vm3, %v5760_v0  ;;  %4096 = vst.msk [vmem:[#allocation5 + $0x10] sm:$0xff] %vm1812_vm3, %v5760_v0  ;;  %v978_v26 = vpack.c.bf16 %v952_v25, %v951_v24 }
  0x5a   : > { %4098 = vst.msk [vmem:[#allocation5 + $0x20] sm:$0xff] %vm1812_vm3, %v5760_v0  ;;  %4100 = vst.msk [vmem:[#allocation5 + $0x30] sm:$0xff] %vm1812_vm3, %v5760_v0 }
  0x5b   : > { %4102 = vst.msk [vmem:[#allocation5 + $0x40] sm:$0xff] %vm1812_vm3, %v5760_v0  ;;  %4104 = vst.msk [vmem:[#allocation5 + $0x50] sm:$0xff] %vm1812_vm3, %v5760_v0  ;;  %1536 = vrot.lane.b32.xlu1 %v1167_v59, %s7838_s26 }
  0x5c   : > { %4106 = vst.msk [vmem:[#allocation5 + $0x60] sm:$0xff] %vm1812_vm3, %v5760_v0  ;;  %4108 = vst.msk [vmem:[#allocation5 + $0x70] sm:$0xff] %vm1812_vm3, %v5760_v0  ;;  %1534 = vrot.lane.b32.xlu0 %v6189_v42, %s7838_s26  ;;  %s7879_s26 = smov 12  }
  0x5d   : > { %4110 = vst.msk [vmem:[#allocation5 + $0x80] sm:$0xff] %vm1812_vm3, %v5760_v0  ;;  %4112 = vst.msk [vmem:[#allocation5 + $0x90] sm:$0xff] %vm1812_vm3, %v5760_v0  ;;  %v1048_v32 = vld [vmem:[#allocation2 + $0xa8] sm:$0xff]  ;;  %v1049_v33 = vld [vmem:[#allocation2 + $0xb0] sm:$0xff] }
  0x5e   : > { %735 = vst.msk [vmem:[#allocation2 + $0xf1] sm:$0xff] %vm660_vm0, %v646_v50  ;;  %736 = vst.msk [vmem:[#allocation2 + $0xf9] sm:$0xff] %vm660_vm0, %v647_v51  ;;  %v6296_v34 = vpack.c.bf16 %v1049_v33, %v1048_v32  ;;  %v1096_v37 = vld [vmem:[#allocation2 + $0xa9] sm:$0xff]  ;;  %v1097_v38 = vld [vmem:[#allocation2 + $0xb1] sm:$0xff] }
  0x5f   : > { %737 = vst.msk [vmem:[#allocation2 + $0x109] sm:$0xff] %vm660_vm0, %v648_v55  ;;  %738 = vst.msk [vmem:[#allocation2 + $0x111] sm:$0xff] %vm660_vm0, %v649_v58  ;;  %1204 = vrot.lane.b32.xlu1 %v1119_v52, %s7877_s21  ;;  %v1144_v40 = vld [vmem:[#allocation2 + $0xaa] sm:$0xff]  ;;  %v1145_v41 = vld [vmem:[#allocation2 + $0xb2] sm:$0xff] }
  0x60   : > { %739 = vst.msk [vmem:[#allocation2 + $0x121] sm:$0xff] %vm660_vm0, %v650_v62  ;;  %740 = vst.msk [vmem:[#allocation2 + $0x129] sm:$0xff] %vm660_vm0, %v651_v63  ;;  %1202 = vrot.lane.b32.xlu0 %v6183_v39, %s7877_s21  ;;  %v1123_v39 = vpack.c.bf16 %v1097_v38, %v1096_v37  ;;  %v907_v46 = vld [vmem:[#allocation2 + $0xc0] sm:$0xff]  ;;  %v908_v47 = vld [vmem:[#allocation2 + $0xc8] sm:$0xff] }
  0x61   : > { %741 = vst.msk [vmem:[#allocation2 + $0x139] sm:$0xff] %vm660_vm0, %v652_v7  ;;  %742 = vst.msk [vmem:[#allocation2 + $0x141] sm:$0xff] %vm660_vm0, %v653_v10  ;;  %v932_v48 = vpack.c.bf16 %v908_v47, %v907_v46  ;;  %v955_v49 = vld [vmem:[#allocation2 + $0xc1] sm:$0xff]  ;;  %v956_v50 = vld [vmem:[#allocation2 + $0xc9] sm:$0xff] }
  0x62   : > { %743 = vst.msk [vmem:[#allocation2 + $0x151] sm:$0xff] %vm660_vm0, %v654_v19  ;;  %744 = vst.msk [vmem:[#allocation2 + $0x159] sm:$0xff] %vm660_vm0, %v655_v20  ;;  %v980_v51 = vpack.c.bf16 %v956_v50, %v955_v49  ;;  %v1004_v53 = vld [vmem:[#allocation2 + $0xca] sm:$0xff]  ;;  %v1052_v55 = vld [vmem:[#allocation2 + $0xd8] sm:$0xff] }
  0x63   : > { %1252 = vrot.lane.b32.xlu1 %v1167_v59, %s7878_s25  ;;  %745 = vst.msk [vmem:[#allocation2 + $0x169] sm:$0xff] %vm660_vm0, %v656_v29  ;;  %746 = vst.msk [vmem:[#allocation2 + $0x171] sm:$0xff] %vm660_vm0, %v657_v30  ;;  %v1053_v56 = vld [vmem:[#allocation2 + $0xe0] sm:$0xff]  ;;  %v750_v10 = vld [vmem:[#allocation2 + $0x8] sm:$0xff] }
  0x64   : > { %1250 = vrot.lane.b32.xlu0 %v6189_v42, %s7878_s25  ;;  %v1171_v42 = vpack.c.bf16 %v1145_v41, %v1144_v40  ;;  %747 = vst.msk [vmem:[#allocation2 + $0x181] sm:$0xff] %vm660_vm0, %v658_v43  ;;  %748 = vst.msk [vmem:[#allocation2 + $0x189] sm:$0xff] %vm660_vm0, %v659_v44  ;;  %v1077_v58 = vpack.c.bf16 %v1053_v56, %v1052_v55  ;;  %v1100_v60 = vld [vmem:[#allocation2 + $0xd9] sm:$0xff]  ;;  %v1101_v61 = vld [vmem:[#allocation2 + $0xe1] sm:$0xff] }
  0x65   : > { %v1125_v62 = vpack.c.bf16 %v1101_v61, %v1100_v60  ;;  %v1148_v63 = vld [vmem:[#allocation2 + $0xda] sm:$0xff]  ;;  %v1149_v1 = vld [vmem:[#allocation2 + $0xe2] sm:$0xff]  ;;  %v911_v12 = vld [vmem:[#allocation2 + $0xf0] sm:$0xff]  ;;  %2111 = vst.msk [vmem:[#allocation3 + $0x40] sm:$0x3] %vm2104_vm11, %v5760_v0 }
  0x66   : > { %v1173_v5 = vpack.c.bf16 %v1149_v1, %v1148_v63  ;;  %v912_v13 = vld [vmem:[#allocation2 + $0xf8] sm:$0xff]  ;;  %v1057_v43 = vld [vmem:[#allocation2 + $0x110] sm:$0xff]  ;;  %2105 = vst.msk [vmem:[#allocation3 + $0x10] sm:$0x3] %vm2104_vm11, %v5760_v0  ;;  %2108 = vst.msk [vmem:[#allocation3 + $0x28] sm:$0x3] %vm2104_vm11, %v5760_v0 }
  0x67   : > { %1300 = vrot.lane.b32.xlu1 %v6252_v3, %s7879_s26  ;;  %v959_v19 = vld [vmem:[#allocation2 + $0xf1] sm:$0xff]  ;;  %v960_v20 = vld [vmem:[#allocation2 + $0xf9] sm:$0xff]  ;;  %2114 = vst.msk [vmem:[#allocation3 + $0x58] sm:$0x3] %vm2104_vm11, %v5760_v0  ;;  %2117 = vst.msk [vmem:[#allocation3 + $0x70] sm:$0x3] %vm2104_vm11, %v5760_v0 }
  0x68   : > { %1298 = vrot.lane.b32.xlu0 %v6214_v45, %s7879_s26  ;;  %v982_v25 = vpack.c.bf16 %v960_v20, %v959_v19  ;;  %v1007_v27 = vld [vmem:[#allocation2 + $0xf2] sm:$0xff]  ;;  %v1008_v28 = vld [vmem:[#allocation2 + $0xfa] sm:$0xff]  ;;  %v1011_v20 = vld [vmem:[#allocation2 + $0x122] sm:$0xff]  ;;  %2120 = vst.msk [vmem:[#allocation3 + $0x88] sm:$0x3] %vm2104_vm11, %v5760_v0 }
  0x69   : > { %2123 = vst.msk [vmem:[#allocation3 + $0xa0] sm:$0x3] %vm2104_vm11, %v5760_v0  ;;  %2126 = vst.msk [vmem:[#allocation3 + $0xb8] sm:$0x3] %vm2104_vm11, %v5760_v0 }
  0x6a   : > { %2129 = vst.msk [vmem:[#allocation3 + $0xd0] sm:$0x3] %vm2104_vm11, %v5760_v0  ;;  %2132 = vst.msk [vmem:[#allocation3 + $0xe8] sm:$0x3] %vm2104_vm11, %v5760_v0 }
  0x6b   : > { %1348 = vrot.lane.b32.xlu1 %v976_v6, %s7880_s28  ;;  %2135 = vst.msk [vmem:[#allocation3 + $0x100] sm:$0x3] %vm2104_vm11, %v5760_v0  ;;  %2138 = vst.msk [vmem:[#allocation3 + $0x118] sm:$0x3] %vm2104_vm11, %v5760_v0 }
  0x6c   : > { %1346 = vrot.lane.b32.xlu0 %v1119_v52, %s7880_s28  ;;  %v1003_v52 = vld [vmem:[#allocation2 + $0xc2] sm:$0xff]  ;;  %2141 = vst.msk [vmem:[#allocation3 + $0x130] sm:$0x3] %vm2104_vm11, %v5760_v0  ;;  %2144 = vst.msk [vmem:[#allocation3 + $0x148] sm:$0x3] %vm2104_vm11, %v5760_v0 }
  0x6d   : > { %v1028_v54 = vpack.c.bf16 %v1004_v53, %v1003_v52  ;;  %v1104_v53 = vld [vmem:[#allocation2 + $0x109] sm:$0xff]  ;;  %2147 = vst.msk [vmem:[#allocation3 + $0x160] sm:$0x3] %vm2104_vm11, %v5760_v0  ;;  %2150 = vst.msk [vmem:[#allocation3 + $0x178] sm:$0x3] %vm2104_vm11, %v5760_v0 }
  0x6e   : > { %2153 = vst.msk [vmem:[#allocation3 + $0x190] sm:$0x3] %vm2104_vm11, %v5760_v0  ;;  %2156 = vst.msk [vmem:[#allocation3 + $0x1a8] sm:$0x3] %vm2104_vm11, %v5760_v0 }
  0x6f   : > { %1396 = vrot.lane.b32.xlu1 %v1024_v11, %s7881_s0  ;;  %3644 = vst.msk [vmem:[#allocation4 + $0x8] sm:$0x3] %vm2104_vm11, %v5760_v0  ;;  %3646 = vst.msk [vmem:[#allocation4 + $0x18] sm:$0x3] %vm2104_vm11, %v5760_v0 }
  0x70   : > { %1394 = vrot.lane.b32.xlu0 %v1167_v59, %s7881_s0  ;;  %3648 = vst.msk [vmem:[#allocation4 + $0x28] sm:$0x3] %vm2104_vm11, %v5760_v0  ;;  %3650 = vst.msk [vmem:[#allocation4 + $0x38] sm:$0x3] %vm2104_vm11, %v5760_v0 }
  0x71   : > { %3652 = vst.msk [vmem:[#allocation4 + $0x48] sm:$0x3] %vm2104_vm11, %v5760_v0  ;;  %3654 = vst.msk [vmem:[#allocation4 + $0x58] sm:$0x3] %vm2104_vm11, %v5760_v0 }
  0x72   : > { %3656 = vst.msk [vmem:[#allocation4 + $0x68] sm:$0x3] %vm2104_vm11, %v5760_v0  ;;  %3658 = vst.msk [vmem:[#allocation4 + $0x78] sm:$0x3] %vm2104_vm11, %v5760_v0 }
  0x73   : > { %1444 = vrot.lane.b32.xlu1 %v6267_v14, %s7882_s30  ;;  %3660 = vst.msk [vmem:[#allocation4 + $0x88] sm:$0x3] %vm2104_vm11, %v5760_v0  ;;  %3662 = vst.msk [vmem:[#allocation4 + $0x98] sm:$0x3] %vm2104_vm11, %v5760_v0 }
  0x74   : > { %1442 = vrot.lane.b32.xlu0 %v6252_v3, %s7882_s30  ;;  %4097 = vst.msk [vmem:[#allocation5 + $0x18] sm:$0x3] %vm4094_vm1, %v5760_v0  ;;  %4095 = vst.msk [vmem:[#allocation5 + $0x8] sm:$0x3] %vm4094_vm1, %v5760_v0 }
  0x75   : > { %4099 = vst.msk [vmem:[#allocation5 + $0x28] sm:$0x3] %vm4094_vm1, %v5760_v0  ;;  %4101 = vst.msk [vmem:[#allocation5 + $0x38] sm:$0x3] %vm4094_vm1, %v5760_v0 }
  0x76   : > { %4103 = vst.msk [vmem:[#allocation5 + $0x48] sm:$0x3] %vm4094_vm1, %v5760_v0  ;;  %4105 = vst.msk [vmem:[#allocation5 + $0x58] sm:$0x3] %vm4094_vm1, %v5760_v0 }
  0x77   : > { %1492 = vrot.lane.b32.xlu1 %v1121_v16, %s7883_s23  ;;  %4107 = vst.msk [vmem:[#allocation5 + $0x68] sm:$0x3] %vm4094_vm1, %v5760_v0  ;;  %4109 = vst.msk [vmem:[#allocation5 + $0x78] sm:$0x3] %vm4094_vm1, %v5760_v0 }
  0x78   : > { %1490 = vrot.lane.b32.xlu0 %v976_v6, %s7883_s23  ;;  %4111 = vst.msk [vmem:[#allocation5 + $0x88] sm:$0x3] %vm4094_vm1, %v5760_v0  ;;  %4113 = vst.msk [vmem:[#allocation5 + $0x98] sm:$0x3] %vm4094_vm1, %v5760_v0 }
  0x7b   : > { %1540 = vrot.lane.b32.xlu1 %v1169_v18, %s7884_s3 }
  0x7c   : > { %1538 = vrot.lane.b32.xlu0 %v1024_v11, %s7884_s3 }
  0x7f   : > { %1208 = vrot.lane.b32.xlu1 %v1121_v16, %s7877_s21 }
  0x80   : > { %1206 = vrot.lane.b32.xlu0 %v976_v6, %s7877_s21 }
  0x83   : > { %1256 = vrot.lane.b32.xlu1 %v1169_v18, %s7878_s25 }
  0x84   : > { %1254 = vrot.lane.b32.xlu0 %v1024_v11, %s7878_s25  ;;  %v749_v11 = vld [vmem:[#allocation2] sm:$0xff] }
  0x87   : > { %1304 = vrot.lane.b32.xlu1 %v930_v23, %s7879_s26 }
  0x88   : > { %1302 = vrot.lane.b32.xlu0 %v6267_v14, %s7879_s26 }
  0x8b   : > { %1352 = vrot.lane.b32.xlu1 %v978_v26, %s7880_s28 }
  0x8c   : > { %1350 = vrot.lane.b32.xlu0 %v1121_v16, %s7880_s28  ;;  %v781_v16 = vpack.c.bf16 %v750_v10, %v749_v11  ;;  %v963_v10 = vld [vmem:[#allocation2 + $0x121] sm:$0xff]  ;;  %v964_v11 = vld [vmem:[#allocation2 + $0x129] sm:$0xff] }
  0x8f   : > { %1400 = vrot.lane.b32.xlu1 %v1026_v31, %s7881_s0 }
  0x90   : > { %1398 = vrot.lane.b32.xlu0 %v1169_v18, %s7881_s0  ;;  %v6330_v18 = vpack.c.bf16 %v912_v13, %v911_v12 }
  0x93   : > { %1448 = vrot.lane.b32.xlu1 %v6296_v34, %s7882_s30 }
  0x94   : > { %1446 = vrot.lane.b32.xlu0 %v930_v23, %s7882_s30 }
  0x97   : > { %1496 = vrot.lane.b32.xlu1 %v1123_v39, %s7883_s23 }
  0x98   : > { %1494 = vrot.lane.b32.xlu0 %v978_v26, %s7883_s23 }
  0x9b   : > { %1544 = vrot.lane.b32.xlu1 %v1171_v42, %s7884_s3  ;;  %v1247_v57 = vpop.permute.xlu1 %1246 }
  0x9c   : > { %1542 = vrot.lane.b32.xlu0 %v1026_v31, %s7884_s3  ;;  %v1199_v59 = vpop.permute.xlu0 %1198 }
  0x9d   : > { %v1568_v23 = vsel %vm660_vm0, %v781_v16, %v1199_v59  ;;  %v1153_v59 = vld [vmem:[#allocation2 + $0x112] sm:$0xff]  ;;  %v984_v16 = vpack.c.bf16 %v964_v11, %v963_v10 }
  0x9e   : > { %v1015_v11 = vld [vmem:[#allocation2 + $0x152] sm:$0xff] }
  0x9f   : > { %1212 = vrot.lane.b32.xlu1 %v1123_v39, %s7877_s21 }
  0xa0   : > { %1210 = vrot.lane.b32.xlu0 %v978_v26, %s7877_s21 }
  0xa3   : > { %1260 = vrot.lane.b32.xlu1 %v1171_v42, %s7878_s25 }
  0xa4   : > { %1258 = vrot.lane.b32.xlu0 %v1026_v31, %s7878_s25 }
  0xa7   : > { %1308 = vrot.lane.b32.xlu1 %v932_v48, %s7879_s26 }
  0xa8   : > { %1306 = vrot.lane.b32.xlu0 %v6296_v34, %s7879_s26 }
  0xab   : > { %1356 = vrot.lane.b32.xlu1 %v980_v51, %s7880_s28 }
  0xac   : > { %1354 = vrot.lane.b32.xlu0 %v1123_v39, %s7880_s28  ;;  %v1030_v39 = vpack.c.bf16 %v1008_v28, %v1007_v27 }
  0xaf   : > { %1404 = vrot.lane.b32.xlu1 %v1028_v54, %s7881_s0 }
  0xb0   : > { %1402 = vrot.lane.b32.xlu0 %v1171_v42, %s7881_s0  ;;  %v1056_v42 = vld [vmem:[#allocation2 + $0x108] sm:$0xff] }
  0xb1   : > { %v6356_v52 = vpack.c.bf16 %v1057_v43, %v1056_v42  ;;  %v1108_v43 = vld [vmem:[#allocation2 + $0x139] sm:$0xff] }
  0xb3   : > { %1452 = vrot.lane.b32.xlu1 %v1077_v58, %s7882_s30 }
  0xb4   : > { %1450 = vrot.lane.b32.xlu0 %v932_v48, %s7882_s30 }
  0xb5   : > { %v1249_v2 = vpop.permute.xlu1 %1248 }
  0xb6   : > { %v1201_v4 = vpop.permute.xlu0 %1200 }
  0xb7   : > { %1500 = vrot.lane.b32.xlu1 %v1125_v62, %s7883_s23  ;;  %v1571_v21 = vsel %vm660_vm0, %v6179_v36, %v1201_v4  ;;  %v1616_v36 = vsel %vm1614_vm5, %v1568_v23, %v1247_v57 }
  0xb8   : > { %1498 = vrot.lane.b32.xlu0 %v980_v51, %s7883_s23  ;;  %v1618_v26 = vsel %vm1614_vm5, %v1571_v21, %v1249_v2  ;;  %v1012_v21 = vld [vmem:[#allocation2 + $0x12a] sm:$0xff] }
  0xb9   : > { %v1297_v6 = vpop.permute.xlu1 %1296  ;;  %v1032_v28 = vpack.c.bf16 %v1012_v21, %v1011_v20 }
  0xba   : > { %v1295_v7 = vpop.permute.xlu0 %1294  ;;  %v1651_v29 = vsel %vm1647_vm6, %v1618_v26, %v1297_v6  ;;  %v916_v6 = vld [vmem:[#allocation2 + $0x128] sm:$0xff] }
  0xbb   : > { %1548 = vrot.lane.b32.xlu1 %v1173_v5, %s7884_s3  ;;  %v1649_v31 = vsel %vm1647_vm6, %v1616_v36, %v1295_v7 }
  0xbc   : > { %1546 = vrot.lane.b32.xlu0 %v1028_v54, %s7884_s3 }
  0xbd   : > { %v1345_v8 = vpop.permute.xlu1 %1344 }
  0xbe   : > { %v1343_v9 = vpop.permute.xlu0 %1342  ;;  %v1684_v32 = vsel %vm1680_vm2, %v1651_v29, %v1345_v8 }
  0xbf   : > { %1216 = vrot.lane.b32.xlu1 %v1125_v62, %s7877_s21  ;;  %v1682_v37 = vsel %vm1680_vm2, %v1649_v31, %v1343_v9  ;;  %v1061_v31 = vld [vmem:[#allocation2 + $0x140] sm:$0xff] }
  0xc0   : > { %1214 = vrot.lane.b32.xlu0 %v980_v51, %s7877_s21 }
  0xc1   : > { %v1393_v15 = vpop.permute.xlu1 %1392 }
  0xc2   : > { %v1391_v17 = vpop.permute.xlu0 %1390  ;;  %v1717_v38 = vsel %vm1713_vm7, %v1684_v32, %v1393_v15 }
  0xc3   : > { %1264 = vrot.lane.b32.xlu1 %v1173_v5, %s7878_s25  ;;  %v1715_v40 = vsel %vm1713_vm7, %v1682_v37, %v1391_v17 }
  0xc4   : > { %1262 = vrot.lane.b32.xlu0 %v1028_v54, %s7878_s25  ;;  %v1105_v54 = vld [vmem:[#allocation2 + $0x111] sm:$0xff] }
  0xc5   : > { %v1441_v22 = vpop.permute.xlu1 %1440  ;;  %v1127_v57 = vpack.c.bf16 %v1105_v54, %v1104_v53 }
  0xc6   : > { %v1439_v24 = vpop.permute.xlu0 %1438  ;;  %v1750_v41 = vsel %vm1746_vm8, %v1717_v38, %v1441_v22 }
  0xc7   : > { %1312 = vrot.lane.b32.xlu1 %v6330_v18, %s7879_s26  ;;  %v1748_v44 = vsel %vm1746_vm8, %v1715_v40, %v1439_v24 }
  0xc8   : > { %1310 = vrot.lane.b32.xlu0 %v1077_v58, %s7879_s26  ;;  %v1152_v58 = vld [vmem:[#allocation2 + $0x10a] sm:$0xff] }
  0xc9   : > { %v1489_v30 = vpop.permute.xlu1 %1488 }
  0xca   : > { %v1487_v33 = vpop.permute.xlu0 %1486  ;;  %v1783_v46 = vsel %vm1779_vm9, %v1750_v41, %v1489_v30  ;;  %v1060_v30 = vld [vmem:[#allocation2 + $0x138] sm:$0xff] }
  0xcb   : > { %1360 = vrot.lane.b32.xlu1 %v982_v25, %s7880_s28  ;;  %v1781_v48 = vsel %vm1779_vm9, %v1748_v44, %v1487_v33  ;;  %v6400_v42 = vpack.c.bf16 %v1061_v31, %v1060_v30  ;;  %v1109_v44 = vld [vmem:[#allocation2 + $0x141] sm:$0xff]  ;;  %v1112_v31 = vld [vmem:[#allocation2 + $0x169] sm:$0xff] }
  0xcc   : > { %1358 = vrot.lane.b32.xlu0 %v1125_v62, %s7880_s28  ;;  %v1175_v62 = vpack.c.bf16 %v1153_v59, %v1152_v58  ;;  %v919_v59 = vld [vmem:[#allocation2 + $0x150] sm:$0xff] }
  0xcd   : > { %v1537_v47 = vpop.permute.xlu1 %1536 }
  0xce   : > { %v1816_v49 = vsel %vm1812_vm3, %v1783_v46, %v1537_v47  ;;  %v1535_v50 = vpop.permute.xlu0 %1534 }
  0xcf   : > { %1408 = vrot.lane.b32.xlu1 %v1030_v39, %s7881_s0  ;;  %v1814_v51 = vsel %vm1812_vm3, %v1781_v48, %v1535_v50  ;;  %v1129_v48 = vpack.c.bf16 %v1109_v44, %v1108_v43  ;;  %v1157_v50 = vld [vmem:[#allocation2 + $0x142] sm:$0xff] }
  0xd0   : > { %1406 = vrot.lane.b32.xlu0 %v1173_v5, %s7881_s0  ;;  %5493 = vmatprep.mubr.msk.bf16.mxu0 %vm1872_vm10, %v1814_v51  ;;  %v915_v5 = vld [vmem:[#allocation2 + $0x120] sm:$0xff] }
  0xd1   : > { %5494 = vmatmul.mubr.msk.bf16.vlgmr.msra.gmra.mxu0 %vm1872_vm10, %v1816_v49  ;;  %v1205_v55 = vpop.permute.xlu1 %1204  ;;  %v6372_v9 = vpack.c.bf16 %v916_v6, %v915_v5  ;;  %v1156_v49 = vld [vmem:[#allocation2 + $0x13a] sm:$0xff] }
  0xd2   : > { %v1203_v56 = vpop.permute.xlu0 %1202  ;;  %v1577_v15 = vsel %vm660_vm0, %v6214_v45, %v1205_v55  ;;  %v1177_v54 = vpack.c.bf16 %v1157_v50, %v1156_v49  ;;  %v923_v50 = vld [vmem:[#allocation2 + $0x180] sm:$0xff] }
  0xd3   : > { %1456 = vrot.lane.b32.xlu1 %v6356_v52, %s7882_s30  ;;  %v1574_v17 = vsel %vm660_vm0, %v6176_v35, %v1203_v56 }
  0xd4   : > { %1454 = vrot.lane.b32.xlu0 %v6330_v18, %s7882_s30 }
  0xd5   : > { %v1253_v60 = vpop.permute.xlu1 %1252 }
  0xd6   : > { %v1251_v61 = vpop.permute.xlu0 %1250  ;;  %v1622_v19 = vsel %vm1614_vm5, %v1577_v15, %v1253_v60  ;;  %v920_v60 = vld [vmem:[#allocation2 + $0x158] sm:$0xff] }
  0xd7   : > { %1504 = vrot.lane.b32.xlu1 %v1127_v57, %s7883_s23  ;;  %v1620_v22 = vsel %vm1614_vm5, %v1574_v17, %v1251_v61 }
  0xd8   : > { %1502 = vrot.lane.b32.xlu0 %v982_v25, %s7883_s23 }
  0xd9   : > { %v1301_v63 = vpop.permute.xlu1 %1300 }
  0xda   : > { %v1299_v1 = vpop.permute.xlu0 %1298  ;;  %v1655_v23 = vsel %vm1647_vm6, %v1622_v19, %v1301_v63  ;;  %v6416_v63 = vpack.c.bf16 %v920_v60, %v919_v59  ;;  %v971_v59 = vld [vmem:[#allocation2 + $0x181] sm:$0xff]  ;;  %v972_v60 = vld [vmem:[#allocation2 + $0x189] sm:$0xff] }
  0xdb   : > { %1552 = vrot.lane.b32.xlu1 %v1175_v62, %s7884_s3  ;;  %v1653_v45 = vsel %vm1647_vm6, %v1620_v22, %v1299_v1  ;;  %v967_v1 = vld [vmem:[#allocation2 + $0x151] sm:$0xff] }
  0xdc   : > { %1550 = vrot.lane.b32.xlu0 %v1030_v39, %s7884_s3 }
  0xdd   : > { %v1349_v2 = vpop.permute.xlu1 %1348 }
  0xde   : > { %v1347_v4 = vpop.permute.xlu0 %1346 }
  0xdf   : > { %1220 = vrot.lane.b32.xlu1 %v1127_v57, %s7877_s21  ;;  %v1686_v27 = vsel %vm1680_vm2, %v1653_v45, %v1347_v4  ;;  %v1065_v45 = vld [vmem:[#allocation2 + $0x170] sm:$0xff] }
  0xe0   : > { %1218 = vrot.lane.b32.xlu0 %v982_v25, %s7877_s21  ;;  %v1688_v25 = vsel %vm1680_vm2, %v1655_v23, %v1349_v2  ;;  %v968_v2 = vld [vmem:[#allocation2 + $0x159] sm:$0xff] }
  0xe1   : > { %v1397_v7 = vpop.permute.xlu1 %1396 }
  0xe2   : > { %v1395_v8 = vpop.permute.xlu0 %1394  ;;  %v1721_v35 = vsel %vm1713_vm7, %v1688_v25, %v1397_v7  ;;  %v6423_v7 = vpack.c.bf16 %v968_v2, %v967_v1  ;;  %v988_v2 = vpack.c.bf16 %v972_v60, %v971_v59 }
  0xe3   : > { %1268 = vrot.lane.b32.xlu1 %v1175_v62, %s7878_s25  ;;  %v1719_v29 = vsel %vm1713_vm7, %v1686_v27, %v1395_v8 }
  0xe4   : > { %1266 = vrot.lane.b32.xlu0 %v1030_v39, %s7878_s25 }
  0xe5   : > { %v1445_v12 = vpop.permute.xlu1 %1444 }
  0xe6   : > { %v1443_v13 = vpop.permute.xlu0 %1442  ;;  %v1754_v36 = vsel %vm1746_vm8, %v1721_v35, %v1445_v12  ;;  %v1016_v12 = vld [vmem:[#allocation2 + $0x15a] sm:$0xff] }
  0xe7   : > { %1316 = vrot.lane.b32.xlu1 %v6372_v9, %s7879_s26  ;;  %v1752_v32 = vsel %vm1746_vm8, %v1719_v29, %v1443_v13  ;;  %v6438_v21 = vpack.c.bf16 %v1016_v12, %v1015_v11 }
  0xe8   : > { %1314 = vrot.lane.b32.xlu0 %v6356_v52, %s7879_s26 }
  0xe9   : > { %v1493_v24 = vpop.permute.xlu1 %1492 }
  0xea   : > { %v1491_v26 = vpop.permute.xlu0 %1490  ;;  %v1787_v33 = vsel %vm1779_vm9, %v1754_v36, %v1493_v24  ;;  %v1064_v24 = vld [vmem:[#allocation2 + $0x168] sm:$0xff] }
  0xeb   : > { %1364 = vrot.lane.b32.xlu1 %v984_v16, %s7880_s28  ;;  %v1785_v38 = vsel %vm1779_vm9, %v1752_v32, %v1491_v26  ;;  %v6450_v30 = vpack.c.bf16 %v1065_v45, %v1064_v24  ;;  %v1113_v32 = vld [vmem:[#allocation2 + $0x171] sm:$0xff] }
  0xec   : > { %1362 = vrot.lane.b32.xlu0 %v1127_v57, %s7880_s28 }
  0xed   : > { %v1541_v37 = vpop.permute.xlu1 %1540 }
  0xee   : > { %v1820_v39 = vsel %vm1812_vm3, %v1787_v33, %v1541_v37  ;;  %v1539_v40 = vpop.permute.xlu0 %1538 }
  0xef   : > { %v1818_v41 = vsel %vm1812_vm3, %v1785_v38, %v1539_v40  ;;  %1412 = vrot.lane.b32.xlu1 %v1032_v28, %s7881_s0  ;;  %v6461_v38 = vpack.c.bf16 %v1113_v32, %v1112_v31  ;;  %v1161_v40 = vld [vmem:[#allocation2 + $0x172] sm:$0xff]  ;;  %v1164_v32 = vld [vmem:[#allocation2 + $0x19a] sm:$0xff] }
  0xf0   : > { %1410 = vrot.lane.b32.xlu0 %v1175_v62, %s7881_s0  ;;  %5497 = vmatprep.mubr.msk.bf16.mxu0 %vm1872_vm10, %v1818_v41 }
  0xf1   : > { %5498 = vmatmul.mubr.msk.bf16.gmra.mxu0 %vm1872_vm10, %v1820_v39  ;;  %v1209_v46 = vpop.permute.xlu1 %1208  ;;  %v1160_v39 = vld [vmem:[#allocation2 + $0x16a] sm:$0xff] }
  0xf2   : > { %v1207_v47 = vpop.permute.xlu0 %1206  ;;  %v1583_v6 = vsel %vm660_vm0, %v6267_v14, %v1209_v46  ;;  %v1179_v44 = vpack.c.bf16 %v1161_v40, %v1160_v39  ;;  %v2286_v40 = vld [vmem:[#allocation3 + $0x2] sm:$0xff] }
  0xf3   : > { %1460 = vrot.lane.b32.xlu1 %v6400_v42, %s7882_s30  ;;  %v1580_v8 = vsel %vm660_vm0, %v6252_v3, %v1207_v47 }
  0xf4   : > { %1458 = vrot.lane.b32.xlu0 %v6372_v9, %s7882_s30 }
  0xf5   : > { %v1257_v51 = vpop.permute.xlu1 %1256 }
  0xf6   : > { %v1255_v53 = vpop.permute.xlu0 %1254  ;;  %v1626_v10 = vsel %vm1614_vm5, %v1583_v6, %v1257_v51  ;;  %v924_v51 = vld [vmem:[#allocation2 + $0x188] sm:$0xff] }
  0xf7   : > { %1508 = vrot.lane.b32.xlu1 %v1129_v48, %s7883_s23  ;;  %v1624_v13 = vsel %vm1614_vm5, %v1580_v8, %v1255_v53  ;;  %v761_v53 = vld [vmem:[#allocation2 + $0x90] sm:$0xff]  ;;  %v1019_v6 = vld [vmem:[#allocation2 + $0x182] sm:$0xff] }
  0xf8   : > { %1506 = vrot.lane.b32.xlu0 %v984_v16, %s7883_s23 }
  0xf9   : > { %v1305_v55 = vpop.permute.xlu1 %1304 }
  0xfa   : > { %v1303_v56 = vpop.permute.xlu0 %1302  ;;  %v1659_v15 = vsel %vm1647_vm6, %v1626_v10, %v1305_v55 }
  0xfb   : > { %1556 = vrot.lane.b32.xlu1 %v1177_v54, %s7884_s3 }
  0xfc   : > { %1554 = vrot.lane.b32.xlu0 %v1032_v28, %s7884_s3 }
  0xfd   : > { %v1353_v57 = vpop.permute.xlu1 %1352 }
  0xfe   : > { %v1351_v58 = vpop.permute.xlu0 %1350  ;;  %v1692_v17 = vsel %vm1680_vm2, %v1659_v15, %v1353_v57  ;;  %v940_v57 = vpack.c.bf16 %v924_v51, %v923_v50 }
  0xff   : > { %1224 = vrot.lane.b32.xlu1 %v1129_v48, %s7877_s21 }
 0x100   : > { %1222 = vrot.lane.b32.xlu0 %v984_v16, %s7877_s21  ;;  %v1657_v16 = vsel %vm1647_vm6, %v1624_v13, %v1303_v56 }
 0x101   : > { %v1401_v61 = vpop.permute.xlu1 %1400  ;;  %v1690_v20 = vsel %vm1680_vm2, %v1657_v16, %v1351_v58 }
 0x102   : > { %v1399_v62 = vpop.permute.xlu0 %1398  ;;  %v1725_v3 = vsel %vm1713_vm7, %v1692_v17, %v1401_v61 }
 0x103   : > { %1272 = vrot.lane.b32.xlu1 %v1177_v54, %s7878_s25  ;;  %v1723_v22 = vsel %vm1713_vm7, %v1690_v20, %v1399_v62  ;;  %v1068_v20 = vld [vmem:[#allocation2 + $0x198] sm:$0xff] }
 0x104   : > { %1270 = vrot.lane.b32.xlu0 %v1032_v28, %s7878_s25 }
 0x105   : > { %v1449_v4 = vpop.permute.xlu1 %1448 }
 0x106   : > { %v1447_v5 = vpop.permute.xlu0 %1446  ;;  %v1758_v23 = vsel %vm1746_vm8, %v1725_v3, %v1449_v4  ;;  %v1069_v3 = vld [vmem:[#allocation2 + $0x1a0] sm:$0xff] }
 0x107   : > { %1320 = vrot.lane.b32.xlu1 %v6416_v63, %s7879_s26  ;;  %v1756_v25 = vsel %vm1746_vm8, %v1723_v22, %v1447_v5 }
 0x108   : > { %1318 = vrot.lane.b32.xlu0 %v6400_v42, %s7879_s26 }
 0x109   : > { %v1497_v14 = vpop.permute.xlu1 %1496 }
 0x10a   : > { %v1495_v19 = vpop.permute.xlu0 %1494  ;;  %v1791_v26 = vsel %vm1779_vm9, %v1758_v23, %v1497_v14 }
 0x10b   : > { %1368 = vrot.lane.b32.xlu1 %v6423_v7, %s7880_s28  ;;  %v1789_v35 = vsel %vm1779_vm9, %v1756_v25, %v1495_v19 }
 0x10c   : > { %1366 = vrot.lane.b32.xlu0 %v1129_v48, %s7880_s28 }
 0x10d   : > { %v1545_v27 = vpop.permute.xlu1 %1544 }
 0x10e   : > { %v1824_v28 = vsel %vm1812_vm3, %v1791_v26, %v1545_v27  ;;  %v1543_v29 = vpop.permute.xlu0 %1542  ;;  %v1085_v27 = vpack.c.bf16 %v1069_v3, %v1068_v20 }
 0x10f   : > { %v1822_v36 = vsel %vm1812_vm3, %v1789_v35, %v1543_v29  ;;  %1416 = vrot.lane.b32.xlu1 %v6438_v21, %s7881_s0  ;;  %v1116_v35 = vld [vmem:[#allocation2 + $0x199] sm:$0xff] }
 0x110   : > { %1414 = vrot.lane.b32.xlu0 %v1177_v54, %s7881_s0  ;;  %5501 = vmatprep.mubr.msk.bf16.mxu0 %vm1872_vm10, %v1822_v36  ;;  %v762_v54 = vld [vmem:[#allocation2 + $0x98] sm:$0xff] }
 0x111   : > { %5502 = vmatmul.mubr.msk.bf16.gmra.mxu0 %vm1872_vm10, %v1824_v28  ;;  %v6455_v33 = vpop.permute.xlu1 %1212  ;;  %v787_v58 = vpack.c.bf16 %v762_v54, %v761_v53  ;;  %v1117_v28 = vld [vmem:[#allocation2 + $0x1a1] sm:$0xff]  ;;  %v767_v53 = vld [vmem:[#allocation2 + $0xd8] sm:$0xff] }
 0x112   : > { %v6457_v37 = vpop.permute.xlu0 %1210  ;;  %v1589_v1 = vsel %vm660_vm0, %v6296_v34, %v6455_v33  ;;  %v1133_v31 = vpack.c.bf16 %v1117_v28, %v1116_v35  ;;  %v1165_v33 = vld [vmem:[#allocation2 + $0x1a2] sm:$0xff] }
 0x113   : > { %1464 = vrot.lane.b32.xlu1 %v6450_v30, %s7882_s30  ;;  %v1586_v4 = vsel %vm660_vm0, %v787_v58, %v6457_v37  ;;  %v1181_v39 = vpack.c.bf16 %v1165_v33, %v1164_v32  ;;  %v768_v54 = vld [vmem:[#allocation2 + $0xe0] sm:$0xff] }
 0x114   : > { %1462 = vrot.lane.b32.xlu0 %v6416_v63, %s7882_s30  ;;  %v790_v59 = vpack.c.bf16 %v768_v54, %v767_v53 }
 0x115   : > { %v1261_v41 = vpop.permute.xlu1 %1260 }
 0x116   : > { %v6465_v43 = vpop.permute.xlu0 %1258  ;;  %v1630_v5 = vsel %vm1614_vm5, %v1589_v1, %v1261_v41  ;;  %v2287_v41 = vld [vmem:[#allocation3 + $0xa] sm:$0xff] }
 0x117   : > { %1512 = vrot.lane.b32.xlu1 %v6461_v38, %s7883_s23  ;;  %v1628_v8 = vsel %vm1614_vm5, %v1586_v4, %v6465_v43 }
 0x118   : > { %1510 = vrot.lane.b32.xlu0 %v6423_v7, %s7883_s23 }
 0x119   : > { %v1309_v46 = vpop.permute.xlu1 %1308 }
 0x11a   : > { %v1307_v47 = vpop.permute.xlu0 %1306  ;;  %v1663_v10 = vsel %vm1647_vm6, %v1630_v5, %v1309_v46  ;;  %v2239_v46 = vld [vmem:[#allocation3 + $0x9] sm:$0xff] }
 0x11b   : > { %1560 = vrot.lane.b32.xlu1 %v1179_v44, %s7884_s3  ;;  %v1661_v34 = vsel %vm1647_vm6, %v1628_v8, %v1307_v47 }
 0x11c   : > { %1558 = vrot.lane.b32.xlu0 %v6438_v21, %s7884_s3 }
 0x11d   : > { %v1357_v48 = vpop.permute.xlu1 %1356 }
 0x11e   : > { %v1355_v49 = vpop.permute.xlu0 %1354  ;;  %v1696_v12 = vsel %vm1680_vm2, %v1663_v10, %v1357_v48  ;;  %v2318_v48 = vpack.c.bf16 %v2287_v41, %v2286_v40 }
 0x11f   : > { %1228 = vrot.lane.b32.xlu1 %v6461_v38, %s7877_s21  ;;  %v1694_v15 = vsel %vm1680_vm2, %v1661_v34, %v1355_v49 }
 0x120   : > { %1226 = vrot.lane.b32.xlu0 %v6423_v7, %s7877_s21  ;;  %v1020_v7 = vld [vmem:[#allocation2 + $0x18a] sm:$0xff]  ;;  %s620_s21 = sand.u32 1, %s5750_s22  }
 0x121   : > { %v1405_v55 = vpop.permute.xlu1 %1404  ;;  %v1036_v16 = vpack.c.bf16 %v1020_v7, %v1019_v6 }
 0x122   : > { %v1403_v56 = vpop.permute.xlu0 %1402  ;;  %v1729_v14 = vsel %vm1713_vm7, %v1696_v12, %v1405_v55  ;;  %v765_v55 = vld [vmem:[#allocation2 + $0xc0] sm:$0xff] }
 0x123   : > { %1276 = vrot.lane.b32.xlu1 %v1179_v44, %s7878_s25  ;;  %v1727_v17 = vsel %vm1713_vm7, %v1694_v15, %v1403_v56  ;;  %v766_v56 = vld [vmem:[#allocation2 + $0xc8] sm:$0xff] }
 0x124   : > { %1274 = vrot.lane.b32.xlu0 %v6438_v21, %s7878_s25  ;;  %v789_v60 = vpack.c.bf16 %v766_v56, %v765_v55  ;;  %s7848_s25 = smov 112  }
 0x125   : > { %v1453_v61 = vpop.permute.xlu1 %1452 }
 0x126   : > { %v1451_v62 = vpop.permute.xlu0 %1450  ;;  %v1762_v19 = vsel %vm1746_vm8, %v1729_v14, %v1453_v61 }
 0x127   : > { %1324 = vrot.lane.b32.xlu1 %v940_v57, %s7879_s26  ;;  %v1760_v21 = vsel %vm1746_vm8, %v1727_v17, %v1451_v62 }
 0x128   : > { %1322 = vrot.lane.b32.xlu0 %v6450_v30, %s7879_s26  ;;  %s7852_s26 = smov 80  }
 0x129   : > { %v1501_v11 = vpop.permute.xlu1 %1500 }
 0x12a   : > { %v1499_v13 = vpop.permute.xlu0 %1498  ;;  %v1795_v22 = vsel %vm1779_vm9, %v1762_v19, %v1501_v11 }
 0x12b   : > { %1372 = vrot.lane.b32.xlu1 %v988_v2, %s7880_s28  ;;  %v1793_v24 = vsel %vm1779_vm9, %v1760_v21, %v1499_v13 }
 0x12c   : > { %1370 = vrot.lane.b32.xlu0 %v6461_v38, %s7880_s28 }
 0x12d   : > { %v1549_v23 = vpop.permute.xlu1 %1548 }
 0x12e   : > { %v1828_v45 = vsel %vm1812_vm3, %v1795_v22, %v1549_v23  ;;  %v1547_v25 = vpop.permute.xlu0 %1546 }
 0x12f   : > { %v1826_v26 = vsel %vm1812_vm3, %v1793_v24, %v1547_v25  ;;  %1420 = vrot.lane.b32.xlu1 %v1036_v16, %s7881_s0 }
 0x130   : > { %1418 = vrot.lane.b32.xlu0 %v1179_v44, %s7881_s0  ;;  %5505 = vmatprep.mubr.msk.bf16.mxu0 %vm1872_vm10, %v1826_v26  ;;  %v2238_v44 = vld [vmem:[#allocation3 + $0x1] sm:$0xff]  ;;  %s7886_s0 = sld [smem:[#allocation18_spill]] }
 0x131   : > { %5506 = vmatmul.mubr.msk.bf16.gmra.mxu0 %vm1872_vm10, %v1828_v45  ;;  %v1217_v29 = vpop.permute.xlu1 %1216  ;;  %v2270_v49 = vpack.c.bf16 %v2239_v46, %v2238_v44 }
 0x132   : > { %v1215_v36 = vpop.permute.xlu0 %1214  ;;  %v1595_v1 = vsel %vm660_vm0, %v790_v59, %v1217_v29 }
 0x133   : > { %1468 = vrot.lane.b32.xlu1 %v1085_v27, %s7882_s30 }
 0x134   : > { %1466 = vrot.lane.b32.xlu0 %v940_v57, %s7882_s30  ;;  %s7885_s30 = sld [smem:[#allocation19_spill]] }
 0x135   : > { %v1265_v37 = vpop.permute.xlu1 %1264 }
 0x136   : > { %v1263_v38 = vpop.permute.xlu0 %1262  ;;  %v1634_v4 = vsel %vm1614_vm5, %v1595_v1, %v1265_v37 }
 0x137   : > { %1516 = vrot.lane.b32.xlu1 %v1133_v31, %s7883_s23 }
 0x138   : > { %1514 = vrot.lane.b32.xlu0 %v988_v2, %s7883_s23  ;;  %v1592_v2 = vsel %vm660_vm0, %v789_v60, %v1215_v36  ;;  %s7854_s23 = smov 64  }
 0x139   : > { %v1313_v43 = vpop.permute.xlu1 %1312  ;;  %v1632_v5 = vsel %vm1614_vm5, %v1592_v2, %v1263_v38 }
 0x13a   : > { %v1311_v47 = vpop.permute.xlu0 %1310  ;;  %v1667_v6 = vsel %vm1647_vm6, %v1634_v4, %v1313_v43 }
 0x13b   : > { %1564 = vrot.lane.b32.xlu1 %v1181_v39, %s7884_s3  ;;  %v1665_v8 = vsel %vm1647_vm6, %v1632_v5, %v1311_v47  ;;  %v5652_v5 = vld [vmem:[%s7885_s30 + $0x38] sm:$0xff]  }
 0x13c   : > { %1562 = vrot.lane.b32.xlu0 %v1036_v16, %s7884_s3 }
 0x13d   : > { %v1361_v50 = vpop.permute.xlu1 %1360 }
 0x13e   : > { %v1359_v51 = vpop.permute.xlu0 %1358  ;;  %v1700_v10 = vsel %vm1680_vm2, %v1667_v6, %v1361_v50 }
 0x13f   : > { %2687 = vrot.lane.b32.xlu1 %v2318_v48, %s7884_s3  ;;  %v1698_v34 = vsel %vm1680_vm2, %v1665_v8, %v1359_v51 }
 0x140   : > { %2639 = vrot.lane.b32.xlu0 %v2270_v49, %s7880_s28 }
 0x141   : > { %v1409_v57 = vpop.permute.xlu1 %1408 }
 0x142   : > { %v1407_v58 = vpop.permute.xlu0 %1406  ;;  %v1733_v12 = vsel %vm1713_vm7, %v1700_v10, %v1409_v57 }
 0x143   : > { %v1731_v13 = vsel %vm1713_vm7, %v1698_v34, %v1407_v58 }
 0x145   : > { %v1457_v61 = vpop.permute.xlu1 %1456 }
 0x146   : > { %v1455_v62 = vpop.permute.xlu0 %1454  ;;  %v1766_v15 = vsel %vm1746_vm8, %v1733_v12, %v1457_v61  ;;  %v5653_v12 = vld [vmem:[%s7885_s30 + $0x30] sm:$0xff]  }
 0x147   : > { %v1764_v14 = vsel %vm1746_vm8, %v1731_v13, %v1455_v62 }
 0x149   : > { %v1505_v7 = vpop.permute.xlu1 %1504 }
 0x14a   : > { %v1503_v11 = vpop.permute.xlu0 %1502  ;;  %v1799_v16 = vsel %vm1779_vm9, %v1766_v15, %v1505_v7  ;;  %v5769_v7 = vmov 0  }
 0x14b   : > { %v1797_v19 = vsel %vm1779_vm9, %v1764_v14, %v1503_v11  ;;  %3347 = vmatprep.subr.bf16.mxu1 %v5769_v7  ;;  %4020 = vmatprep.subr.bf16.mxu0 %v5769_v7 }
 0x14c   : > { %3348 = vmatpush1.bf16.msra.mxu1 %v5652_v5 }
 0x14d   : > { %v1553_v17 = vpop.permute.xlu1 %1552  ;;  %3349 = vmatprep.subr.bf16.mxu1 %v5769_v7 }
 0x14e   : > { %v1832_v20 = vsel %vm1812_vm3, %v1799_v16, %v1553_v17  ;;  %v1551_v3 = vpop.permute.xlu0 %1550 }
 0x14f   : > { %v1830_v21 = vsel %vm1812_vm3, %v1797_v19, %v1551_v3 }
 0x150   : > { %5509 = vmatprep.mubr.msk.bf16.mxu0 %vm1872_vm10, %v1830_v21  ;;  %3350 = vmatpush1.bf16.msra.mxu1 %v5653_v12  ;;  %v5654_v21 = vld [vmem:[%s7885_s30 + $0x28] sm:$0xff]  }
 0x151   : > { %5510 = vmatmul.mubr.msk.bf16.gmra.mxu0 %vm1872_vm10, %v1832_v20  ;;  %v1221_v22 = vpop.permute.xlu1 %1220  ;;  %3351 = vmatprep.subr.bf16.mxu1 %v5769_v7 }
 0x152   : > { %v1219_v23 = vpop.permute.xlu0 %1218  ;;  %v1601_v32 = vsel %vm660_vm0, %v6356_v52, %v1221_v22 }
 0x153   : > { %v1598_v33 = vsel %vm660_vm0, %v6330_v18, %v1219_v23 }
 0x154   : > { %3352 = vmatpush1.bf16.msra.mxu1 %v5654_v21 }
 0x155   : > { %v1269_v24 = vpop.permute.xlu1 %1268  ;;  %3353 = vmatprep.subr.bf16.mxu1 %v5769_v7 }
 0x156   : > { %v1267_v45 = vpop.permute.xlu0 %1266  ;;  %v1638_v37 = vsel %vm1614_vm5, %v1601_v32, %v1269_v24 }
 0x157   : > { %v1636_v38 = vsel %vm1614_vm5, %v1598_v33, %v1267_v45  ;;  %v5655_v33 = vld [vmem:[%s7885_s30 + $0x20] sm:$0xff]  }
 0x158   : > { %3354 = vmatpush1.bf16.msra.mxu1 %v5655_v33 }
 0x159   : > { %v1317_v25 = vpop.permute.xlu1 %1316  ;;  %3355 = vmatprep.subr.bf16.mxu1 %v5769_v7 }
 0x15a   : > { %v1315_v26 = vpop.permute.xlu0 %1314  ;;  %v1671_v39 = vsel %vm1647_vm6, %v1638_v37, %v1317_v25 }
 0x15b   : > { %v1669_v41 = vsel %vm1647_vm6, %v1636_v38, %v1315_v26 }
 0x15d   : > { %v1365_v27 = vpop.permute.xlu1 %1364 }
 0x15e   : > { %v1363_v35 = vpop.permute.xlu0 %1362  ;;  %v1704_v43 = vsel %vm1680_vm2, %v1671_v39, %v1365_v27 }
 0x15f   : > { %v1702_v46 = vsel %vm1680_vm2, %v1669_v41, %v1363_v35  ;;  %v6647_v35 = vld [vmem:[%s7886_s0] ss:$0 sm:$0xff]  ;;  %s7850_s0 = smov 96  }
 0x161   : > { %v1413_v28 = vpop.permute.xlu1 %1412 }
 0x162   : > { %v1411_v29 = vpop.permute.xlu0 %1410  ;;  %v1737_v47 = vsel %vm1713_vm7, %v1704_v43, %v1413_v28 }
 0x163   : > { %v1735_v52 = vsel %vm1713_vm7, %v1702_v46, %v1411_v29 }
 0x165   : > { %v1461_v36 = vpop.permute.xlu1 %1460 }
 0x166   : > { %v1459_v31 = vpop.permute.xlu0 %1458  ;;  %v1770_v18 = vsel %vm1746_vm8, %v1737_v47, %v1461_v36  ;;  %v5656_v47 = vld [vmem:[%s7885_s30 + $0x18] sm:$0xff]  }
 0x167   : > { %v1768_v48 = vsel %vm1746_vm8, %v1735_v52, %v1459_v31  ;;  %3356 = vmatpush1.bf16.msra.mxu1 %v5656_v47 }
 0x168   : > { %3357 = vmatprep.subr.bf16.mxu1 %v5769_v7 }
 0x169   : > { %v1509_v40 = vpop.permute.xlu1 %1508 }
 0x16a   : > { %v1507_v44 = vpop.permute.xlu0 %1506  ;;  %v1803_v49 = vsel %vm1779_vm9, %v1770_v18, %v1509_v40 }
 0x16b   : > { %v1801_v51 = vsel %vm1779_vm9, %v1768_v48, %v1507_v44 }
 0x16d   : > { %v1557_v50 = vpop.permute.xlu1 %1556 }
 0x16e   : > { %v1836_v53 = vsel %vm1812_vm3, %v1803_v49, %v1557_v50  ;;  %v1555_v54 = vpop.permute.xlu0 %1554 }
 0x16f   : > { %v1834_v55 = vsel %vm1812_vm3, %v1801_v51, %v1555_v54  ;;  %v5657_v51 = vld [vmem:[%s7885_s30 + $0x10] sm:$0xff]  }
 0x170   : > { %5513 = vmatprep.mubr.msk.bf16.mxu0 %vm1872_vm10, %v1834_v55  ;;  %3358 = vmatpush1.bf16.msra.mxu1 %v5657_v51  ;;  %v5658_v55 = vld [vmem:[%s7885_s30 + $0x8] sm:$0xff]  }
 0x171   : > { %5514 = vmatmul.mubr.msk.bf16.gmra.mxu0 %vm1872_vm10, %v1836_v53  ;;  %v1225_v56 = vpop.permute.xlu1 %1224  ;;  %3359 = vmatprep.subr.bf16.mxu1 %v5769_v7 }
 0x172   : > { %v1223_v57 = vpop.permute.xlu0 %1222  ;;  %v1607_v10 = vsel %vm660_vm0, %v6400_v42, %v1225_v56 }
 0x173   : > { %v1604_v11 = vsel %vm660_vm0, %v6372_v9, %v1223_v57 }
 0x174   : > { %3360 = vmatpush1.bf16.msra.mxu1 %v5658_v55 }
 0x175   : > { %v1273_v58 = vpop.permute.xlu1 %1272  ;;  %3361 = vmatprep.subr.bf16.mxu1 %v5769_v7 }
 0x176   : > { %v1271_v59 = vpop.permute.xlu0 %1270  ;;  %v1642_v34 = vsel %vm1614_vm5, %v1607_v10, %v1273_v58 }
 0x177   : > { %v1640_v13 = vsel %vm1614_vm5, %v1604_v11, %v1271_v59 }
 0x179   : > { %v1321_v60 = vpop.permute.xlu1 %1320 }
 0x17a   : > { %v1319_v61 = vpop.permute.xlu0 %1318  ;;  %v1675_v15 = vsel %vm1647_vm6, %v1642_v34, %v1321_v60  ;;  %v5660_v34 = vld [vmem:[%s7885_s30 + $0x40] sm:$0xff]  }
 0x17b   : > { %v1673_v16 = vsel %vm1647_vm6, %v1640_v13, %v1319_v61 }
 0x17d   : > { %v1369_v62 = vpop.permute.xlu1 %1368 }
 0x17e   : > { %v1367_v1 = vpop.permute.xlu0 %1366  ;;  %v1708_v42 = vsel %vm1680_vm2, %v1675_v15, %v1369_v62 }
 0x17f   : > { %v1706_v19 = vsel %vm1680_vm2, %v1673_v16, %v1367_v1 }
 0x181   : > { %v1417_v2 = vpop.permute.xlu1 %1416 }
 0x182   : > { %v1415_v4 = vpop.permute.xlu0 %1414  ;;  %v1741_v9 = vsel %vm1713_vm7, %v1708_v42, %v1417_v2 }
 0x183   : > { %v1739_v20 = vsel %vm1713_vm7, %v1706_v19, %v1415_v4 }
 0x185   : > { %v1465_v6 = vpop.permute.xlu1 %1464 }
 0x186   : > { %v1463_v8 = vpop.permute.xlu0 %1462  ;;  %v1774_v3 = vsel %vm1746_vm8, %v1741_v9, %v1465_v6  ;;  %v5659_v6 = vld [vmem:[%s7885_s30] sm:$0xff]   ;;  %s7890_s30 = smov 96  }
 0x187   : > { %v1772_v22 = vsel %vm1746_vm8, %v1739_v20, %v1463_v8  ;;  %3362 = vmatpush1.bf16.msra.mxu1 %v5659_v6 }
 0x188   : > { %3377 = vmatprep.subr.bf16.mxu1 %v5769_v7 }
 0x189   : > { %v1513_v14 = vpop.permute.xlu1 %1512 }
 0x18a   : > { %v1511_v17 = vpop.permute.xlu0 %1510  ;;  %v1807_v23 = vsel %vm1779_vm9, %v1774_v3, %v1513_v14 }
 0x18b   : > { %v1805_v45 = vsel %vm1779_vm9, %v1772_v22, %v1511_v17  ;;  %3378 = vmatpush2.bf16.msra.mxu1 %v5660_v34 }
 0x18c   : > { %5553 = vmatprep.subr.mxu1 %v5760_v0 }
 0x18d   : > { %v1561_v24 = vpop.permute.xlu1 %1560 }
 0x18e   : > { %v1840_v25 = vsel %vm1812_vm3, %v1807_v23, %v1561_v24  ;;  %v1559_v26 = vpop.permute.xlu0 %1558 }
 0x18f   : > { %v1838_v27 = vsel %vm1812_vm3, %v1805_v45, %v1559_v26 }
 0x190   : > { %5517 = vmatprep.mubr.msk.bf16.mxu0 %vm1872_vm10, %v1838_v27 }
 0x191   : > { %v5495_v28 = vpop.f32.mrf.mxu0  ;;  %5518 = vmatmul.mubr.msk.bf16.gmra.mxu0 %vm1872_vm10, %v1840_v25  ;;  %v1229_v29 = vpop.permute.xlu1 %1228 }
 0x192   : > { %v1952_v36 = vadd.f32 %v5495_v28, %v6647_v35  ;;  %v1227_v31 = vpop.permute.xlu0 %1226  ;;  %v1613_v11 = vsel %vm660_vm0, %v6450_v30, %v1229_v29 }
 0x193   : > { %v1943_v32 = vpop.f32.mrf.mxu0  ;;  %v1610_v12 = vsel %vm660_vm0, %v6416_v63, %v1227_v31  ;;  %vm3171_vm0 = vcmask 916480  }
 0x194   : > { %v2072_v37 = vmax.f32 %v1952_v36, 0.0  ;;  %v1944_v38 = vadd.f32 %v6647_v35, %v1943_v32 }
 0x195   : > { %v5496_v39 = vpop.f32.mrf.mxu0  ;;  %v1277_v40 = vpop.permute.xlu1 %1276 }
 0x196   : > { %2160 = vst.msk [vmem:[#allocation3 + $0x31] sm:$0xff] %vm1680_vm2, %v2072_v37  ;;  %v2070_v41 = vmax.f32 %v1944_v38, 0.0  ;;  %v1955_v43 = vadd.f32 %v5496_v39, %v6647_v35  ;;  %v1275_v44 = vpop.permute.xlu0 %1274  ;;  %v1646_v13 = vsel %vm1614_vm5, %v1613_v11, %v1277_v40 }
 0x197   : > { %v1946_v46 = vpop.f32.mrf.mxu0  ;;  %v1644_v15 = vsel %vm1614_vm5, %v1610_v12, %v1275_v44  ;;  %vm4946_vm5 = vcmask 131072  }
 0x198   : > { %2158 = vst.msk [vmem:[#allocation3 + $0x19] sm:$0xff] %vm1680_vm2, %v2070_v41  ;;  %v2073_v52 = vmax.f32 %v1955_v43, 0.0  ;;  %v1947_v18 = vadd.f32 %v6647_v35, %v1946_v46 }
 0x199   : > { %v1325_v48 = vpop.permute.xlu1 %1324 }
 0x19a   : > { %2161 = vst.msk [vmem:[#allocation3 + $0x39] sm:$0xff] %vm1680_vm2, %v2073_v52  ;;  %v2071_v49 = vmax.f32 %v1947_v18, 0.0  ;;  %v1323_v50 = vpop.permute.xlu0 %1322  ;;  %v1679_v14 = vsel %vm1647_vm6, %v1646_v13, %v1325_v48 }
 0x19b   : > { %v1677_v16 = vsel %vm1647_vm6, %v1644_v15, %v1323_v50  ;;  %vm4966_vm6 = vcmask 138240  }
 0x19c   : > { %2159 = vst.msk [vmem:[#allocation3 + $0x21] sm:$0xff] %vm1680_vm2, %v2071_v49 }
 0x19d   : > { %v1373_v53 = vpop.permute.xlu1 %1372  ;;  %v2527_v56 = vld [vmem:[#allocation3 + $0x31] sm:$0xff] }
 0x19e   : > { %v1371_v54 = vpop.permute.xlu0 %1370  ;;  %v2479_v2 = vld [vmem:[#allocation3 + $0x30] sm:$0xff]  ;;  %v1712_v42 = vsel %vm1680_vm2, %v1679_v14, %v1373_v53 }
 0x19f   : > { %v1710_v63 = vsel %vm1680_vm2, %v1677_v16, %v1371_v54  ;;  %v2334_v24 = vld [vmem:[#allocation3 + $0x18] sm:$0xff] }
 0x1a0   : > { %v2382_v37 = vld [vmem:[#allocation3 + $0x19] sm:$0xff] }
 0x1a1   : > { %v1421_v57 = vpop.permute.xlu1 %1420  ;;  %v2575_v58 = vld [vmem:[#allocation3 + $0x32] sm:$0xff]  ;;  %v2576_v59 = vld [vmem:[#allocation3 + $0x3a] sm:$0xff] }
 0x1a2   : > { %v2528_v60 = vld [vmem:[#allocation3 + $0x39] sm:$0xff]  ;;  %v1419_v61 = vpop.permute.xlu0 %1418  ;;  %v2607_v62 = vpack.c.bf16 %v2576_v59, %v2575_v58  ;;  %v1745_v19 = vsel %vm1713_vm7, %v1712_v42, %v1421_v57 }
 0x1a3   : > { %v2559_v1 = vpack.c.bf16 %v2528_v60, %v2527_v56  ;;  %v2480_v4 = vld [vmem:[#allocation3 + $0x38] sm:$0xff]  ;;  %v2335_v9 = vld [vmem:[#allocation3 + $0x20] sm:$0xff]  ;;  %v1743_v20 = vsel %vm1713_vm7, %v1710_v63, %v1419_v61  ;;  %vm5120_vm7 = vcmask 253952  }
 0x1a4   : > { %v6676_v5 = vpack.c.bf16 %v2480_v4, %v2479_v2  ;;  %5323 = vmatprep.mubr.msk.bf16.mxu1 %vm1680_vm2, %v2607_v62  ;;  %v6712_v27 = vpack.c.bf16 %v2335_v9, %v2334_v24  ;;  %v2430_v29 = vld [vmem:[#allocation3 + $0x1a] sm:$0xff]  ;;  %v2431_v36 = vld [vmem:[#allocation3 + $0x22] sm:$0xff] }
 0x1a5   : > { %2927 = vrot.lane.b32.xlu0 %v2559_v1, %s7848_s25  ;;  %v1469_v8 = vpop.permute.xlu1 %1468  ;;  %v2383_v31 = vld [vmem:[#allocation3 + $0x21] sm:$0xff]  ;;  %v2462_v38 = vpack.c.bf16 %v2431_v36, %v2430_v29 }
 0x1a6   : > { %2879 = vrot.lane.b32.xlu1 %v6676_v5, %s7850_s0  ;;  %v1467_v10 = vpop.permute.xlu0 %1466  ;;  %v1778_v3 = vsel %vm1746_vm8, %v1745_v19, %v1469_v8  ;;  %v2414_v40 = vpack.c.bf16 %v2383_v31, %v2382_v37 }
 0x1a7   : > { %v1776_v21 = vsel %vm1746_vm8, %v1743_v20, %v1467_v10  ;;  %vm5217_vm8 = vcmask 8192  }
 0x1a9   : > { %2785 = vrot.lane.b32.xlu0 %v2559_v1, %s7854_s23  ;;  %v1517_v30 = vpop.permute.xlu1 %1516 }
 0x1aa   : > { %2737 = vrot.lane.b32.xlu1 %v6676_v5, %s7856_s27  ;;  %v1515_v17 = vpop.permute.xlu0 %1514  ;;  %v1811_v22 = vsel %vm1779_vm9, %v1778_v3, %v1517_v30 }
 0x1ab   : > { %v1809_v45 = vsel %vm1779_vm9, %v1776_v21, %v1515_v17 }
 0x1ad   : > { %2643 = vrot.lane.b32.xlu0 %v2559_v1, %s7880_s28  ;;  %v1565_v23 = vpop.permute.xlu1 %1564 }
 0x1ae   : > { %2833 = vrot.lane.b32.xlu1 %v2607_v62, %s7852_s26  ;;  %v1844_v25 = vsel %vm1812_vm3, %v1811_v22, %v1565_v23  ;;  %v1563_v26 = vpop.permute.xlu0 %1562 }
 0x1af   : > { %v1842_v28 = vsel %vm1812_vm3, %v1809_v45, %v1563_v26 }
 0x1b0   : > { %5521 = vmatprep.mubr.msk.bf16.mxu0 %vm1872_vm10, %v1842_v28 }
 0x1b1   : > { %2735 = vrot.lane.b32.xlu0 %v6712_v27, %s7856_s27  ;;  %v5499_v32 = vpop.f32.mrf.mxu0  ;;  %5522 = vmatmul.mubr.msk.bf16.gmra.mxu0 %vm1872_vm10, %v1844_v25 }
 0x1b2   : > { %2691 = vrot.lane.b32.xlu1 %v2607_v62, %s7884_s3  ;;  %v1968_v33 = vadd.f32 %v5499_v32, %v6647_v35 }
 0x1b3   : > { %v1959_v39 = vpop.f32.mrf.mxu0 }
 0x1b4   : > { %v2076_v41 = vmax.f32 %v1968_v33, 0.0  ;;  %v1960_v43 = vadd.f32 %v6647_v35, %v1959_v39 }
 0x1b5   : > { %2831 = vrot.lane.b32.xlu0 %v2462_v38, %s7852_s26  ;;  %v5500_v44 = vpop.f32.mrf.mxu0 }
 0x1b6   : > { %2783 = vrot.lane.b32.xlu1 %v2414_v40, %s7854_s23  ;;  %2164 = vst.msk [vmem:[#allocation3 + $0x61] sm:$0xff] %vm1680_vm2, %v2076_v41  ;;  %v2074_v46 = vmax.f32 %v1960_v43, 0.0  ;;  %v1971_v47 = vadd.f32 %v5500_v44, %v6647_v35 }
 0x1b7   : > { %v1962_v52 = vpop.f32.mrf.mxu0 }
 0x1b8   : > { %2162 = vst.msk [vmem:[#allocation3 + $0x49] sm:$0xff] %vm1680_vm2, %v2074_v46  ;;  %v2077_v18 = vmax.f32 %v1971_v47, 0.0  ;;  %v1963_v48 = vadd.f32 %v6647_v35, %v1962_v52 }
 0x1b9   : > { %2689 = vrot.lane.b32.xlu0 %v2462_v38, %s7884_s3 }
 0x1ba   : > { %2641 = vrot.lane.b32.xlu1 %v2414_v40, %s7880_s28  ;;  %2165 = vst.msk [vmem:[#allocation3 + $0x69] sm:$0xff] %vm1680_vm2, %v2077_v18  ;;  %v2075_v49 = vmax.f32 %v1963_v48, 0.0 }
 0x1bc   : > { %2163 = vst.msk [vmem:[#allocation3 + $0x51] sm:$0xff] %vm1680_vm2, %v2075_v49 }
 0x1bd   : > { %v2531_v50 = vld [vmem:[#allocation3 + $0x61] sm:$0xff] }
 0x1be   : > { %v2483_v53 = vld [vmem:[#allocation3 + $0x60] sm:$0xff] }
 0x1bf   : > { %v2481_v61 = vld [vmem:[#allocation3 + $0x48] sm:$0xff] }
 0x1c0   : > { %v2529_v4 = vld [vmem:[#allocation3 + $0x49] sm:$0xff] }
 0x1c1   : > { %v2532_v51 = vld [vmem:[#allocation3 + $0x69] sm:$0xff] }
 0x1c2   : > { %v2484_v54 = vld [vmem:[#allocation3 + $0x68] sm:$0xff]  ;;  %v2561_v55 = vpack.c.bf16 %v2532_v51, %v2531_v50 }
 0x1c3   : > { %v6732_v56 = vpack.c.bf16 %v2484_v54, %v2483_v53  ;;  %v2436_v57 = vld [vmem:[#allocation3 + $0x62] sm:$0xff]  ;;  %v2437_v58 = vld [vmem:[#allocation3 + $0x6a] sm:$0xff]  ;;  %v2435_v34 = vld [vmem:[#allocation3 + $0x52] sm:$0xff] }
 0x1c4   : > { %2931 = vrot.lane.b32.xlu0 %v2561_v55, %s7848_s25  ;;  %v6740_v59 = vpack.c.bf16 %v2437_v58, %v2436_v57  ;;  %v2482_v60 = vld [vmem:[#allocation3 + $0x50] sm:$0xff] }
 0x1c5   : > { %2883 = vrot.lane.b32.xlu1 %v6732_v56, %s7850_s0  ;;  %v6745_v62 = vpack.c.bf16 %v2482_v60, %v2481_v61  ;;  %v2530_v1 = vld [vmem:[#allocation3 + $0x51] sm:$0xff] }
 0x1c6   : > { %v2560_v8 = vpack.c.bf16 %v2530_v1, %v2529_v4  ;;  %v2434_v11 = vld [vmem:[#allocation3 + $0x4a] sm:$0xff] }
 0x1c7   : > { %v6758_v16 = vpack.c.bf16 %v2435_v34, %v2434_v11  ;;  %v2688_v34 = vpop.permute.xlu1 %2687 }
 0x1c8   : > { %2789 = vrot.lane.b32.xlu0 %v2561_v55, %s7854_s23 }
 0x1c9   : > { %2741 = vrot.lane.b32.xlu1 %v6732_v56, %s7856_s27 }
 0x1cc   : > { %2647 = vrot.lane.b32.xlu0 %v2561_v55, %s7880_s28 }
 0x1cd   : > { %2837 = vrot.lane.b32.xlu1 %v6740_v59, %s7852_s26 }
 0x1d0   : > { %2881 = vrot.lane.b32.xlu0 %v6745_v62, %s7850_s0 }
 0x1d1   : > { %2695 = vrot.lane.b32.xlu1 %v6740_v59, %s7884_s3  ;;  %v5503_v2 = vpop.f32.mrf.mxu0 }
 0x1d2   : > { %v1984_v6 = vadd.f32 %v5503_v2, %v6647_v35 }
 0x1d3   : > { %v1975_v10 = vpop.f32.mrf.mxu0 }
 0x1d4   : > { %v2080_v12 = vmax.f32 %v1984_v6, 0.0  ;;  %v1976_v13 = vadd.f32 %v6647_v35, %v1975_v10  ;;  %2739 = vrot.lane.b32.xlu0 %v6745_v62, %s7856_s27  ;;  %v2640_v10 = vpop.permute.xlu0 %2639 }
 0x1d5   : > { %2929 = vrot.lane.b32.xlu1 %v2560_v8, %s7848_s25  ;;  %v5504_v15 = vpop.f32.mrf.mxu0 }
 0x1d6   : > { %2168 = vst.msk [vmem:[#allocation3 + $0x91] sm:$0xff] %vm1680_vm2, %v2080_v12  ;;  %v2078_v14 = vmax.f32 %v1976_v13, 0.0  ;;  %v1987_v30 = vadd.f32 %v5504_v15, %v6647_v35 }
 0x1d7   : > { %v1978_v42 = vpop.f32.mrf.mxu0 }
 0x1d8   : > { %2166 = vst.msk [vmem:[#allocation3 + $0x79] sm:$0xff] %vm1680_vm2, %v2078_v14  ;;  %v2081_v17 = vmax.f32 %v1987_v30, 0.0  ;;  %v1979_v63 = vadd.f32 %v6647_v35, %v1978_v42  ;;  %2835 = vrot.lane.b32.xlu0 %v6758_v16, %s7852_s26 }
 0x1d9   : > { %2787 = vrot.lane.b32.xlu1 %v2560_v8, %s7854_s23 }
 0x1da   : > { %2169 = vst.msk [vmem:[#allocation3 + $0x99] sm:$0xff] %vm1680_vm2, %v2081_v17  ;;  %v2079_v19 = vmax.f32 %v1979_v63, 0.0 }
 0x1dc   : > { %2167 = vst.msk [vmem:[#allocation3 + $0x81] sm:$0xff] %vm1680_vm2, %v2079_v19  ;;  %2693 = vrot.lane.b32.xlu0 %v6758_v16, %s7884_s3 }
 0x1dd   : > { %2645 = vrot.lane.b32.xlu1 %v2560_v8, %s7880_s28  ;;  %v2535_v9 = vld [vmem:[#allocation3 + $0x91] sm:$0xff] }
 0x1de   : > { %v2487_v3 = vld [vmem:[#allocation3 + $0x90] sm:$0xff] }
 0x1df   : > { %v2485_v28 = vld [vmem:[#allocation3 + $0x78] sm:$0xff] }
 0x1e0   : > { %v2533_v32 = vld [vmem:[#allocation3 + $0x79] sm:$0xff] }
 0x1e1   : > { %v2536_v20 = vld [vmem:[#allocation3 + $0x99] sm:$0xff] }
 0x1e2   : > { %v2488_v21 = vld [vmem:[#allocation3 + $0x98] sm:$0xff]  ;;  %v2563_v22 = vpack.c.bf16 %v2536_v20, %v2535_v9 }
 0x1e3   : > { %v6770_v23 = vpack.c.bf16 %v2488_v21, %v2487_v3  ;;  %v2440_v24 = vld [vmem:[#allocation3 + $0x92] sm:$0xff]  ;;  %v2441_v45 = vld [vmem:[#allocation3 + $0x9a] sm:$0xff]  ;;  %v2439_v40 = vld [vmem:[#allocation3 + $0x82] sm:$0xff] }
 0x1e4   : > { %2935 = vrot.lane.b32.xlu0 %v2563_v22, %s7848_s25  ;;  %v6778_v25 = vpack.c.bf16 %v2441_v45, %v2440_v24  ;;  %v2486_v26 = vld [vmem:[#allocation3 + $0x80] sm:$0xff] }
 0x1e5   : > { %2887 = vrot.lane.b32.xlu1 %v6770_v23, %s7850_s0  ;;  %v6783_v29 = vpack.c.bf16 %v2486_v26, %v2485_v28  ;;  %v2534_v36 = vld [vmem:[#allocation3 + $0x81] sm:$0xff] }
 0x1e6   : > { %v2562_v37 = vpack.c.bf16 %v2534_v36, %v2533_v32  ;;  %v2438_v39 = vld [vmem:[#allocation3 + $0x7a] sm:$0xff]  ;;  %v2191_v36 = vld [vmem:[#allocation3 + $0x8] sm:$0xff] }
 0x1e7   : > { %v6796_v52 = vpack.c.bf16 %v2439_v40, %v2438_v39  ;;  %v2190_v28 = vld [vmem:[#allocation3] sm:$0xff] }
 0x1e8   : > { %2793 = vrot.lane.b32.xlu0 %v2563_v22, %s7854_s23 }
 0x1e9   : > { %2745 = vrot.lane.b32.xlu1 %v6770_v23, %s7856_s27 }
 0x1ec   : > { %2651 = vrot.lane.b32.xlu0 %v2563_v22, %s7880_s28 }
 0x1ed   : > { %2841 = vrot.lane.b32.xlu1 %v6778_v25, %s7852_s26 }
 0x1f0   : > { %2885 = vrot.lane.b32.xlu0 %v6783_v29, %s7850_s0 }
 0x1f1   : > { %2699 = vrot.lane.b32.xlu1 %v6778_v25, %s7884_s3  ;;  %v5507_v31 = vpop.f32.mrf.mxu0 }
 0x1f2   : > { %v2000_v33 = vadd.f32 %v5507_v31, %v6647_v35 }
 0x1f3   : > { %v1991_v38 = vpop.f32.mrf.mxu0 }
 0x1f4   : > { %v2084_v41 = vmax.f32 %v2000_v33, 0.0  ;;  %v1992_v43 = vadd.f32 %v6647_v35, %v1991_v38  ;;  %2743 = vrot.lane.b32.xlu0 %v6783_v29, %s7856_s27 }
 0x1f5   : > { %2933 = vrot.lane.b32.xlu1 %v2562_v37, %s7848_s25  ;;  %v5508_v44 = vpop.f32.mrf.mxu0 }
 0x1f6   : > { %2172 = vst.msk [vmem:[#allocation3 + $0xc1] sm:$0xff] %vm1680_vm2, %v2084_v41  ;;  %v2082_v46 = vmax.f32 %v1992_v43, 0.0  ;;  %v2003_v47 = vadd.f32 %v5508_v44, %v6647_v35 }
 0x1f7   : > { %v1994_v18 = vpop.f32.mrf.mxu0 }
 0x1f8   : > { %2170 = vst.msk [vmem:[#allocation3 + $0xa9] sm:$0xff] %vm1680_vm2, %v2082_v46  ;;  %v2085_v48 = vmax.f32 %v2003_v47, 0.0  ;;  %v1995_v49 = vadd.f32 %v6647_v35, %v1994_v18  ;;  %2839 = vrot.lane.b32.xlu0 %v6796_v52, %s7852_s26 }
 0x1f9   : > { %2791 = vrot.lane.b32.xlu1 %v2562_v37, %s7854_s23 }
 0x1fa   : > { %2173 = vst.msk [vmem:[#allocation3 + $0xc9] sm:$0xff] %vm1680_vm2, %v2085_v48  ;;  %v2083_v50 = vmax.f32 %v1995_v49, 0.0 }
 0x1fc   : > { %2171 = vst.msk [vmem:[#allocation3 + $0xb1] sm:$0xff] %vm1680_vm2, %v2083_v50  ;;  %2697 = vrot.lane.b32.xlu0 %v6796_v52, %s7884_s3 }
 0x1fd   : > { %2649 = vrot.lane.b32.xlu1 %v2562_v37, %s7880_s28  ;;  %v2539_v51 = vld [vmem:[#allocation3 + $0xc1] sm:$0xff]  ;;  %v2222_v37 = vpack.c.bf16 %v2191_v36, %v2190_v28 }
 0x1fe   : > { %v2491_v54 = vld [vmem:[#allocation3 + $0xc0] sm:$0xff] }
 0x1ff   : > { %v2489_v4 = vld [vmem:[#allocation3 + $0xa8] sm:$0xff]  ;;  %v2961_v41 = vsel %vm1680_vm2, %v2222_v37, %v2640_v10 }
 0x200   : > { %v2537_v12 = vld [vmem:[#allocation3 + $0xa9] sm:$0xff] }
 0x201   : > { %v2540_v53 = vld [vmem:[#allocation3 + $0xc9] sm:$0xff] }
 0x202   : > { %v2492_v55 = vld [vmem:[#allocation3 + $0xc8] sm:$0xff]  ;;  %v2565_v57 = vpack.c.bf16 %v2540_v53, %v2539_v51  ;;  %v3008_v51 = vsel %vm1812_vm3, %v2961_v41, %v2688_v34 }
 0x203   : > { %v6808_v58 = vpack.c.bf16 %v2492_v55, %v2491_v54  ;;  %v2444_v60 = vld [vmem:[#allocation3 + $0xc2] sm:$0xff]  ;;  %v2445_v61 = vld [vmem:[#allocation3 + $0xca] sm:$0xff]  ;;  %v2443_v42 = vld [vmem:[#allocation3 + $0xb2] sm:$0xff] }
 0x204   : > { %2939 = vrot.lane.b32.xlu0 %v2565_v57, %s7848_s25  ;;  %v6816_v1 = vpack.c.bf16 %v2445_v61, %v2444_v60  ;;  %v2490_v2 = vld [vmem:[#allocation3 + $0xb0] sm:$0xff] }
 0x205   : > { %2891 = vrot.lane.b32.xlu1 %v6808_v58, %s7850_s0  ;;  %v6821_v6 = vpack.c.bf16 %v2490_v2, %v2489_v4  ;;  %v2538_v8 = vld [vmem:[#allocation3 + $0xb1] sm:$0xff] }
 0x206   : > { %v2564_v15 = vpack.c.bf16 %v2538_v8, %v2537_v12  ;;  %v2442_v30 = vld [vmem:[#allocation3 + $0xaa] sm:$0xff] }
 0x207   : > { %v6834_v21 = vpack.c.bf16 %v2443_v42, %v2442_v30 }
 0x208   : > { %2797 = vrot.lane.b32.xlu0 %v2565_v57, %s7854_s23 }
 0x209   : > { %2749 = vrot.lane.b32.xlu1 %v6808_v58, %s7856_s27 }
 0x20c   : > { %2655 = vrot.lane.b32.xlu0 %v2565_v57, %s7880_s28 }
 0x20d   : > { %2845 = vrot.lane.b32.xlu1 %v6816_v1, %s7852_s26 }
 0x210   : > { %2889 = vrot.lane.b32.xlu0 %v6821_v6, %s7850_s0 }
 0x211   : > { %2703 = vrot.lane.b32.xlu1 %v6816_v1, %s7884_s3  ;;  %v5511_v11 = vpop.f32.mrf.mxu0 }
 0x212   : > { %v2016_v13 = vadd.f32 %v5511_v11, %v6647_v35 }
 0x213   : > { %v2007_v14 = vpop.f32.mrf.mxu0 }
 0x214   : > { %v2088_v17 = vmax.f32 %v2016_v13, 0.0  ;;  %v2008_v63 = vadd.f32 %v6647_v35, %v2007_v14  ;;  %2747 = vrot.lane.b32.xlu0 %v6821_v6, %s7856_s27 }
 0x215   : > { %2937 = vrot.lane.b32.xlu1 %v2564_v15, %s7848_s25  ;;  %v5512_v19 = vpop.f32.mrf.mxu0 }
 0x216   : > { %2176 = vst.msk [vmem:[#allocation3 + $0xf1] sm:$0xff] %vm1680_vm2, %v2088_v17  ;;  %v2086_v9 = vmax.f32 %v2008_v63, 0.0  ;;  %v2019_v20 = vadd.f32 %v5512_v19, %v6647_v35 }
 0x217   : > { %v2928_v3 = vpop.permute.xlu0 %2927  ;;  %v2010_v24 = vpop.f32.mrf.mxu0 }
 0x218   : > { %v2880_v22 = vpop.permute.xlu1 %2879  ;;  %2174 = vst.msk [vmem:[#allocation3 + $0xd9] sm:$0xff] %vm1680_vm2, %v2086_v9  ;;  %v2089_v45 = vmax.f32 %v2019_v20, 0.0  ;;  %v2011_v26 = vadd.f32 %v6647_v35, %v2010_v24  ;;  %2843 = vrot.lane.b32.xlu0 %v6834_v21, %s7852_s26 }
 0x219   : > { %2795 = vrot.lane.b32.xlu1 %v2564_v15, %s7854_s23 }
 0x21a   : > { %2177 = vst.msk [vmem:[#allocation3 + $0xf9] sm:$0xff] %vm1680_vm2, %v2089_v45  ;;  %v2087_v31 = vmax.f32 %v2011_v26, 0.0 }
 0x21b   : > { %v6842_v32 = vpop.permute.xlu0 %2785 }
 0x21c   : > { %v6844_v33 = vpop.permute.xlu1 %2737  ;;  %2175 = vst.msk [vmem:[#allocation3 + $0xe1] sm:$0xff] %vm1680_vm2, %v2087_v31  ;;  %2701 = vrot.lane.b32.xlu0 %v6834_v21, %s7884_s3 }
 0x21d   : > { %2653 = vrot.lane.b32.xlu1 %v2564_v15, %s7880_s28  ;;  %v2543_v40 = vld [vmem:[#allocation3 + $0xf1] sm:$0xff] }
 0x21e   : > { %v2495_v44 = vld [vmem:[#allocation3 + $0xf0] sm:$0xff] }
 0x21f   : > { %v6850_v38 = vpop.permute.xlu0 %2643  ;;  %v2493_v53 = vld [vmem:[#allocation3 + $0xd8] sm:$0xff] }
 0x220   : > { %v6852_v39 = vpop.permute.xlu1 %2833  ;;  %v2541_v10 = vld [vmem:[#allocation3 + $0xd9] sm:$0xff] }
 0x221   : > { %v2544_v43 = vld [vmem:[#allocation3 + $0xf9] sm:$0xff] }
 0x222   : > { %v2496_v46 = vld [vmem:[#allocation3 + $0xf8] sm:$0xff]  ;;  %v6855_v18 = vpack.c.bf16 %v2544_v43, %v2543_v40 }
 0x223   : > { %v2736_v47 = vpop.permute.xlu0 %2735  ;;  %v6857_v48 = vpack.c.bf16 %v2496_v46, %v2495_v44  ;;  %v2494_v50 = vld [vmem:[#allocation3 + $0xe0] sm:$0xff] }
 0x224   : > { %v6859_v49 = vpop.permute.xlu1 %2691  ;;  %2943 = vrot.lane.b32.xlu0 %v6855_v18, %s7848_s25  ;;  %v6866_v55 = vpack.c.bf16 %v2494_v50, %v2493_v53  ;;  %v3041_v57 = vsel %vm3039_vm12, %v3008_v51, %v2736_v47  ;;  %v2542_v2 = vld [vmem:[#allocation3 + $0xe1] sm:$0xff] }
 0x225   : > { %2895 = vrot.lane.b32.xlu1 %v6857_v48, %s7850_s0  ;;  %v2566_v34 = vpack.c.bf16 %v2542_v2, %v2541_v10  ;;  %v2446_v12 = vld [vmem:[#allocation3 + $0xda] sm:$0xff]  ;;  %v2447_v13 = vld [vmem:[#allocation3 + $0xe2] sm:$0xff] }
 0x226   : > { %v6882_v15 = vpack.c.bf16 %v2447_v13, %v2446_v12  ;;  %v2449_v20 = vld [vmem:[#allocation3 + $0xfa] sm:$0xff]  ;;  %v2967_v12 = vsel %vm1680_vm2, %v6676_v5, %v6850_v38 }
 0x227   : > { %v2832_v54 = vpop.permute.xlu0 %2831  ;;  %v3012_v13 = vsel %vm1812_vm3, %v2967_v12, %v6859_v49 }
 0x228   : > { %v2784_v60 = vpop.permute.xlu1 %2783  ;;  %2893 = vrot.lane.b32.xlu0 %v6866_v55, %s7850_s0 }
 0x229   : > { %v3074_v61 = vsel %vm3072_vm13, %v3041_v57, %v2784_v60  ;;  %2753 = vrot.lane.b32.xlu1 %v6857_v48, %s7856_s27 }
 0x22a   : > { %v3107_v4 = vsel %vm3105_vm14, %v3074_v61, %v2832_v54 }
 0x22b   : > { %v3140_v8 = vsel %vm3138_vm15, %v3107_v4, %v2880_v22  ;;  %v2690_v30 = vpop.permute.xlu0 %2689 }
 0x22c   : > { %v3173_v11 = vsel %vm3171_vm0, %v3140_v8, %v2928_v3  ;;  %2751 = vrot.lane.b32.xlu0 %v6866_v55, %s7856_s27  ;;  %v2642_v42 = vpop.permute.xlu1 %2641 }
 0x22d   : > { %3380 = vmatmul.mubr.bf16.vlgmr.msra.gmra.mxu1 %v3173_v11  ;;  %2941 = vrot.lane.b32.xlu1 %v2566_v34, %s7848_s25  ;;  %v2964_v40 = vsel %vm1680_vm2, %v6712_v27, %v2642_v42 }
 0x22e   : > { %5324 = vmatprep.mubr.msk.bf16.mxu1 %vm1680_vm2, %v6758_v16  ;;  %v2448_v16 = vld [vmem:[#allocation3 + $0xf2] sm:$0xff]  ;;  %v3010_v46 = vsel %vm1812_vm3, %v2964_v40, %v2690_v30 }
 0x22f   : > { %v6894_v36 = vpack.c.bf16 %v2449_v20, %v2448_v16  ;;  %v3043_v27 = vsel %vm3039_vm12, %v3010_v46, %v6844_v33 }
 0x230   : > { %2847 = vrot.lane.b32.xlu0 %v6882_v15, %s7852_s26  ;;  %v3076_v53 = vsel %vm3072_vm13, %v3043_v27, %v6842_v32 }
 0x231   : > { %2799 = vrot.lane.b32.xlu1 %v2566_v34, %s7854_s23  ;;  %v5515_v14 = vpop.f32.mrf.mxu0  ;;  %v3109_v10 = vsel %vm3105_vm14, %v3076_v53, %v6852_v39 }
 0x232   : > { %v2032_v17 = vadd.f32 %v5515_v14, %v6647_v35 }
 0x233   : > { %v2023_v63 = vpop.f32.mrf.mxu0 }
 0x234   : > { %v2092_v19 = vmax.f32 %v2032_v17, 0.0  ;;  %v2024_v9 = vadd.f32 %v6647_v35, %v2023_v63  ;;  %2705 = vrot.lane.b32.xlu0 %v6882_v15, %s7884_s3 }
 0x235   : > { %2657 = vrot.lane.b32.xlu1 %v2566_v34, %s7880_s28  ;;  %v5516_v3 = vpop.f32.mrf.mxu0 }
 0x236   : > { %2180 = vst.msk [vmem:[#allocation3 + $0x121] sm:$0xff] %vm1680_vm2, %v2092_v19  ;;  %v2090_v22 = vmax.f32 %v2024_v9, 0.0  ;;  %v2035_v24 = vadd.f32 %v5516_v3, %v6647_v35  ;;  %v2932_v45 = vpop.permute.xlu0 %2931 }
 0x237   : > { %v2884_v26 = vpop.permute.xlu1 %2883  ;;  %v2026_v28 = vpop.f32.mrf.mxu0 }
 0x238   : > { %2178 = vst.msk [vmem:[#allocation3 + $0x109] sm:$0xff] %vm1680_vm2, %v2090_v22  ;;  %v2093_v31 = vmax.f32 %v2035_v24, 0.0  ;;  %v2027_v37 = vadd.f32 %v6647_v35, %v2026_v28  ;;  %2801 = vrot.lane.b32.xlu0 %v6855_v18, %s7854_s23 }
 0x239   : > { %2849 = vrot.lane.b32.xlu1 %v6894_v36, %s7852_s26 }
 0x23a   : > { %2181 = vst.msk [vmem:[#allocation3 + $0x129] sm:$0xff] %vm1680_vm2, %v2093_v31  ;;  %v2091_v41 = vmax.f32 %v2027_v37, 0.0  ;;  %v6905_v43 = vpop.permute.xlu0 %2789 }
 0x23b   : > { %v6907_v44 = vpop.permute.xlu1 %2741 }
 0x23c   : > { %2179 = vst.msk [vmem:[#allocation3 + $0x111] sm:$0xff] %vm1680_vm2, %v2091_v41 }
 0x23e   : > { %v6911_v47 = vpop.permute.xlu0 %2647 }
 0x23f   : > { %v6913_v50 = vpop.permute.xlu1 %2837  ;;  %v2497_v57 = vld [vmem:[#allocation3 + $0x108] sm:$0xff] }
 0x240   : > { %v2545_v61 = vld [vmem:[#allocation3 + $0x109] sm:$0xff] }
 0x241   : > { %v2500_v63 = vld [vmem:[#allocation3 + $0x128] sm:$0xff] }
 0x242   : > { %v2882_v51 = vpop.permute.xlu0 %2881  ;;  %v2548_v20 = vld [vmem:[#allocation3 + $0x129] sm:$0xff] }
 0x243   : > { %v6919_v54 = vpop.permute.xlu1 %2695  ;;  %v2498_v60 = vld [vmem:[#allocation3 + $0x110] sm:$0xff]  ;;  %v3142_v11 = vsel %vm3138_vm15, %v3109_v10, %v2882_v51 }
 0x244   : > { %v2546_v2 = vld [vmem:[#allocation3 + $0x111] sm:$0xff]  ;;  %v6921_v4 = vpack.c.bf16 %v2498_v60, %v2497_v57 }
 0x245   : > { %v2568_v8 = vpack.c.bf16 %v2546_v2, %v2545_v61  ;;  %v2450_v49 = vld [vmem:[#allocation3 + $0x10a] sm:$0xff]  ;;  %v2451_v17 = vld [vmem:[#allocation3 + $0x112] sm:$0xff]  ;;  %v2452_v61 = vld [vmem:[#allocation3 + $0x122] sm:$0xff] }
 0x246   : > { %2897 = vrot.lane.b32.xlu0 %v6921_v4, %s7850_s0  ;;  %v2740_v33 = vpop.permute.xlu0 %2739  ;;  %v6949_v19 = vpack.c.bf16 %v2451_v17, %v2450_v49  ;;  %v2453_v2 = vld [vmem:[#allocation3 + $0x12a] sm:$0xff] }
 0x247   : > { %2945 = vrot.lane.b32.xlu1 %v2568_v8, %s7848_s25  ;;  %v2930_v32 = vpop.permute.xlu1 %2929  ;;  %v3045_v39 = vsel %vm3039_vm12, %v3012_v13, %v2740_v33 }
 0x248   : > { %v3176_v34 = vsel %vm3171_vm0, %v3142_v11, %v2930_v32 }
 0x249   : > { %3388 = vmatmul.mubr.bf16.gmra.mxu1 %v3176_v34 }
 0x24a   : > { %5325 = vmatprep.mubr.msk.bf16.mxu1 %vm1680_vm2, %v6740_v59  ;;  %2659 = vrot.lane.b32.xlu0 %v6855_v18, %s7880_s28  ;;  %v2836_v14 = vpop.permute.xlu0 %2835  ;;  %v2499_v18 = vld [vmem:[#allocation3 + $0x120] sm:$0xff] }
 0x24b   : > { %2707 = vrot.lane.b32.xlu1 %v6894_v36, %s7884_s3  ;;  %v2788_v30 = vpop.permute.xlu1 %2787  ;;  %v6951_v9 = vpack.c.bf16 %v2500_v63, %v2499_v18 }
 0x24c   : > { %v3078_v42 = vsel %vm3072_vm13, %v3045_v39, %v2788_v30 }
 0x24d   : > { %v3111_v5 = vsel %vm3105_vm14, %v3078_v42, %v2836_v14 }
 0x24e   : > { %v3144_v38 = vsel %vm3138_vm15, %v3111_v5, %v2884_v26  ;;  %2755 = vrot.lane.b32.xlu0 %v6921_v4, %s7856_s27  ;;  %v2694_v3 = vpop.permute.xlu0 %2693  ;;  %v2547_v26 = vld [vmem:[#allocation3 + $0x121] sm:$0xff] }
 0x24f   : > { %2803 = vrot.lane.b32.xlu1 %v2568_v8, %s7854_s23  ;;  %v3179_v59 = vsel %vm3171_vm0, %v3144_v38, %v2932_v45  ;;  %v2646_v22 = vpop.permute.xlu1 %2645  ;;  %v2569_v37 = vpack.c.bf16 %v2548_v20, %v2547_v26 }
 0x250   : > { %v2970_v60 = vsel %vm1680_vm2, %v6745_v62, %v2646_v22  ;;  %v6980_v62 = vpack.c.bf16 %v2453_v2, %v2452_v61 }
 0x251   : > { %3396 = vmatmul.mubr.bf16.gmra.mxu1 %v3179_v59  ;;  %v5519_v16 = vpop.f32.mrf.mxu0  ;;  %v3014_v33 = vsel %vm1812_vm3, %v2970_v60, %v2694_v3 }
 0x252   : > { %5326 = vmatprep.mubr.msk.bf16.mxu1 %vm1680_vm2, %v6796_v52  ;;  %v2048_v24 = vadd.f32 %v5519_v16, %v6647_v35  ;;  %2851 = vrot.lane.b32.xlu0 %v6949_v19, %s7852_s26  ;;  %v3047_v12 = vsel %vm3039_vm12, %v3014_v33, %v6907_v44  ;;  %v2973_v16 = vsel %vm1680_vm2, %v6732_v56, %v6911_v47 }
 0x253   : > { %2899 = vrot.lane.b32.xlu1 %v6951_v9, %s7850_s0  ;;  %v2039_v45 = vpop.f32.mrf.mxu0  ;;  %v3080_v39 = vsel %vm3072_vm13, %v3047_v12, %v6905_v43  ;;  %v3016_v20 = vsel %vm1812_vm3, %v2973_v16, %v6919_v54 }
 0x254   : > { %v2096_v28 = vmax.f32 %v2048_v24, 0.0  ;;  %v2040_v31 = vadd.f32 %v6647_v35, %v2039_v45  ;;  %v3113_v63 = vsel %vm3105_vm14, %v3080_v39, %v6913_v50 }
 0x255   : > { %v5520_v40 = vpop.f32.mrf.mxu0 }
 0x256   : > { %2184 = vst.msk [vmem:[#allocation3 + $0x151] sm:$0xff] %vm1680_vm2, %v2096_v28  ;;  %v2094_v52 = vmax.f32 %v2040_v31, 0.0  ;;  %v2051_v41 = vadd.f32 %v5520_v40, %v6647_v35  ;;  %2947 = vrot.lane.b32.xlu0 %v2569_v37, %s7848_s25  ;;  %v2936_v46 = vpop.permute.xlu0 %2935 }
 0x257   : > { %2661 = vrot.lane.b32.xlu1 %v2568_v8, %s7880_s28  ;;  %v2888_v27 = vpop.permute.xlu1 %2887  ;;  %v2042_v51 = vpop.f32.mrf.mxu0 }
 0x258   : > { %2182 = vst.msk [vmem:[#allocation3 + $0x139] sm:$0xff] %vm1680_vm2, %v2094_v52  ;;  %v2097_v53 = vmax.f32 %v2051_v41, 0.0  ;;  %v2043_v57 = vadd.f32 %v6647_v35, %v2042_v51 }
 0x25a   : > { %2185 = vst.msk [vmem:[#allocation3 + $0x159] sm:$0xff] %vm1680_vm2, %v2097_v53  ;;  %v2095_v10 = vmax.f32 %v2043_v57, 0.0  ;;  %2709 = vrot.lane.b32.xlu0 %v6949_v19, %s7884_s3  ;;  %v6972_v11 = vpop.permute.xlu0 %2793 }
 0x25b   : > { %2757 = vrot.lane.b32.xlu1 %v6951_v9, %s7856_s27  ;;  %v6976_v8 = vpop.permute.xlu1 %2745 }
 0x25c   : > { %2183 = vst.msk [vmem:[#allocation3 + $0x141] sm:$0xff] %vm1680_vm2, %v2095_v10 }
 0x25d   : > { %v2503_v28 = vld [vmem:[#allocation3 + $0x150] sm:$0xff] }
 0x25e   : > { %2805 = vrot.lane.b32.xlu0 %v2569_v37, %s7854_s23  ;;  %v6983_v32 = vpop.permute.xlu0 %2651  ;;  %v2551_v53 = vld [vmem:[#allocation3 + $0x151] sm:$0xff] }
 0x25f   : > { %2853 = vrot.lane.b32.xlu1 %v6980_v62, %s7852_s26  ;;  %v6987_v34 = vpop.permute.xlu1 %2841  ;;  %v2501_v30 = vld [vmem:[#allocation3 + $0x138] sm:$0xff] }
 0x260   : > { %v2549_v5 = vld [vmem:[#allocation3 + $0x139] sm:$0xff] }
 0x261   : > { %v2504_v26 = vld [vmem:[#allocation3 + $0x158] sm:$0xff] }
 0x262   : > { %v2886_v13 = vpop.permute.xlu0 %2885  ;;  %v2552_v52 = vld [vmem:[#allocation3 + $0x159] sm:$0xff] }
 0x263   : > { %v6993_v14 = vpop.permute.xlu1 %2699  ;;  %v2502_v42 = vld [vmem:[#allocation3 + $0x140] sm:$0xff]  ;;  %v3146_v59 = vsel %vm3138_vm15, %v3113_v63, %v2886_v13  ;;  %v2571_v61 = vpack.c.bf16 %v2552_v52, %v2551_v53 }
 0x264   : > { %v2550_v38 = vld [vmem:[#allocation3 + $0x141] sm:$0xff]  ;;  %v6995_v49 = vpack.c.bf16 %v2502_v42, %v2501_v30 }
 0x265   : > { %v2570_v17 = vpack.c.bf16 %v2550_v38, %v2549_v5  ;;  %v2454_v45 = vld [vmem:[#allocation3 + $0x13a] sm:$0xff]  ;;  %v2455_v54 = vld [vmem:[#allocation3 + $0x142] sm:$0xff]  ;;  %v2456_v5 = vld [vmem:[#allocation3 + $0x152] sm:$0xff] }
 0x266   : > { %2901 = vrot.lane.b32.xlu0 %v6995_v49, %s7850_s0  ;;  %v2744_v44 = vpop.permute.xlu0 %2743  ;;  %v7022_v31 = vpack.c.bf16 %v2455_v54, %v2454_v45  ;;  %v2457_v38 = vld [vmem:[#allocation3 + $0x15a] sm:$0xff] }
 0x267   : > { %2949 = vrot.lane.b32.xlu1 %v2570_v17, %s7848_s25  ;;  %v2934_v43 = vpop.permute.xlu1 %2933  ;;  %v3049_v50 = vsel %vm3039_vm12, %v3016_v20, %v2744_v44 }
 0x268   : > { %v3182_v18 = vsel %vm3171_vm0, %v3146_v59, %v2934_v43 }
 0x269   : > { %3404 = vmatmul.mubr.bf16.gmra.mxu1 %v3182_v18 }
 0x26a   : > { %5327 = vmatprep.mubr.msk.bf16.mxu1 %vm1680_vm2, %v6778_v25  ;;  %2663 = vrot.lane.b32.xlu0 %v2569_v37, %s7880_s28  ;;  %v2840_v3 = vpop.permute.xlu0 %2839  ;;  %v7024_v37 = vpack.c.bf16 %v2504_v26, %v2503_v28  ;;  %v2979_v28 = vsel %vm1680_vm2, %v6770_v23, %v6983_v32 }
 0x26b   : > { %2711 = vrot.lane.b32.xlu1 %v6980_v62, %s7884_s3  ;;  %v2792_v22 = vpop.permute.xlu1 %2791 }
 0x26c   : > { %v3082_v24 = vsel %vm3072_vm13, %v3049_v50, %v2792_v22 }
 0x26d   : > { %v3115_v56 = vsel %vm3105_vm14, %v3082_v24, %v2840_v3 }
 0x26e   : > { %v3148_v47 = vsel %vm3138_vm15, %v3115_v56, %v2888_v27  ;;  %2759 = vrot.lane.b32.xlu0 %v6995_v49, %s7856_s27  ;;  %v2698_v41 = vpop.permute.xlu0 %2697 }
 0x26f   : > { %2807 = vrot.lane.b32.xlu1 %v2570_v17, %s7854_s23  ;;  %v3185_v25 = vsel %vm3171_vm0, %v3148_v47, %v2936_v46  ;;  %v2650_v27 = vpop.permute.xlu1 %2649 }
 0x270   : > { %v2976_v42 = vsel %vm1680_vm2, %v6783_v29, %v2650_v27 }
 0x271   : > { %3412 = vmatmul.mubr.bf16.gmra.mxu1 %v3185_v25  ;;  %v5523_v40 = vpop.f32.mrf.mxu0  ;;  %v3018_v44 = vsel %vm1812_vm3, %v2976_v42, %v2698_v41 }
 0x272   : > { %5328 = vmatprep.mubr.msk.bf16.mxu1 %vm1680_vm2, %v6834_v21  ;;  %v2064_v51 = vadd.f32 %v5523_v40, %v6647_v35  ;;  %2855 = vrot.lane.b32.xlu0 %v7022_v31, %s7852_s26  ;;  %v3051_v18 = vsel %vm3039_vm12, %v3018_v44, %v6976_v8  ;;  %v3020_v40 = vsel %vm1812_vm3, %v2979_v28, %v6993_v14  ;;  %v2509_v44 = vld [vmem:[#allocation3 + $0x198] sm:$0xff] }
 0x273   : > { %2903 = vrot.lane.b32.xlu1 %v7024_v37, %s7850_s0  ;;  %v2055_v46 = vpop.f32.mrf.mxu0  ;;  %v3084_v20 = vsel %vm3072_vm13, %v3051_v18, %v6972_v11  ;;  %v2510_v18 = vld [vmem:[#allocation3 + $0x1a0] sm:$0xff] }
 0x274   : > { %v2100_v57 = vmax.f32 %v2064_v51, 0.0  ;;  %v2056_v60 = vadd.f32 %v6647_v35, %v2055_v46  ;;  %v3117_v54 = vsel %vm3105_vm14, %v3084_v20, %v6987_v34  ;;  %v2557_v20 = vld [vmem:[#allocation3 + $0x199] sm:$0xff] }
 0x275   : > { %v5524_v2 = vpop.f32.mrf.mxu0 }
 0x276   : > { %2188 = vst.msk [vmem:[#allocation3 + $0x181] sm:$0xff] %vm1680_vm2, %v2100_v57  ;;  %v2098_v21 = vmax.f32 %v2056_v60, 0.0  ;;  %v2067_v10 = vadd.f32 %v5524_v2, %v6647_v35  ;;  %2951 = vrot.lane.b32.xlu0 %v2571_v61, %s7848_s25  ;;  %v2940_v33 = vpop.permute.xlu0 %2939 }
 0x277   : > { %2665 = vrot.lane.b32.xlu1 %v2570_v17, %s7880_s28  ;;  %v2892_v12 = vpop.permute.xlu1 %2891  ;;  %v2058_v13 = vpop.f32.mrf.mxu0 }
 0x278   : > { %2186 = vst.msk [vmem:[#allocation3 + $0x169] sm:$0xff] %vm1680_vm2, %v2098_v21  ;;  %v2101_v39 = vmax.f32 %v2067_v10, 0.0  ;;  %v2059_v30 = vadd.f32 %v6647_v35, %v2058_v13  ;;  %v7051_v35 = vpack.c.bf16 %v2457_v38, %v2456_v5 }
 0x27a   : > { %2189 = vst.msk [vmem:[#allocation3 + $0x189] sm:$0xff] %vm1680_vm2, %v2101_v39  ;;  %v2099_v63 = vmax.f32 %v2059_v30, 0.0  ;;  %2713 = vrot.lane.b32.xlu0 %v7022_v31, %s7884_s3  ;;  %v7045_v59 = vpop.permute.xlu0 %2797 }
 0x27b   : > { %2761 = vrot.lane.b32.xlu1 %v7024_v37, %s7856_s27  ;;  %v2750_v17 = vpop.permute.xlu1 %2749 }
 0x27c   : > { %2187 = vst.msk [vmem:[#allocation3 + $0x171] sm:$0xff] %vm1680_vm2, %v2099_v63 }
 0x27d   : > { %v2507_v57 = vld [vmem:[#allocation3 + $0x180] sm:$0xff] }
 0x27e   : > { %2809 = vrot.lane.b32.xlu0 %v2571_v61, %s7854_s23  ;;  %v7054_v29 = vpop.permute.xlu0 %2655 }
 0x27f   : > { %2857 = vrot.lane.b32.xlu1 %v7051_v35, %s7852_s26  ;;  %v7058_v43 = vpop.permute.xlu1 %2845  ;;  %v2505_v3 = vld [vmem:[#allocation3 + $0x168] sm:$0xff] }
 0x280   : > { %v2553_v24 = vld [vmem:[#allocation3 + $0x169] sm:$0xff] }
 0x281   : > { %v2508_v46 = vld [vmem:[#allocation3 + $0x188] sm:$0xff] }
 0x282   : > { %v2890_v16 = vpop.permute.xlu0 %2889  ;;  %v2556_v2 = vld [vmem:[#allocation3 + $0x189] sm:$0xff] }
 0x283   : > { %v7064_v50 = vpop.permute.xlu1 %2703  ;;  %v2506_v22 = vld [vmem:[#allocation3 + $0x170] sm:$0xff]  ;;  %v3150_v26 = vsel %vm3138_vm15, %v3117_v54, %v2890_v16  ;;  %v2460_v42 = vld [vmem:[#allocation3 + $0x182] sm:$0xff] }
 0x284   : > { %v2554_v56 = vld [vmem:[#allocation3 + $0x171] sm:$0xff]  ;;  %v7066_v47 = vpack.c.bf16 %v2506_v22, %v2505_v3  ;;  %v2558_v3 = vld [vmem:[#allocation3 + $0x1a1] sm:$0xff] }
 0x285   : > { %v2572_v45 = vpack.c.bf16 %v2554_v56, %v2553_v24  ;;  %v2458_v51 = vld [vmem:[#allocation3 + $0x16a] sm:$0xff]  ;;  %v2459_v14 = vld [vmem:[#allocation3 + $0x172] sm:$0xff]  ;;  %v2526_v24 = vpack.c.bf16 %v2510_v18, %v2509_v44 }
 0x286   : > { %2905 = vrot.lane.b32.xlu0 %v7066_v47, %s7850_s0  ;;  %v2748_v8 = vpop.permute.xlu0 %2747  ;;  %v7093_v60 = vpack.c.bf16 %v2459_v14, %v2458_v51  ;;  %v2461_v5 = vld [vmem:[#allocation3 + $0x18a] sm:$0xff] }
 0x287   : > { %2953 = vrot.lane.b32.xlu1 %v2572_v45, %s7848_s25  ;;  %v2938_v11 = vpop.permute.xlu1 %2937  ;;  %v3053_v34 = vsel %vm3039_vm12, %v3020_v40, %v2748_v8  ;;  %v7111_v16 = vpack.c.bf16 %v2461_v5, %v2460_v42 }
 0x288   : > { %v3188_v25 = vsel %vm3171_vm0, %v3150_v26, %v2938_v11  ;;  %v2985_v26 = vsel %vm1680_vm2, %v6808_v58, %v7054_v29 }
 0x289   : > { %3420 = vmatmul.mubr.bf16.gmra.mxu1 %v3188_v25 }
 0x28a   : > { %5329 = vmatprep.mubr.msk.bf16.mxu1 %vm1680_vm2, %v6816_v1  ;;  %2667 = vrot.lane.b32.xlu0 %v2571_v61, %s7880_s28  ;;  %v2844_v52 = vpop.permute.xlu0 %2843  ;;  %v2525_v61 = vpack.c.bf16 %v2508_v46, %v2507_v57 }
 0x28b   : > { %2715 = vrot.lane.b32.xlu1 %v7051_v35, %s7884_s3  ;;  %v2796_v41 = vpop.permute.xlu1 %2795 }
 0x28c   : > { %v3086_v27 = vsel %vm3072_vm13, %v3053_v34, %v2796_v41 }
 0x28d   : > { %v3119_v23 = vsel %vm3105_vm14, %v3086_v27, %v2844_v52 }
 0x28e   : > { %v3152_v32 = vsel %vm3138_vm15, %v3119_v23, %v2892_v12  ;;  %2763 = vrot.lane.b32.xlu0 %v7066_v47, %s7856_s27  ;;  %v2702_v21 = vpop.permute.xlu0 %2701 }
 0x28f   : > { %2811 = vrot.lane.b32.xlu1 %v2572_v45, %s7854_s23  ;;  %v3191_v1 = vsel %vm3171_vm0, %v3152_v32, %v2940_v33  ;;  %v2654_v53 = vpop.permute.xlu1 %2653  ;;  %v2555_v33 = vld [vmem:[#allocation3 + $0x181] sm:$0xff] }
 0x290   : > { %v2982_v10 = vsel %vm1680_vm2, %v6821_v6, %v2654_v53  ;;  %v2573_v12 = vpack.c.bf16 %v2556_v2, %v2555_v33 }
 0x291   : > { %3428 = vmatmul.mubr.bf16.gmra.mxu1 %v3191_v1  ;;  %v3022_v13 = vsel %vm1812_vm3, %v2982_v10, %v2702_v21 }
 0x292   : > { %5330 = vmatprep.mubr.msk.bf16.mxu1 %vm1680_vm2, %v6882_v15  ;;  %2859 = vrot.lane.b32.xlu0 %v7093_v60, %s7852_s26  ;;  %v3055_v30 = vsel %vm3039_vm12, %v3022_v13, %v2750_v17 }
 0x293   : > { %2907 = vrot.lane.b32.xlu1 %v2525_v61, %s7850_s0  ;;  %v3088_v63 = vsel %vm3072_vm13, %v3055_v30, %v7045_v59  ;;  %v2574_v59 = vpack.c.bf16 %v2558_v3, %v2557_v20 }
 0x294   : > { %v3121_v17 = vsel %vm3105_vm14, %v3088_v63, %v7058_v43  ;;  %v3024_v43 = vsel %vm1812_vm3, %v2985_v26, %v7064_v50 }
 0x296   : > { %2955 = vrot.lane.b32.xlu0 %v2573_v12, %s7848_s25  ;;  %v2944_v39 = vpop.permute.xlu0 %2943 }
 0x297   : > { %2669 = vrot.lane.b32.xlu1 %v2572_v45, %s7880_s28  ;;  %v2896_v15 = vpop.permute.xlu1 %2895 }
 0x29a   : > { %2717 = vrot.lane.b32.xlu0 %v7093_v60, %s7884_s3  ;;  %v2894_v6 = vpop.permute.xlu0 %2893 }
 0x29b   : > { %2765 = vrot.lane.b32.xlu1 %v2525_v61, %s7856_s27  ;;  %v2754_v38 = vpop.permute.xlu1 %2753  ;;  %v3154_v56 = vsel %vm3138_vm15, %v3121_v17, %v2894_v6 }
 0x29e   : > { %2813 = vrot.lane.b32.xlu0 %v2573_v12, %s7854_s23  ;;  %v2752_v22 = vpop.permute.xlu0 %2751 }
 0x29f   : > { %2861 = vrot.lane.b32.xlu1 %v7111_v16, %s7852_s26  ;;  %v2942_v45 = vpop.permute.xlu1 %2941  ;;  %v3057_v11 = vsel %vm3039_vm12, %v3024_v43, %v2752_v22  ;;  %s7889_s26 = smov 80  }
 0x2a0   : > { %v3194_v54 = vsel %vm3171_vm0, %v3154_v56, %v2942_v45 }
 0x2a1   : > { %3436 = vmatmul.mubr.bf16.gmra.mxu1 %v3194_v54 }
 0x2a2   : > { %5331 = vmatprep.mubr.msk.bf16.mxu1 %vm1680_vm2, %v6894_v36  ;;  %2909 = vrot.lane.b32.xlu0 %v2526_v24, %s7850_s0  ;;  %v2848_v8 = vpop.permute.xlu0 %2847  ;;  %s7887_s0 = sld [smem:[#allocation20_spill]] }
 0x2a3   : > { %v2800_v25 = vpop.permute.xlu1 %2799  ;;  %2957 = vrot.lane.b32.xlu1 %v2574_v59, %s7848_s25 }
 0x2a4   : > { %v3090_v28 = vsel %vm3072_vm13, %v3057_v11, %v2800_v25 }
 0x2a5   : > { %v3123_v40 = vsel %vm3105_vm14, %v3090_v28, %v2848_v8 }
 0x2a6   : > { %v3156_v58 = vsel %vm3138_vm15, %v3123_v40, %v2896_v15  ;;  %v2706_v36 = vpop.permute.xlu0 %2705 }
 0x2a7   : > { %v3197_v29 = vsel %vm3171_vm0, %v3156_v58, %v2944_v39  ;;  %v2658_v50 = vpop.permute.xlu1 %2657 }
 0x2a8   : > { %v2988_v34 = vsel %vm1680_vm2, %v6866_v55, %v2658_v50 }
 0x2a9   : > { %3444 = vmatmul.mubr.bf16.gmra.mxu1 %v3197_v29  ;;  %v3026_v52 = vsel %vm1812_vm3, %v2988_v34, %v2706_v36 }
 0x2aa   : > { %5332 = vmatprep.mubr.msk.bf16.mxu1 %vm1680_vm2, %v6949_v19  ;;  %v2802_v41 = vpop.permute.xlu0 %2801  ;;  %v3059_v27 = vsel %vm3039_vm12, %v3026_v52, %v2754_v38 }
 0x2ab   : > { %v2850_v23 = vpop.permute.xlu1 %2849  ;;  %v3092_v32 = vsel %vm3072_vm13, %v3059_v27, %v2802_v41 }
 0x2ac   : > { %v3125_v51 = vsel %vm3105_vm14, %v3092_v32, %v2850_v23 }
 0x2b8   : > { %v2898_v14 = vpop.permute.xlu0 %2897 }
 0x2b9   : > { %v2946_v46 = vpop.permute.xlu1 %2945  ;;  %v3158_v1 = vsel %vm3138_vm15, %v3125_v51, %v2898_v14 }
 0x2ba   : > { %v3200_v19 = vsel %vm3171_vm0, %v3158_v1, %v2946_v46 }
 0x2bb   : > { %3452 = vmatmul.mubr.bf16.gmra.mxu1 %v3200_v19 }
 0x2bc   : > { %v2660_v53 = vpop.permute.xlu0 %2659  ;;  %5333 = vmatprep.mubr.msk.bf16.mxu1 %vm1680_vm2, %v6980_v62 }
 0x2bd   : > { %v2708_v57 = vpop.permute.xlu1 %2707  ;;  %v2991_v55 = vsel %vm1680_vm2, %v6857_v48, %v2660_v53 }
 0x2be   : > { %v3028_v61 = vsel %vm1812_vm3, %v2991_v55, %v2708_v57 }
 0x2c0   : > { %v2756_v2 = vpop.permute.xlu0 %2755 }
 0x2c1   : > { %v2804_v21 = vpop.permute.xlu1 %2803  ;;  %v3061_v10 = vsel %vm3039_vm12, %v3028_v61, %v2756_v2 }
 0x2c2   : > { %v3094_v33 = vsel %vm3072_vm13, %v3061_v10, %v2804_v21 }
 0x2c4   : > { %v2852_v12 = vpop.permute.xlu0 %2851 }
 0x2c5   : > { %v2900_v13 = vpop.permute.xlu1 %2899  ;;  %v3127_v39 = vsel %vm3105_vm14, %v3094_v33, %v2852_v12  ;;  %v7193_v12 = vld [vmem:[%s7887_s0] ss:$0 sm:$0xff]  ;;  %s7893_s0 = smov 64  }
 0x2c6   : > { %v3160_v15 = vsel %vm3138_vm15, %v3127_v39, %v2900_v13 }
 0x2c8   : > { %v2948_v30 = vpop.permute.xlu0 %2947 }
 0x2c9   : > { %v2662_v42 = vpop.permute.xlu1 %2661  ;;  %v3203_v62 = vsel %vm3171_vm0, %v3160_v15, %v2948_v30  ;;  %v2605_v30 = vld [vmem:[#allocation3 + $0x19a] sm:$0xff] }
 0x2ca   : > { %3460 = vmatmul.mubr.bf16.gmra.mxu1 %v3203_v62  ;;  %v2994_v6 = vsel %vm1680_vm2, %v6921_v4, %v2662_v42 }
 0x2cb   : > { %5334 = vmatprep.mubr.msk.bf16.mxu1 %vm1680_vm2, %v7022_v31 }
 0x2cc   : > { %v2710_v48 = vpop.permute.xlu0 %2709 }
 0x2cd   : > { %v2758_v5 = vpop.permute.xlu1 %2757  ;;  %v3030_v38 = vsel %vm1812_vm3, %v2994_v6, %v2710_v48 }
 0x2ce   : > { %v3063_v44 = vsel %vm3039_vm12, %v3030_v38, %v2758_v5 }
 0x2d0   : > { %v2806_v63 = vpop.permute.xlu0 %2805 }
 0x2d1   : > { %v2854_v18 = vpop.permute.xlu1 %2853  ;;  %v3096_v20 = vsel %vm3072_vm13, %v3063_v44, %v2806_v63 }
 0x2d2   : > { %v3129_v3 = vsel %vm3105_vm14, %v3096_v20, %v2854_v18 }
 0x2d8   : > { %v2902_v17 = vpop.permute.xlu0 %2901 }
 0x2d9   : > { %v2950_v22 = vpop.permute.xlu1 %2949  ;;  %v3162_v24 = vsel %vm3138_vm15, %v3129_v3, %v2902_v17 }
 0x2da   : > { %v3206_v31 = vsel %vm3171_vm0, %v3162_v24, %v2950_v22 }
 0x2db   : > { %3468 = vmatmul.mubr.bf16.gmra.mxu1 %v3206_v31 }
 0x2dc   : > { %v2664_v56 = vpop.permute.xlu0 %2663  ;;  %5335 = vmatprep.mubr.msk.bf16.mxu1 %vm1680_vm2, %v7051_v35 }
 0x2dd   : > { %v2712_v45 = vpop.permute.xlu1 %2711  ;;  %v2997_v4 = vsel %vm1680_vm2, %v6951_v9, %v2664_v56 }
 0x2de   : > { %v3032_v59 = vsel %vm1812_vm3, %v2997_v4, %v2712_v45 }
 0x2e0   : > { %v2760_v54 = vpop.permute.xlu0 %2759 }
 0x2e1   : > { %v2808_v26 = vpop.permute.xlu1 %2807  ;;  %v3065_v43 = vsel %vm3039_vm12, %v3032_v59, %v2760_v54 }
 0x2e2   : > { %v3098_v8 = vsel %vm3072_vm13, %v3065_v43, %v2808_v26 }
 0x2e4   : > { %v2856_v11 = vpop.permute.xlu0 %2855 }
 0x2e5   : > { %v2904_v25 = vpop.permute.xlu1 %2903  ;;  %v3131_v28 = vsel %vm3105_vm14, %v3098_v8, %v2856_v11 }
 0x2e6   : > { %v3164_v40 = vsel %vm3138_vm15, %v3131_v28, %v2904_v25 }
 0x2e8   : > { %v2952_v58 = vpop.permute.xlu0 %2951 }
 0x2e9   : > { %v2666_v29 = vpop.permute.xlu1 %2665  ;;  %v3209_v35 = vsel %vm3171_vm0, %v3164_v40, %v2952_v58 }
 0x2ea   : > { %3476 = vmatmul.mubr.bf16.gmra.mxu1 %v3209_v35  ;;  %v3000_v52 = vsel %vm1680_vm2, %v6995_v49, %v2666_v29 }
 0x2eb   : > { %5336 = vmatprep.mubr.msk.bf16.mxu1 %vm1680_vm2, %v7093_v60 }
 0x2ec   : > { %v2714_v50 = vpop.permute.xlu0 %2713 }
 0x2ed   : > { %v3381_v9 = vpop.f32.mrf.mxu1  ;;  %v2762_v36 = vpop.permute.xlu1 %2761  ;;  %v3034_v27 = vsel %vm1812_vm3, %v3000_v52, %v2714_v50 }
 0x2ee   : > { %v3067_v51 = vsel %vm3039_vm12, %v3034_v27, %v2762_v36 }
 0x2ef   : > { %v3383_v34 = vpop.f32.mrf.mxu1 }
 0x2f0   : > { %v2810_v23 = vpop.permute.xlu0 %2809 }
 0x2f1   : > { %v3384_v41 = vpop.f32.mrf.mxu1  ;;  %v2858_v14 = vpop.permute.xlu1 %2857  ;;  %v3100_v46 = vsel %vm3072_vm13, %v3067_v51, %v2810_v23 }
 0x2f2   : > { %v3133_v1 = vsel %vm3105_vm14, %v3100_v46, %v2858_v14  ;;  %v3385_v18 = vadd.f32 %v7193_v12, %v3384_v41 }
 0x2f3   : > { %v3386_v32 = vpop.f32.mrf.mxu1 }
 0x2f4   : > { %v3509_v59 = vmax.f32 %v3385_v18, 0.0  ;;  %v5661_v18 = vld [vmem:[%s7888_s5 + $0x38] sm:$0xff]  }
 0x2f5   : > { %4021 = vmatpush1.bf16.msra.mxu0 %v5661_v18 }
 0x2f6   : > { %v3543_v29 = vsel %vm1680_vm2, %v3509_v59, -inf  ;;  %4022 = vmatprep.subr.bf16.mxu0 %v5769_v7 }
 0x2f8   : > { %v2906_v60 = vpop.permute.xlu0 %2905 }
 0x2f9   : > { %v2954_v19 = vpop.permute.xlu1 %2953  ;;  %v3166_v53 = vsel %vm3138_vm15, %v3133_v1, %v2906_v60  ;;  %v3696_v1 = vld [vmem:[#allocation4 + $0x2] sm:$0xff] }
 0x2fa   : > { %v3212_v57 = vsel %vm3171_vm0, %v3166_v53, %v2954_v19  ;;  %v3684_v60 = vld [vmem:[#allocation4 + $0x1] sm:$0xff] }
 0x2fb   : > { %3484 = vmatmul.mubr.bf16.gmra.mxu1 %v3212_v57 }
 0x2fc   : > { %v2668_v49 = vpop.permute.xlu0 %2667  ;;  %5337 = vmatprep.mubr.msk.bf16.mxu1 %vm1680_vm2, %v7111_v16  ;;  %v2606_v16 = vld [vmem:[#allocation3 + $0x1a2] sm:$0xff] }
 0x2fd   : > { %v2716_v55 = vpop.permute.xlu1 %2715  ;;  %v3003_v61 = vsel %vm1680_vm2, %v7024_v37, %v2668_v49  ;;  %v3382_v37 = vadd.f32 %v7193_v12, %v3381_v9  ;;  %v2622_v62 = vpack.c.bf16 %v2606_v16, %v2605_v30 }
 0x2fe   : > { %v3036_v2 = vsel %vm1812_vm3, %v3003_v61, %v2716_v55 }
 0x2ff   : > { %v3508_v44 = vmax.f32 %v3382_v37, 0.0 }
 0x300   : > { %v2764_v21 = vpop.permute.xlu0 %2763 }
 0x301   : > { %v2812_v10 = vpop.permute.xlu1 %2811  ;;  %v3069_v33 = vsel %vm3039_vm12, %v3036_v2, %v2764_v21  ;;  %v3540_v4 = vsel %vm1680_vm2, %v3508_v44, -inf }
 0x302   : > { %v3102_v13 = vsel %vm3072_vm13, %v3069_v33, %v2812_v10 }
 0x304   : > { %v2860_v39 = vpop.permute.xlu0 %2859 }
 0x305   : > { %v2908_v15 = vpop.permute.xlu1 %2907  ;;  %v3135_v42 = vsel %vm3105_vm14, %v3102_v13, %v2860_v39 }
 0x306   : > { %v3168_v48 = vsel %vm3138_vm15, %v3135_v42, %v2908_v15 }
 0x308   : > { %v2956_v5 = vpop.permute.xlu0 %2955 }
 0x309   : > { %v2670_v6 = vpop.permute.xlu1 %2669  ;;  %v3389_v38 = vpop.f32.mrf.mxu1  ;;  %v3215_v63 = vsel %vm3171_vm0, %v3168_v48, %v2956_v5 }
 0x30a   : > { %v3390_v20 = vadd.f32 %v7193_v12, %v3389_v38  ;;  %3492 = vmatmul.mubr.bf16.gmra.mxu1 %v3215_v63  ;;  %v3006_v17 = vsel %vm1680_vm2, %v7066_v47, %v2670_v6 }
 0x30b   : > { %v3391_v3 = vpop.f32.mrf.mxu1  ;;  %5338 = vmatprep.mubr.msk.bf16.mxu1 %vm1680_vm2, %v2622_v62 }
 0x30c   : > { %v3510_v22 = vmax.f32 %v3390_v20, 0.0  ;;  %v2718_v24 = vpop.permute.xlu0 %2717 }
 0x30d   : > { %v2766_v31 = vpop.permute.xlu1 %2765  ;;  %v3038_v56 = vsel %vm1812_vm3, %v3006_v17, %v2718_v24  ;;  %v3392_v45 = vpop.f32.mrf.mxu1 }
 0x30e   : > { %v3541_v54 = vsel %vm1680_vm2, %v3510_v22, -inf  ;;  %v3393_v26 = vadd.f32 %v7193_v12, %v3392_v45  ;;  %v3071_v11 = vsel %vm3039_vm12, %v3038_v56, %v2766_v31  ;;  %v5662_v31 = vld [vmem:[%s7888_s5 + $0x30] sm:$0xff]   ;;  %v5663_v56 = vld [vmem:[%s7888_s5 + $0x28] sm:$0xff]  }
 0x30f   : > { %v3542_v43 = vmax.f32 %v3540_v4, %v3541_v54  ;;  %v3394_v8 = vpop.f32.mrf.mxu1  ;;  %4023 = vmatpush1.bf16.msra.mxu0 %v5662_v31 }
 0x310   : > { %v3511_v25 = vmax.f32 %v3393_v26, 0.0  ;;  %v2814_v28 = vpop.permute.xlu0 %2813  ;;  %4024 = vmatprep.subr.bf16.mxu0 %v5769_v7  ;;  %v5664_v8 = vld [vmem:[%s7888_s5 + $0x20] sm:$0xff]  }
 0x311   : > { %v2862_v47 = vpop.permute.xlu1 %2861  ;;  %3588 = vst.msk [vmem:[#allocation6] sm:$0xff] %vm1680_vm2, %v3542_v43  ;;  %v3104_v40 = vsel %vm3072_vm13, %v3071_v11, %v2814_v28  ;;  %v3397_v58 = vpop.f32.mrf.mxu1 }
 0x312   : > { %v3544_v35 = vsel %vm1680_vm2, %v3511_v25, -inf  ;;  %v3137_v36 = vsel %vm3105_vm14, %v3104_v40, %v2862_v47  ;;  %v3398_v19 = vadd.f32 %v7193_v12, %v3397_v58  ;;  %v5665_v58 = vld [vmem:[%s7888_s5 + $0x18] sm:$0xff]  }
 0x313   : > { %v3545_v9 = vmax.f32 %v3543_v29, %v3544_v35  ;;  %v3399_v50 = vpop.f32.mrf.mxu1  ;;  %4025 = vmatpush1.bf16.msra.mxu0 %v5663_v56 }
 0x314   : > { %v2910_v34 = vpop.permute.xlu0 %2909  ;;  %v3512_v2 = vmax.f32 %v3398_v19, 0.0  ;;  %4026 = vmatprep.subr.bf16.mxu0 %v5769_v7 }
 0x315   : > { %3589 = vst.msk [vmem:[#allocation6 + $0x8] sm:$0xff] %vm1680_vm2, %v3545_v9  ;;  %v3170_v52 = vsel %vm3138_vm15, %v3137_v36, %v2910_v34  ;;  %v3400_v41 = vpop.f32.mrf.mxu1  ;;  %v2958_v27 = vpop.permute.xlu1 %2957 }
 0x316   : > { %v3218_v23 = vsel %vm3171_vm0, %v3170_v52, %v2958_v27  ;;  %v3401_v21 = vadd.f32 %v7193_v12, %v3400_v41  ;;  %v3546_v15 = vsel %vm1680_vm2, %v3512_v2, -inf  ;;  %v5666_v27 = vld [vmem:[%s7888_s5 + $0x10] sm:$0xff]  }
 0x317   : > { %v3402_v32 = vpop.f32.mrf.mxu1  ;;  %3500 = vmatmul.mubr.bf16.gmra.mxu1 %v3218_v23  ;;  %4027 = vmatpush1.bf16.msra.mxu0 %v5664_v8 }
 0x318   : > { %v3513_v30 = vmax.f32 %v3401_v21, 0.0  ;;  %4028 = vmatprep.subr.bf16.mxu0 %v5769_v7 }
 0x31a   : > { %v3549_v6 = vsel %vm1680_vm2, %v3513_v30, -inf }
 0x31b   : > { %4029 = vmatpush1.bf16.msra.mxu0 %v5665_v58 }
 0x31c   : > { %v3604_v51 = vld [vmem:[#allocation6] ss:$2 sm:$0xff]  ;;  %v3620_v14 = vld [vmem:[#allocation6 + $0x1] ss:$2 sm:$0xff]  ;;  %4030 = vmatprep.subr.bf16.mxu0 %v5769_v7 }
 0x31d   : > { %v3635_v46 = vmax.f32 %v3604_v51, %v3620_v14 }
 0x31f   : > { %3664 = vst.msk [vmem:[#allocation4 + $0x11] sm:$0xff] %vm1680_vm2, %v3635_v46  ;;  %4031 = vmatpush1.bf16.msra.mxu0 %v5666_v27 }
 0x320   : > { %4032 = vmatprep.subr.bf16.mxu0 %v5769_v7 }
 0x326   : > { %v7220_v53 = vld [vmem:[#allocation4 + $0x12] sm:$0xff] }
 0x327   : > { %v3685_v57 = vld [vmem:[#allocation4 + $0x11] sm:$0xff]  ;;  %v3704_v49 = vpack.c.bf16 %v7220_v53, %v3696_v1 }
 0x328   : > { %v3692_v55 = vpack.c.bf16 %v3685_v57, %v3684_v60  ;;  %v7250_v59 = vld [vmem:[#allocation4 + $0x10] sm:$0xff]  ;;  %v5667_v60 = vld [vmem:[%s7888_s5 + $0x8] sm:$0xff]  }
 0x329   : > { %v3405_v61 = vpop.f32.mrf.mxu1  ;;  %3797 = vrot.lane.b32.xlu1 %v3704_v49, %s7884_s3  ;;  %4033 = vmatpush1.bf16.msra.mxu0 %v5667_v60  ;;  %v5668_v49 = vld [vmem:[%s7888_s5] sm:$0xff]  }
 0x32a   : > { %v3406_v10 = vadd.f32 %v7193_v12, %v3405_v61  ;;  %3785 = vrot.lane.b32.xlu0 %v3692_v55, %s7880_s28  ;;  %4034 = vmatprep.subr.bf16.mxu0 %v5769_v7  ;;  %v5669_v61 = vld [vmem:[%s7888_s5 + $0x40] sm:$0xff]  }
 0x32b   : > { %v3407_v33 = vpop.f32.mrf.mxu1 }
 0x32c   : > { %v3514_v13 = vmax.f32 %v3406_v10, 0.0 }
 0x32d   : > { %v3408_v39 = vpop.f32.mrf.mxu1  ;;  %4035 = vmatpush1.bf16.msra.mxu0 %v5668_v49 }
 0x32e   : > { %v3547_v16 = vsel %vm1680_vm2, %v3514_v13, -inf  ;;  %v3409_v42 = vadd.f32 %v7193_v12, %v3408_v39  ;;  %4050 = vmatprep.subr.bf16.mxu0 %v5769_v7 }
 0x32f   : > { %v3548_v37 = vmax.f32 %v3546_v15, %v3547_v16  ;;  %v3410_v62 = vpop.f32.mrf.mxu1 }
 0x330   : > { %v3515_v48 = vmax.f32 %v3409_v42, 0.0 }
 0x331   : > { %3590 = vst.msk [vmem:[#allocation6 + $0x10] sm:$0xff] %vm1680_vm2, %v3548_v37  ;;  %v3413_v5 = vpop.f32.mrf.mxu1  ;;  %4051 = vmatpush2.bf16.msra.mxu0 %v5669_v61 }
 0x332   : > { %v3550_v38 = vsel %vm1680_vm2, %v3515_v48, -inf  ;;  %v3414_v45 = vadd.f32 %v7193_v12, %v3413_v5 }
 0x333   : > { %v3551_v63 = vmax.f32 %v3549_v6, %v3550_v38  ;;  %v3415_v44 = vpop.f32.mrf.mxu1 }
 0x334   : > { %v3516_v28 = vmax.f32 %v3414_v45, 0.0 }
 0x335   : > { %3591 = vst.msk [vmem:[#allocation6 + $0x18] sm:$0xff] %vm1680_vm2, %v3551_v63  ;;  %v3416_v20 = vpop.f32.mrf.mxu1 }
 0x336   : > { %v3417_v47 = vadd.f32 %v7193_v12, %v3416_v20  ;;  %v3552_v36 = vsel %vm1680_vm2, %v3516_v28, -inf }
 0x337   : > { %v3418_v3 = vpop.f32.mrf.mxu1 }
 0x338   : > { %v3517_v34 = vmax.f32 %v3417_v47, 0.0 }
 0x33a   : > { %v3555_v46 = vsel %vm1680_vm2, %v3517_v34, -inf }
 0x33c   : > { %v3606_v17 = vld [vmem:[#allocation6 + $0x10] ss:$2 sm:$0xff]  ;;  %v3622_v22 = vld [vmem:[#allocation6 + $0x11] ss:$2 sm:$0xff] }
 0x33d   : > { %v3636_v24 = vmax.f32 %v3606_v17, %v3622_v22 }
 0x33f   : > { %3665 = vst.msk [vmem:[#allocation4 + $0x21] sm:$0xff] %vm1680_vm2, %v3636_v24 }
 0x346   : > { %v7248_v4 = vld [vmem:[#allocation4 + $0x21] sm:$0xff] }
 0x347   : > { %v7252_v54 = vld [vmem:[#allocation4 + $0x20] sm:$0xff]  ;;  %v3728_v26 = vpack.c.bf16 %v7248_v4, %v3685_v57 }
 0x348   : > { %v3716_v43 = vpack.c.bf16 %v7252_v54, %v7250_v59  ;;  %v7260_v11 = vld [vmem:[#allocation4 + $0x22] sm:$0xff] }
 0x349   : > { %v3421_v25 = vpop.f32.mrf.mxu1  ;;  %3821 = vrot.lane.b32.xlu1 %v3728_v26, %s7854_s23  ;;  %v3740_v35 = vpack.c.bf16 %v7260_v11, %v7220_v53  ;;  %s7891_s23 = smov 112  }
 0x34a   : > { %3809 = vrot.lane.b32.xlu0 %v3716_v43, %s7856_s27  ;;  %v3422_v40 = vadd.f32 %v7193_v12, %v3421_v25  ;;  %s7892_s27 = smov 48  }
 0x34b   : > { %v3423_v29 = vpop.f32.mrf.mxu1 }
 0x34c   : > { %v3518_v9 = vmax.f32 %v3422_v40, 0.0 }
 0x34d   : > { %v3424_v50 = vpop.f32.mrf.mxu1 }
 0x34e   : > { %3833 = vrot.lane.b32.xlu0 %v3740_v35, %s7889_s26  ;;  %v3553_v52 = vsel %vm1680_vm2, %v3518_v9, -inf  ;;  %v3425_v41 = vadd.f32 %v7193_v12, %v3424_v50 }
 0x34f   : > { %v3554_v23 = vmax.f32 %v3552_v36, %v3553_v52  ;;  %v3426_v32 = vpop.f32.mrf.mxu1 }
 0x350   : > { %v3519_v51 = vmax.f32 %v3425_v41, 0.0 }
 0x351   : > { %3592 = vst.msk [vmem:[#allocation6 + $0x20] sm:$0xff] %vm1680_vm2, %v3554_v23  ;;  %v3429_v14 = vpop.f32.mrf.mxu1 }
 0x352   : > { %v3556_v1 = vsel %vm1680_vm2, %v3519_v51, -inf  ;;  %v3430_v33 = vadd.f32 %v7193_v12, %v3429_v14 }
 0x353   : > { %v3557_v19 = vmax.f32 %v3555_v46, %v3556_v1  ;;  %v3431_v53 = vpop.f32.mrf.mxu1 }
 0x354   : > { %v3520_v13 = vmax.f32 %v3430_v33, 0.0 }
 0x355   : > { %3593 = vst.msk [vmem:[#allocation6 + $0x28] sm:$0xff] %vm1680_vm2, %v3557_v19  ;;  %v3432_v57 = vpop.f32.mrf.mxu1 }
 0x356   : > { %v3433_v39 = vadd.f32 %v7193_v12, %v3432_v57  ;;  %v3558_v37 = vsel %vm1680_vm2, %v3520_v13, -inf }
 0x357   : > { %v3434_v55 = vpop.f32.mrf.mxu1 }
 0x358   : > { %v3521_v62 = vmax.f32 %v3433_v39, 0.0 }
 0x35a   : > { %v3561_v31 = vsel %vm1680_vm2, %v3521_v62, -inf }
 0x35c   : > { %v3608_v2 = vld [vmem:[#allocation6 + $0x20] ss:$2 sm:$0xff]  ;;  %v3624_v21 = vld [vmem:[#allocation6 + $0x21] ss:$2 sm:$0xff] }
 0x35d   : > { %v3637_v10 = vmax.f32 %v3608_v2, %v3624_v21 }
 0x35f   : > { %3666 = vst.msk [vmem:[#allocation4 + $0x31] sm:$0xff] %vm1680_vm2, %v3637_v10 }
 0x361   : > { %v3437_v15 = vpop.f32.mrf.mxu1 }
 0x362   : > { %v3438_v30 = vadd.f32 %v7193_v12, %v3437_v15 }
 0x363   : > { %v3439_v16 = vpop.f32.mrf.mxu1 }
 0x364   : > { %v3522_v42 = vmax.f32 %v3438_v30, 0.0 }
 0x365   : > { %v3440_v7 = vpop.f32.mrf.mxu1 }
 0x366   : > { %v3770_v48 = vld [vmem:[#allocation4 + $0x32] sm:$0xff]  ;;  %v3559_v38 = vsel %vm1680_vm2, %v3522_v42, -inf  ;;  %v3441_v63 = vadd.f32 %v7193_v12, %v3440_v7 }
 0x367   : > { %v3746_v5 = vld [vmem:[#allocation4 + $0x30] sm:$0xff]  ;;  %v3777_v44 = vpack.c.bf16 %v3770_v48, %v7260_v11  ;;  %v3560_v20 = vmax.f32 %v3558_v37, %v3559_v38  ;;  %v3442_v3 = vpop.f32.mrf.mxu1 }
 0x368   : > { %v3758_v6 = vld [vmem:[#allocation4 + $0x31] sm:$0xff]  ;;  %v7305_v18 = vpack.c.bf16 %v3746_v5, %v7252_v54  ;;  %v3523_v22 = vmax.f32 %v3441_v63, 0.0 }
 0x369   : > { %v3765_v17 = vpack.c.bf16 %v3758_v6, %v7248_v4  ;;  %5349 = vmatprep.mubr.msk.bf16.mxu0 %vm1680_vm2, %v3777_v44  ;;  %3594 = vst.msk [vmem:[#allocation6 + $0x30] sm:$0xff] %vm1680_vm2, %v3560_v20  ;;  %v3445_v24 = vpop.f32.mrf.mxu1 }
 0x36a   : > { %3845 = vrot.lane.b32.xlu1 %v7305_v18, %s7890_s30  ;;  %v3562_v56 = vsel %vm1680_vm2, %v3523_v22, -inf  ;;  %v3446_v25 = vadd.f32 %v7193_v12, %v3445_v24 }
 0x36b   : > { %3857 = vrot.lane.b32.xlu0 %v3765_v17, %s7891_s23  ;;  %v3563_v45 = vmax.f32 %v3561_v31, %v3562_v56  ;;  %v3447_v54 = vpop.f32.mrf.mxu1 }
 0x36c   : > { %v3524_v47 = vmax.f32 %v3446_v25, 0.0 }
 0x36d   : > { %3595 = vst.msk [vmem:[#allocation6 + $0x38] sm:$0xff] %vm1680_vm2, %v3563_v45  ;;  %v3448_v4 = vpop.f32.mrf.mxu1 }
 0x36e   : > { %3787 = vrot.lane.b32.xlu1 %v3765_v17, %s7880_s28  ;;  %v3449_v40 = vadd.f32 %v7193_v12, %v3448_v4  ;;  %v3564_v41 = vsel %vm1680_vm2, %v3524_v47, -inf }
 0x36f   : > { %3799 = vrot.lane.b32.xlu0 %v3777_v44, %s7884_s3  ;;  %v3450_v26 = vpop.f32.mrf.mxu1 }
 0x370   : > { %v3525_v27 = vmax.f32 %v3449_v40, 0.0 }
 0x372   : > { %v3567_v19 = vsel %vm1680_vm2, %v3525_v27, -inf }
 0x374   : > { %v3610_v43 = vld [vmem:[#allocation6 + $0x30] ss:$2 sm:$0xff]  ;;  %v3626_v8 = vld [vmem:[#allocation6 + $0x31] ss:$2 sm:$0xff] }
 0x375   : > { %v3638_v11 = vmax.f32 %v3610_v43, %v3626_v8 }
 0x377   : > { %3667 = vst.msk [vmem:[#allocation4 + $0x41] sm:$0xff] %vm1680_vm2, %v3638_v11 }
 0x37b   : > { %v3453_v28 = vpop.f32.mrf.mxu1 }
 0x37c   : > { %v3454_v58 = vadd.f32 %v7193_v12, %v3453_v28 }
 0x37d   : > { %v3455_v29 = vpop.f32.mrf.mxu1 }
 0x37e   : > { %v3526_v35 = vmax.f32 %v3454_v58, 0.0  ;;  %v3711_v9 = vld [vmem:[#allocation4 + $0x40] sm:$0xff] }
 0x37f   : > { %v3723_v50 = vld [vmem:[#allocation4 + $0x41] sm:$0xff]  ;;  %v3456_v36 = vpop.f32.mrf.mxu1  ;;  %v3717_v34 = vpack.c.bf16 %v3711_v9, %v3746_v5 }
 0x380   : > { %v3729_v52 = vpack.c.bf16 %v3723_v50, %v3758_v6  ;;  %v3565_v23 = vsel %vm1680_vm2, %v3526_v35, -inf  ;;  %v3457_v32 = vadd.f32 %v7193_v12, %v3456_v36  ;;  %v3735_v51 = vld [vmem:[#allocation4 + $0x42] sm:$0xff] }
 0x381   : > { %v3566_v14 = vmax.f32 %v3564_v41, %v3565_v23  ;;  %3811 = vrot.lane.b32.xlu1 %v3717_v34, %s7892_s27  ;;  %v3458_v46 = vpop.f32.mrf.mxu1  ;;  %v3741_v60 = vpack.c.bf16 %v3735_v51, %v3770_v48 }
 0x382   : > { %3823 = vrot.lane.b32.xlu0 %v3729_v52, %s7893_s0  ;;  %v3527_v1 = vmax.f32 %v3457_v32, 0.0 }
 0x383   : > { %3596 = vst.msk [vmem:[#allocation6 + $0x40] sm:$0xff] %vm1680_vm2, %v3566_v14 }
 0x384   : > { %v3568_v53 = vsel %vm1680_vm2, %v3527_v1, -inf }
 0x385   : > { %v3569_v57 = vmax.f32 %v3567_v19, %v3568_v53  ;;  %3835 = vrot.lane.b32.xlu1 %v3741_v60, %s7889_s26 }
 0x387   : > { %3597 = vst.msk [vmem:[#allocation6 + $0x48] sm:$0xff] %vm1680_vm2, %v3569_v57 }
 0x38a   : > { %v3461_v49 = vpop.f32.mrf.mxu1 }
 0x38b   : > { %v3462_v15 = vadd.f32 %v7193_v12, %v3461_v49 }
 0x38c   : > { %v3463_v55 = vpop.f32.mrf.mxu1 }
 0x38d   : > { %v3528_v62 = vmax.f32 %v3462_v15, 0.0 }
 0x38e   : > { %v3612_v61 = vld [vmem:[#allocation6 + $0x40] ss:$2 sm:$0xff]  ;;  %v3628_v2 = vld [vmem:[#allocation6 + $0x41] ss:$2 sm:$0xff]  ;;  %v3464_v21 = vpop.f32.mrf.mxu1 }
 0x38f   : > { %v3639_v10 = vmax.f32 %v3612_v61, %v3628_v2  ;;  %v3465_v7 = vadd.f32 %v7193_v12, %v3464_v21  ;;  %v3570_v44 = vsel %vm1680_vm2, %v3528_v62, -inf  ;;  %v3672_v21 = vld [vmem:[#allocation4] sm:$0xff] }
 0x390   : > { %v3466_v33 = vpop.f32.mrf.mxu1 }
 0x391   : > { %3668 = vst.msk [vmem:[#allocation4 + $0x51] sm:$0xff] %vm1680_vm2, %v3639_v10  ;;  %v3529_v20 = vmax.f32 %v3465_v7, 0.0 }
 0x393   : > { %v3573_v56 = vsel %vm1680_vm2, %v3529_v20, -inf }
 0x398   : > { %v3760_v13 = vld [vmem:[#allocation4 + $0x51] sm:$0xff] }
 0x399   : > { %v3748_v39 = vld [vmem:[#allocation4 + $0x50] sm:$0xff]  ;;  %v3766_v30 = vpack.c.bf16 %v3760_v13, %v3723_v50 }
 0x39a   : > { %v7334_v16 = vpack.c.bf16 %v3748_v39, %v3711_v9  ;;  %v3701_v42 = vld [vmem:[#allocation4 + $0x52] sm:$0xff] }
 0x39b   : > { %3859 = vrot.lane.b32.xlu1 %v3766_v30, %s7891_s23  ;;  %v3469_v37 = vpop.f32.mrf.mxu1  ;;  %v7341_v5 = vpack.c.bf16 %v3701_v42, %v3735_v51  ;;  %v3798_v62 = vpop.permute.xlu1 %3797 }
 0x39c   : > { %3847 = vrot.lane.b32.xlu0 %v7334_v16, %s7890_s30  ;;  %v3470_v48 = vadd.f32 %v7193_v12, %v3469_v37  ;;  %v3786_v10 = vpop.permute.xlu0 %3785 }
 0x39d   : > { %v3471_v6 = vpop.f32.mrf.mxu1 }
 0x39e   : > { %v3530_v38 = vmax.f32 %v3470_v48, 0.0 }
 0x39f   : > { %3801 = vrot.lane.b32.xlu1 %v7341_v5, %s7884_s3  ;;  %v3472_v63 = vpop.f32.mrf.mxu1 }
 0x3a0   : > { %3789 = vrot.lane.b32.xlu0 %v3766_v30, %s7880_s28  ;;  %v3571_v3 = vsel %vm1680_vm2, %v3530_v38, -inf  ;;  %v3473_v17 = vadd.f32 %v7193_v12, %v3472_v63  ;;  %v3680_v30 = vpack.c.bf16 %v7250_v59, %v3672_v21 }
 0x3a1   : > { %v3572_v22 = vmax.f32 %v3570_v44, %v3571_v3  ;;  %v3474_v24 = vpop.f32.mrf.mxu1 }
 0x3a2   : > { %v3531_v31 = vmax.f32 %v3473_v17, 0.0  ;;  %v3867_v7 = vsel %vm1680_vm2, %v3680_v30, %v3786_v10 }
 0x3a3   : > { %3598 = vst.msk [vmem:[#allocation6 + $0x50] sm:$0xff] %vm1680_vm2, %v3572_v22  ;;  %v3878_v6 = vsel %vm1812_vm3, %v3867_v7, %v3798_v62 }
 0x3a4   : > { %v3574_v45 = vsel %vm1680_vm2, %v3531_v31, -inf }
 0x3a5   : > { %v3575_v54 = vmax.f32 %v3573_v56, %v3574_v45 }
 0x3a7   : > { %3599 = vst.msk [vmem:[#allocation6 + $0x58] sm:$0xff] %vm1680_vm2, %v3575_v54 }
 0x3aa   : > { %v3477_v4 = vpop.f32.mrf.mxu1 }
 0x3ab   : > { %v3478_v47 = vadd.f32 %v7193_v12, %v3477_v4 }
 0x3ac   : > { %v3479_v26 = vpop.f32.mrf.mxu1 }
 0x3ad   : > { %v3532_v36 = vmax.f32 %v3478_v47, 0.0 }
 0x3ae   : > { %v3480_v43 = vpop.f32.mrf.mxu1  ;;  %v3614_v8 = vld [vmem:[#allocation6 + $0x50] ss:$2 sm:$0xff]  ;;  %v3630_v11 = vld [vmem:[#allocation6 + $0x51] ss:$2 sm:$0xff] }
 0x3af   : > { %v3640_v25 = vmax.f32 %v3614_v8, %v3630_v11  ;;  %v3481_v34 = vadd.f32 %v7193_v12, %v3480_v43  ;;  %v3576_v51 = vsel %vm1680_vm2, %v3532_v36, -inf }
 0x3b0   : > { %v3482_v28 = vpop.f32.mrf.mxu1 }
 0x3b1   : > { %3669 = vst.msk [vmem:[#allocation4 + $0x61] sm:$0xff] %vm1680_vm2, %v3640_v25  ;;  %v3533_v14 = vmax.f32 %v3481_v34, 0.0 }
 0x3b3   : > { %v3579_v57 = vsel %vm1680_vm2, %v3533_v14, -inf }
 0x3b8   : > { %v3725_v40 = vld [vmem:[#allocation4 + $0x61] sm:$0xff] }
 0x3b9   : > { %v3713_v58 = vld [vmem:[#allocation4 + $0x60] sm:$0xff]  ;;  %v3730_v29 = vpack.c.bf16 %v3725_v40, %v3760_v13 }
 0x3ba   : > { %v3718_v35 = vpack.c.bf16 %v3713_v58, %v3748_v39  ;;  %v7355_v50 = vld [vmem:[#allocation4 + $0x62] sm:$0xff] }
 0x3bb   : > { %v3485_v9 = vpop.f32.mrf.mxu1  ;;  %3825 = vrot.lane.b32.xlu1 %v3730_v29, %s7893_s0  ;;  %v3742_v23 = vpack.c.bf16 %v7355_v50, %v3701_v42  ;;  %v3822_v38 = vpop.permute.xlu1 %3821 }
 0x3bc   : > { %v3486_v52 = vadd.f32 %v7193_v12, %v3485_v9  ;;  %3813 = vrot.lane.b32.xlu0 %v3718_v35, %s7892_s27  ;;  %v3810_v37 = vpop.permute.xlu0 %3809 }
 0x3bd   : > { %v3487_v41 = vpop.f32.mrf.mxu1  ;;  %v3886_v63 = vsel %vm3039_vm12, %v3878_v6, %v3810_v37 }
 0x3be   : > { %v3534_v27 = vmax.f32 %v3486_v52, 0.0  ;;  %v3894_v31 = vsel %vm3072_vm13, %v3886_v63, %v3822_v38 }
 0x3bf   : > { %v3488_v32 = vpop.f32.mrf.mxu1 }
 0x3c0   : > { %v3577_v46 = vsel %vm1680_vm2, %v3534_v27, -inf  ;;  %v3489_v1 = vadd.f32 %v7193_v12, %v3488_v32  ;;  %3837 = vrot.lane.b32.xlu0 %v3742_v23, %s7889_s26  ;;  %v3834_v44 = vpop.permute.xlu0 %3833 }
 0x3c1   : > { %v3578_v60 = vmax.f32 %v3576_v51, %v3577_v46  ;;  %v3490_v19 = vpop.f32.mrf.mxu1  ;;  %v3902_v4 = vsel %vm3105_vm14, %v3894_v31, %v3834_v44 }
 0x3c2   : > { %v3535_v53 = vmax.f32 %v3489_v1, 0.0 }
 0x3c3   : > { %3600 = vst.msk [vmem:[#allocation6 + $0x60] sm:$0xff] %vm1680_vm2, %v3578_v60  ;;  %v3752_v60 = vld [vmem:[#allocation4 + $0x90] sm:$0xff] }
 0x3c4   : > { %v3580_v49 = vsel %vm1680_vm2, %v3535_v53, -inf }
 0x3c5   : > { %v3581_v55 = vmax.f32 %v3579_v57, %v3580_v49  ;;  %v3764_v57 = vld [vmem:[#allocation4 + $0x91] sm:$0xff] }
 0x3c7   : > { %3601 = vst.msk [vmem:[#allocation6 + $0x68] sm:$0xff] %vm1680_vm2, %v3581_v55 }
 0x3ca   : > { %v3493_v61 = vpop.f32.mrf.mxu1 }
 0x3cb   : > { %v3494_v48 = vadd.f32 %v7193_v12, %v3493_v61 }
 0x3cc   : > { %v3495_v2 = vpop.f32.mrf.mxu1 }
 0x3cd   : > { %v3536_v20 = vmax.f32 %v3494_v48, 0.0 }
 0x3ce   : > { %v3616_v33 = vld [vmem:[#allocation6 + $0x60] ss:$2 sm:$0xff]  ;;  %v3632_v13 = vld [vmem:[#allocation6 + $0x61] ss:$2 sm:$0xff]  ;;  %v3496_v39 = vpop.f32.mrf.mxu1 }
 0x3cf   : > { %v3641_v15 = vmax.f32 %v3616_v33, %v3632_v13  ;;  %v3497_v17 = vadd.f32 %v7193_v12, %v3496_v39  ;;  %v3582_v11 = vsel %vm1680_vm2, %v3536_v20, -inf }
 0x3d0   : > { %v3498_v42 = vpop.f32.mrf.mxu1 }
 0x3d1   : > { %3670 = vst.msk [vmem:[#allocation4 + $0x71] sm:$0xff] %vm1680_vm2, %v3641_v15  ;;  %v3537_v29 = vmax.f32 %v3497_v17, 0.0 }
 0x3d3   : > { %v3585_v41 = vsel %vm1680_vm2, %v3537_v29, -inf }
 0x3d7   : > { %v3501_v3 = vpop.f32.mrf.mxu1 }
 0x3d8   : > { %v3502_v59 = vadd.f32 %v7193_v12, %v3501_v3  ;;  %v3750_v22 = vld [vmem:[#allocation4 + $0x70] sm:$0xff] }
 0x3d9   : > { %v3762_v24 = vld [vmem:[#allocation4 + $0x71] sm:$0xff]  ;;  %v3503_v56 = vpop.f32.mrf.mxu1  ;;  %v7379_v45 = vpack.c.bf16 %v3750_v22, %v3713_v58 }
 0x3da   : > { %v3767_v54 = vpack.c.bf16 %v3762_v24, %v3725_v40  ;;  %v3538_v26 = vmax.f32 %v3502_v59, 0.0  ;;  %v3703_v8 = vld [vmem:[#allocation4 + $0x72] sm:$0xff] }
 0x3db   : > { %v3504_v47 = vpop.f32.mrf.mxu1  ;;  %3849 = vrot.lane.b32.xlu1 %v7379_v45, %s7890_s30  ;;  %v3707_v34 = vpack.c.bf16 %v3703_v8, %v7355_v50  ;;  %v3776_v59 = vld [vmem:[#allocation4 + $0x92] sm:$0xff] }
 0x3dc   : > { %v3846_v43 = vpop.permute.xlu1 %3845  ;;  %3861 = vrot.lane.b32.xlu0 %v3767_v54, %s7891_s23  ;;  %v3583_v58 = vsel %vm1680_vm2, %v3538_v26, -inf  ;;  %v3505_v35 = vadd.f32 %v7193_v12, %v3504_v47 }
 0x3dd   : > { %v3910_v25 = vsel %vm3138_vm15, %v3902_v4, %v3846_v43  ;;  %v3858_v28 = vpop.permute.xlu0 %3857  ;;  %v3584_v9 = vmax.f32 %v3582_v11, %v3583_v58  ;;  %v3506_v36 = vpop.f32.mrf.mxu1 }
 0x3de   : > { %v3918_v40 = vsel %vm3171_vm0, %v3910_v25, %v3858_v28  ;;  %v3539_v52 = vmax.f32 %v3505_v35, 0.0 }
 0x3df   : > { %4053 = vmatmul.mubr.bf16.vlgmr.msra.gmra.mxu0 %v3918_v40  ;;  %3602 = vst.msk [vmem:[#allocation6 + $0x70] sm:$0xff] %vm1680_vm2, %v3584_v9  ;;  %3791 = vrot.lane.b32.xlu1 %v3767_v54, %s7880_s28 }
 0x3e0   : > { %5350 = vmatprep.mubr.msk.bf16.mxu0 %vm1680_vm2, %v7341_v5  ;;  %3803 = vrot.lane.b32.xlu0 %v3707_v34, %s7884_s3  ;;  %v3586_v27 = vsel %vm1680_vm2, %v3539_v52, -inf  ;;  %v3788_v55 = vpop.permute.xlu1 %3787 }
 0x3e1   : > { %v3587_v12 = vmax.f32 %v3585_v41, %v3586_v27  ;;  %v3870_v2 = vsel %vm1680_vm2, %v7305_v18, %v3788_v55  ;;  %v3800_v21 = vpop.permute.xlu0 %3799 }
 0x3e2   : > { %v3880_v10 = vsel %vm1812_vm3, %v3870_v2, %v3800_v21  ;;  %v5670_v21 = vld [vmem:[%s7812_s7 + $0x78] sm:$0xff]  }
 0x3e3   : > { %3603 = vst.msk [vmem:[#allocation6 + $0x78] sm:$0xff] %vm1680_vm2, %v3587_v12  ;;  %5416 = vmatprep.subr.bf16.mxu0 %v5670_v21 }
 0x3ea   : > { %v3618_v23 = vld [vmem:[#allocation6 + $0x70] ss:$2 sm:$0xff]  ;;  %v3634_v32 = vld [vmem:[#allocation6 + $0x71] ss:$2 sm:$0xff] }
 0x3eb   : > { %v3642_v50 = vmax.f32 %v3618_v23, %v3634_v32 }
 0x3ed   : > { %3671 = vst.msk [vmem:[#allocation4 + $0x81] sm:$0xff] %vm1680_vm2, %v3642_v50 }
 0x3f3   : > { %v3812_v61 = vpop.permute.xlu1 %3811 }
 0x3f4   : > { %v3715_v51 = vld [vmem:[#allocation4 + $0x80] sm:$0xff]  ;;  %v3888_v33 = vsel %vm3039_vm12, %v3880_v10, %v3812_v61  ;;  %v3824_v13 = vpop.permute.xlu0 %3823  ;;  %v5671_v10 = vld [vmem:[%s7812_s7 + $0x38] sm:$0xff]  }
 0x3f5   : > { %v3727_v5 = vld [vmem:[#allocation4 + $0x81] sm:$0xff]  ;;  %v3719_v14 = vpack.c.bf16 %v3715_v51, %v3750_v22  ;;  %v3756_v53 = vpack.c.bf16 %v3752_v60, %v3715_v51  ;;  %v3896_v15 = vsel %vm3072_vm13, %v3888_v33, %v3824_v13  ;;  %5417 = vmatpush3.bf16.msra.mxu0 %v5671_v10  ;;  %v5672_v33 = vld [vmem:[%s7812_s7 + $0x70] sm:$0xff]  }
 0x3f6   : > { %v3731_v46 = vpack.c.bf16 %v3727_v5, %v3762_v24  ;;  %v3739_v1 = vld [vmem:[#allocation4 + $0x82] sm:$0xff]  ;;  %v3768_v49 = vpack.c.bf16 %v3764_v57, %v3727_v5  ;;  %v5673_v13 = vld [vmem:[%s7812_s7 + $0x30] sm:$0xff]   ;;  %5418 = vmatprep.subr.bf16.mxu0 %v5672_v33 }
 0x3f7   : > { %3815 = vrot.lane.b32.xlu1 %v3719_v14, %s7892_s27  ;;  %v3743_v19 = vpack.c.bf16 %v3739_v1, %v3703_v8  ;;  %v3836_v39 = vpop.permute.xlu1 %3835  ;;  %v3780_v4 = vpack.c.bf16 %v3776_v59, %v3739_v1  ;;  %v4135_v51 = vld [vmem:[#allocation5 + $0x1] sm:$0xff]  ;;  %s5393_s27 = sshll.u32 %s5903_s2, 4  ;;  %s5776_s2 = smov [#allocation8]  }
 0x3f8   : > { %3827 = vrot.lane.b32.xlu0 %v3731_v46, %s7893_s0  ;;  %v3904_v30 = vsel %vm3105_vm14, %v3896_v15, %v3836_v39  ;;  %v4147_v1 = vld [vmem:[#allocation5 + $0x2] sm:$0xff]  ;;  %s7770_s5 = scalar_lea.hbm %s7825_s20, %s5393_s27  ;;  %s5702_s1 = sshll.u32 %s5776_s2, 4  ;;  %s5703_s1 = int_to_ptr.vmem [resolvable:$false] %s5702_s1 }
 0x3f9   : > { %v5674_v39 = vld [vmem:[%s7812_s7 + $0x68] sm:$0xff]   ;;  %5419 = vmatpush3.bf16.msra.mxu0 %v5673_v13  ;;  %s5704_s29 = scalar_lea.vmem %s5703_s1, 32 }
 0x3fa   : > { %v5675_v15 = vld [vmem:[%s7812_s7 + $0x28] sm:$0xff]   ;;  %5420 = vmatprep.subr.bf16.mxu0 %v5674_v39 }
 0x3fb   : > { %3839 = vrot.lane.b32.xlu1 %v3743_v19, %s7889_s26 }
 0x3fc   : > { %3851 = vrot.lane.b32.xlu0 %v3756_v53, %s7890_s30 }
 0x3fd   : > { %5421 = vmatpush3.bf16.msra.mxu0 %v5675_v15 }
 0x3ff   : > { %3863 = vrot.lane.b32.xlu1 %v3768_v49, %s7891_s23 }
 0x40d   : > { %v3860_v42 = vpop.permute.xlu1 %3859 }
 0x40e   : > { %v3848_v37 = vpop.permute.xlu0 %3847 }
 0x40f   : > { %v3912_v62 = vsel %vm3138_vm15, %v3904_v30, %v3848_v37  ;;  %v5676_v30 = vld [vmem:[%s7812_s7 + $0x60] sm:$0xff]   ;;  %v5678_v37 = vld [vmem:[%s7812_s7 + $0x58] sm:$0xff]  }
 0x410   : > { %v3921_v7 = vsel %vm3171_vm0, %v3912_v62, %v3860_v42  ;;  %v5677_v42 = vld [vmem:[%s7812_s7 + $0x20] sm:$0xff]   ;;  %5422 = vmatprep.subr.bf16.mxu0 %v5676_v30  ;;  %v5679_v62 = vld [vmem:[%s7812_s7 + $0x18] sm:$0xff]  }
 0x411   : > { %4061 = vmatmul.mubr.bf16.gmra.mxu0 %v3921_v7  ;;  %v3802_v6 = vpop.permute.xlu1 %3801  ;;  %v5680_v7 = vld [vmem:[%s7812_s7 + $0x50] sm:$0xff]  }
 0x412   : > { %5351 = vmatprep.mubr.msk.bf16.mxu0 %vm1680_vm2, %v3707_v34  ;;  %v3790_v18 = vpop.permute.xlu0 %3789  ;;  %5423 = vmatpush3.bf16.msra.mxu0 %v5677_v42 }
 0x413   : > { %v3873_v38 = vsel %vm1680_vm2, %v7334_v16, %v3790_v18  ;;  %5424 = vmatprep.subr.bf16.mxu0 %v5678_v37  ;;  %v5681_v18 = vld [vmem:[%s7812_s7 + $0x10] sm:$0xff]  }
 0x414   : > { %v3882_v63 = vsel %vm1812_vm3, %v3873_v38, %v3802_v6  ;;  %v5683_v6 = vld [vmem:[%s7812_s7 + $0x8] sm:$0xff]  }
 0x416   : > { %5425 = vmatpush3.bf16.msra.mxu0 %v5679_v62 }
 0x417   : > { %5426 = vmatprep.subr.bf16.mxu0 %v5680_v7 }
 0x41a   : > { %5427 = vmatpush3.bf16.msra.mxu0 %v5681_v18 }
 0x42d   : > { %v3826_v44 = vpop.permute.xlu1 %3825 }
 0x42e   : > { %v3814_v48 = vpop.permute.xlu0 %3813 }
 0x42f   : > { %v3890_v20 = vsel %vm3039_vm12, %v3882_v63, %v3814_v48  ;;  %v5682_v48 = vld [vmem:[%s7812_s7 + $0x48] sm:$0xff]  }
 0x430   : > { %v3898_v17 = vsel %vm3072_vm13, %v3890_v20, %v3826_v44  ;;  %5428 = vmatprep.subr.bf16.mxu0 %v5682_v48  ;;  %v5684_v20 = vld [vmem:[%s7812_s7 + $0x40] sm:$0xff]  }
 0x431   : > { %5429 = vmatpush3.bf16.msra.mxu0 %v5683_v6 }
 0x432   : > { %v3838_v3 = vpop.permute.xlu0 %3837  ;;  %5430 = vmatprep.subr.bf16.mxu0 %v5684_v20 }
 0x433   : > { %v3906_v22 = vsel %vm3105_vm14, %v3898_v17, %v3838_v3  ;;  %v5685_v3 = vld [vmem:[%s7812_s7] sm:$0xff]  }
 0x435   : > { %5431 = vmatpush3.bf16.msra.mxu0 %v5685_v3 }
 0x44d   : > { %v3850_v24 = vpop.permute.xlu1 %3849 }
 0x44e   : > { %v3862_v31 = vpop.permute.xlu0 %3861  ;;  %v3914_v56 = vsel %vm3138_vm15, %v3906_v22, %v3850_v24 }
 0x44f   : > { %v3924_v54 = vsel %vm3171_vm0, %v3914_v56, %v3862_v31 }
 0x450   : > { %4069 = vmatmul.mubr.bf16.gmra.mxu0 %v3924_v54 }
 0x451   : > { %5352 = vmatprep.mubr.msk.bf16.mxu0 %vm1680_vm2, %v3780_v4  ;;  %v3792_v16 = vpop.permute.xlu1 %3791 }
 0x452   : > { %v3804_v26 = vpop.permute.xlu0 %3803  ;;  %v3876_v43 = vsel %vm1680_vm2, %v7379_v45, %v3792_v16  ;;  %v7444_v45 = vld [vmem:[%s7894_s6] ss:$0 sm:$0xff]  ;;  %vm5775_vm2 = vmmov 0   ;;  %s5220_s6 = scalar_lea.sflag [#allocation9], %s620_s21 }
 0x453   : > { %v3884_v8 = vsel %vm1812_vm3, %v3876_v43, %v3804_v26  ;;  %5559 = vmatprep.mubr.msk.f32.mxu1 %vm5775_vm2, %v5760_v0 }
 0x469   : > { %v3816_v11 = vpop.permute.xlu1 %3815 }
 0x46a   : > { %v3828_v25 = vpop.permute.xlu0 %3827  ;;  %v3892_v28 = vsel %vm3039_vm12, %v3884_v8, %v3816_v11 }
 0x46b   : > { %v3900_v47 = vsel %vm3072_vm13, %v3892_v28, %v3828_v25 }
 0x46d   : > { %v3840_v29 = vpop.permute.xlu1 %3839 }
 0x46e   : > { %v3908_v58 = vsel %vm3105_vm14, %v3900_v47, %v3840_v29  ;;  %v3852_v40 = vpop.permute.xlu0 %3851 }
 0x46f   : > { %v3916_v35 = vsel %vm3138_vm15, %v3908_v58, %v3852_v40 }
 0x471   : > { %v3864_v9 = vpop.permute.xlu1 %3863 }
 0x472   : > { %v3927_v36 = vsel %vm3171_vm0, %v3916_v35, %v3864_v9 }
 0x473   : > { %4077 = vmatmul.mubr.bf16.gmra.mxu0 %v3927_v36 }
 0x49f   : > { %v4054_v34 = vpop.f32.mrf.mxu0 }
 0x4a0   : > { %v4055_v52 = vadd.f32 %v7444_v45, %v4054_v34 }
 0x4a1   : > { %v4056_v41 = vpop.f32.mrf.mxu0 }
 0x4a2   : > { %v4085_v27 = vmax.f32 %v4055_v52, 0.0 }
 0x4a3   : > { %v4057_v12 = vpop.f32.mrf.mxu0 }
 0x4a4   : > { %4115 = vst.msk [vmem:[#allocation5 + $0x11] sm:$0xff] %vm1812_vm3, %v4085_v27  ;;  %v4058_v23 = vadd.f32 %v7444_v45, %v4057_v12 }
 0x4a5   : > { %v4059_v32 = vpop.f32.mrf.mxu0 }
 0x4a6   : > { %v4086_v50 = vmax.f32 %v4058_v23, 0.0 }
 0x4a8   : > { %4116 = vst.msk [vmem:[#allocation5 + $0x21] sm:$0xff] %vm1812_vm3, %v4086_v50 }
 0x4ab   : > { %v7450_v5 = vld [vmem:[#allocation5 + $0x11] sm:$0xff] }
 0x4ac   : > { %v4143_v14 = vpack.c.bf16 %v7450_v5, %v4135_v51  ;;  %v4183_v46 = vld [vmem:[#allocation5 + $0x12] sm:$0xff] }
 0x4ad   : > { %v4155_v57 = vpack.c.bf16 %v4183_v46, %v4147_v1  ;;  %v7460_v61 = vld [vmem:[#allocation5 + $0x10] sm:$0xff] }
 0x4ae   : > { %4236 = vrot.lane.b32.xlu1 %v4143_v14, %s7884_s3 }
 0x4af   : > { %v4184_v60 = vld [vmem:[#allocation5 + $0x22] sm:$0xff] }
 0x4b0   : > { %v7454_v19 = vld [vmem:[#allocation5 + $0x21] sm:$0xff]  ;;  %v4191_v53 = vpack.c.bf16 %v4184_v60, %v4183_v46 }
 0x4b1   : > { %v4179_v49 = vpack.c.bf16 %v7454_v19, %v7450_v5  ;;  %v4160_v55 = vld [vmem:[#allocation5 + $0x20] sm:$0xff] }
 0x4b2   : > { %4272 = vrot.lane.b32.xlu0 %v4191_v53, %s7884_s3  ;;  %4248 = vrot.lane.b32.xlu1 %v4155_v57, %s7893_s0  ;;  %v4167_v2 = vpack.c.bf16 %v4160_v55, %v7460_v61 }
 0x4b6   : > { %4260 = vrot.lane.b32.xlu1 %v4167_v2, %s7890_s30 }
 0x4d1   : > { %v4062_v38 = vpop.f32.mrf.mxu0 }
 0x4d2   : > { %v4063_v63 = vadd.f32 %v7444_v45, %v4062_v38 }
 0x4d3   : > { %v4064_v44 = vpop.f32.mrf.mxu0 }
 0x4d4   : > { %v4087_v17 = vmax.f32 %v4063_v63, 0.0  ;;  %v5686_v63 = vld [vmem:[%s7812_s7 + $0x88] sm:$0xff]  }
 0x4d5   : > { %v4065_v59 = vpop.f32.mrf.mxu0  ;;  %5525 = vmatprep.subr.bf16.mxu0 %v5686_v63 }
 0x4d6   : > { %4117 = vst.msk [vmem:[#allocation5 + $0x31] sm:$0xff] %vm1812_vm3, %v4087_v17  ;;  %v4066_v22 = vadd.f32 %v7444_v45, %v4065_v59  ;;  %v4203_v17 = vld [vmem:[#allocation5 + $0x90] sm:$0xff] }
 0x4d7   : > { %v4067_v24 = vpop.f32.mrf.mxu0 }
 0x4d8   : > { %v4088_v31 = vmax.f32 %v4066_v22, 0.0  ;;  %v4215_v24 = vld [vmem:[#allocation5 + $0x91] sm:$0xff] }
 0x4da   : > { %4118 = vst.msk [vmem:[#allocation5 + $0x41] sm:$0xff] %vm1812_vm3, %v4088_v31 }
 0x4dd   : > { %v4197_v56 = vld [vmem:[#allocation5 + $0x30] sm:$0xff] }
 0x4de   : > { %v7516_v54 = vld [vmem:[#allocation5 + $0x31] sm:$0xff]  ;;  %v7518_v4 = vpack.c.bf16 %v4197_v56, %v4160_v55 }
 0x4df   : > { %v4144_v16 = vpack.c.bf16 %v7516_v54, %v7454_v19  ;;  %v4150_v26 = vld [vmem:[#allocation5 + $0x32] sm:$0xff] }
 0x4e0   : > { %4284 = vrot.lane.b32.xlu0 %v7518_v4, %s7893_s0  ;;  %v7527_v8 = vpack.c.bf16 %v4150_v26, %v4184_v60 }
 0x4e1   : > { %4238 = vrot.lane.b32.xlu1 %v4144_v16, %s7884_s3  ;;  %v7525_v43 = vld [vmem:[#allocation5 + $0x41] sm:$0xff] }
 0x4e2   : > { %v4180_v11 = vpack.c.bf16 %v7525_v43, %v7516_v54  ;;  %v4186_v25 = vld [vmem:[#allocation5 + $0x42] sm:$0xff] }
 0x4e3   : > { %v4162_v28 = vld [vmem:[#allocation5 + $0x40] sm:$0xff]  ;;  %v4192_v47 = vpack.c.bf16 %v4186_v25, %v4150_v26 }
 0x4e4   : > { %4296 = vrot.lane.b32.xlu0 %v4144_v16, %s7890_s30  ;;  %v4168_v29 = vpack.c.bf16 %v4162_v28, %v4197_v56  ;;  %v4123_v56 = vld [vmem:[#allocation5] sm:$0xff] }
 0x4e5   : > { %4250 = vrot.lane.b32.xlu1 %v7527_v8, %s7893_s0 }
 0x4e8   : > { %4274 = vrot.lane.b32.xlu0 %v4192_v47, %s7884_s3 }
 0x4e9   : > { %4262 = vrot.lane.b32.xlu1 %v4168_v29, %s7890_s30 }
 0x510   : > { %v4070_v58 = vpop.f32.mrf.mxu0 }
 0x511   : > { %v4071_v40 = vadd.f32 %v7444_v45, %v4070_v58 }
 0x512   : > { %v4072_v35 = vpop.f32.mrf.mxu0 }
 0x513   : > { %v4089_v9 = vmax.f32 %v4071_v40, 0.0 }
 0x514   : > { %v4073_v36 = vpop.f32.mrf.mxu0 }
 0x515   : > { %4119 = vst.msk [vmem:[#allocation5 + $0x51] sm:$0xff] %vm1812_vm3, %v4089_v9  ;;  %v4074_v34 = vadd.f32 %v7444_v45, %v4073_v36  ;;  %v5687_v36 = vld [vmem:[%s7812_s7 + $0x80] sm:$0xff]  }
 0x516   : > { %v4075_v52 = vpop.f32.mrf.mxu0 }
 0x517   : > { %v4090_v41 = vmax.f32 %v4074_v34, 0.0 }
 0x519   : > { %4120 = vst.msk [vmem:[#allocation5 + $0x61] sm:$0xff] %vm1812_vm3, %v4090_v41 }
 0x51c   : > { %v4199_v27 = vld [vmem:[#allocation5 + $0x50] sm:$0xff] }
 0x51d   : > { %v7540_v12 = vld [vmem:[#allocation5 + $0x51] sm:$0xff]  ;;  %v7542_v23 = vpack.c.bf16 %v4199_v27, %v4162_v28 }
 0x51e   : > { %v4145_v32 = vpack.c.bf16 %v7540_v12, %v7525_v43  ;;  %v4152_v50 = vld [vmem:[#allocation5 + $0x52] sm:$0xff] }
 0x51f   : > { %4286 = vrot.lane.b32.xlu0 %v7542_v23, %s7893_s0  ;;  %v7551_v14 = vpack.c.bf16 %v4152_v50, %v4186_v25  ;;  %v4131_v25 = vpack.c.bf16 %v7460_v61, %v4123_v56 }
 0x520   : > { %4240 = vrot.lane.b32.xlu1 %v4145_v32, %s7884_s3  ;;  %v7549_v51 = vld [vmem:[#allocation5 + $0x61] sm:$0xff]  ;;  %v4237_v44 = vpop.permute.xlu1 %4236 }
 0x521   : > { %v4181_v46 = vpack.c.bf16 %v7549_v51, %v7540_v12  ;;  %v4188_v1 = vld [vmem:[#allocation5 + $0x62] sm:$0xff]  ;;  %v4306_v29 = vsel %vm1812_vm3, %v4131_v25, %v4237_v44 }
 0x522   : > { %v4164_v60 = vld [vmem:[#allocation5 + $0x60] sm:$0xff]  ;;  %v4193_v53 = vpack.c.bf16 %v4188_v1, %v4152_v50 }
 0x523   : > { %4298 = vrot.lane.b32.xlu0 %v4145_v32, %s7890_s30  ;;  %v4169_v57 = vpack.c.bf16 %v4164_v60, %v4199_v27 }
 0x524   : > { %4252 = vrot.lane.b32.xlu1 %v7551_v14, %s7893_s0  ;;  %v4273_v22 = vpop.permute.xlu0 %4272  ;;  %v4249_v31 = vpop.permute.xlu1 %4248 }
 0x525   : > { %v4338_v28 = vsel %vm1812_vm3, %v4179_v49, %v4273_v22  ;;  %v4317_v35 = vsel %vm3072_vm13, %v4306_v29, %v4249_v31 }
 0x527   : > { %4276 = vrot.lane.b32.xlu0 %v4193_v53, %s7884_s3 }
 0x528   : > { %4264 = vrot.lane.b32.xlu1 %v4169_v57, %s7890_s30  ;;  %v4261_v47 = vpop.permute.xlu1 %4260 }
 0x529   : > { %v4325_v61 = vsel %vm3138_vm15, %v4317_v35, %v4261_v47 }
 0x533   : > { %v4078_v55 = vpop.f32.mrf.mxu0 }
 0x534   : > { %v4079_v2 = vadd.f32 %v7444_v45, %v4078_v55 }
 0x535   : > { %v4080_v21 = vpop.f32.mrf.mxu0 }
 0x536   : > { %v4091_v10 = vmax.f32 %v4079_v2, 0.0 }
 0x537   : > { %v4081_v33 = vpop.f32.mrf.mxu0 }
 0x538   : > { %4121 = vst.msk [vmem:[#allocation5 + $0x71] sm:$0xff] %vm1812_vm3, %v4091_v10  ;;  %v4082_v13 = vadd.f32 %v7444_v45, %v4081_v33 }
 0x539   : > { %v4083_v39 = vpop.f32.mrf.mxu0 }
 0x53a   : > { %v4092_v15 = vmax.f32 %v4082_v13, 0.0 }
 0x53c   : > { %4122 = vst.msk [vmem:[#allocation5 + $0x81] sm:$0xff] %vm1812_vm3, %v4092_v15 }
 0x53f   : > { %v4201_v30 = vld [vmem:[#allocation5 + $0x70] sm:$0xff] }
 0x540   : > { %v7564_v42 = vld [vmem:[#allocation5 + $0x71] sm:$0xff]  ;;  %v7566_v37 = vpack.c.bf16 %v4201_v30, %v4164_v60 }
 0x541   : > { %v4146_v62 = vpack.c.bf16 %v7564_v42, %v7549_v51  ;;  %v4154_v7 = vld [vmem:[#allocation5 + $0x72] sm:$0xff] }
 0x542   : > { %4288 = vrot.lane.b32.xlu0 %v7566_v37, %s7893_s0  ;;  %v7575_v45 = vpack.c.bf16 %v4154_v7, %v4188_v1 }
 0x543   : > { %4242 = vrot.lane.b32.xlu1 %v4146_v62, %s7884_s3  ;;  %v7573_v18 = vld [vmem:[#allocation5 + $0x81] sm:$0xff] }
 0x544   : > { %v7577_v48 = vld [vmem:[#allocation5 + $0x82] sm:$0xff]  ;;  %v4182_v38 = vpack.c.bf16 %v7573_v18, %v7564_v42  ;;  %v4219_v16 = vpack.c.bf16 %v4215_v24, %v7573_v18  ;;  %v4227_v42 = vld [vmem:[#allocation5 + $0x92] sm:$0xff] }
 0x545   : > { %v4166_v6 = vld [vmem:[#allocation5 + $0x80] sm:$0xff]  ;;  %v4194_v20 = vpack.c.bf16 %v7577_v48, %v4154_v7  ;;  %v5688_v18 = vld [vmem:[%s7814_s9 + $0x8] sm:$0xff]  }
 0x546   : > { %4300 = vrot.lane.b32.xlu0 %v4146_v62, %s7890_s30  ;;  %v4170_v3 = vpack.c.bf16 %v4166_v6, %v4201_v30  ;;  %v4207_v59 = vpack.c.bf16 %v4203_v17, %v4166_v6 }
 0x547   : > { %4254 = vrot.lane.b32.xlu1 %v7575_v45, %s7893_s0 }
 0x54a   : > { %4278 = vrot.lane.b32.xlu0 %v4194_v20, %s7884_s3 }
 0x54b   : > { %4266 = vrot.lane.b32.xlu1 %v4170_v3, %s7890_s30 }
 0x54e   : > { %4290 = vrot.lane.b32.xlu0 %v4207_v59, %s7893_s0 }
 0x552   : > { %v4285_v26 = vpop.permute.xlu0 %4284  ;;  %4302 = vrot.lane.b32.xlu0 %v4219_v16, %s7890_s30 }
 0x553   : > { %v4349_v58 = vsel %vm3072_vm13, %v4338_v28, %v4285_v26  ;;  %v4239_v5 = vpop.permute.xlu1 %4238 }
 0x554   : > { %v4309_v27 = vsel %vm1812_vm3, %v7518_v4, %v4239_v5 }
 0x556   : > { %v4297_v40 = vpop.permute.xlu0 %4296 }
 0x557   : > { %v4357_v9 = vsel %vm3138_vm15, %v4349_v58, %v4297_v40  ;;  %v4251_v49 = vpop.permute.xlu1 %4250  ;;  %v5353_v40 = vld [vmem:[%s7813_s8] ss:$0 sm:$0xff] }
 0x558   : > { %4563 = vmatprep.mubr.bf16.mxu0 %v4357_v9  ;;  %v4319_v1 = vsel %vm3072_vm13, %v4309_v27, %v4251_v49 }
 0x559   : > { %4564 = vmatmul.mubr.bf16.vlgmr.msra.gmra.mxu0 %v4325_v61 }
 0x55a   : > { %5526 = vmatpush3.bf16.msra.mxu0 %v5686_v63  ;;  %v4275_v19 = vpop.permute.xlu0 %4274 }
 0x55b   : > { %5527 = vmatprep.subr.bf16.mxu0 %v5687_v36  ;;  %v4341_v52 = vsel %vm1812_vm3, %v4180_v11, %v4275_v19  ;;  %v4263_v41 = vpop.permute.xlu1 %4262 }
 0x55c   : > { %v4328_v53 = vsel %vm3138_vm15, %v4319_v1, %v4263_v41 }
 0x55e   : > { %5528 = vmatpush3.bf16.msra.mxu0 %v5687_v36 }
 0x55f   : > { %5537 = vmatprep.subr.bf16.mxu0 %v5760_v0 }
 0x591   : > { %v4287_v34 = vpop.permute.xlu0 %4286 }
 0x592   : > { %v4351_v32 = vsel %vm3072_vm13, %v4341_v52, %v4287_v34  ;;  %v4241_v57 = vpop.permute.xlu1 %4240 }
 0x593   : > { %v4312_v21 = vsel %vm1812_vm3, %v7542_v23, %v4241_v57 }
 0x595   : > { %v4299_v50 = vpop.permute.xlu0 %4298 }
 0x596   : > { %v4360_v60 = vsel %vm3138_vm15, %v4351_v32, %v4299_v50  ;;  %v4253_v55 = vpop.permute.xlu1 %4252 }
 0x597   : > { %4571 = vmatprep.mubr.bf16.mxu0 %v4360_v60  ;;  %v4321_v13 = vsel %vm3072_vm13, %v4312_v21, %v4253_v55 }
 0x598   : > { %4572 = vmatmul.mubr.bf16.gmra.mxu0 %v4328_v53 }
 0x599   : > { %v4277_v54 = vpop.permute.xlu0 %4276 }
 0x59a   : > { %v4265_v43 = vpop.permute.xlu1 %4264  ;;  %v4344_v4 = vsel %vm1812_vm3, %v4181_v46, %v4277_v54 }
 0x59b   : > { %v4331_v15 = vsel %vm3138_vm15, %v4321_v13, %v4265_v43 }
 0x5b4   : > { %v4289_v11 = vpop.permute.xlu0 %4288 }
 0x5b5   : > { %v4243_v2 = vpop.permute.xlu1 %4242  ;;  %v4353_v10 = vsel %vm3072_vm13, %v4344_v4, %v4289_v11 }
 0x5b6   : > { %v4315_v46 = vsel %vm1812_vm3, %v7566_v37, %v4243_v2  ;;  %v4231_v37 = vpack.c.bf16 %v4227_v42, %v7577_v48 }
 0x5b8   : > { %v4301_v33 = vpop.permute.xlu0 %4300 }
 0x5b9   : > { %v4363_v39 = vsel %vm3138_vm15, %v4353_v10, %v4301_v33  ;;  %v4255_v62 = vpop.permute.xlu1 %4254 }
 0x5ba   : > { %4579 = vmatprep.mubr.bf16.mxu0 %v4363_v39  ;;  %v4323_v63 = vsel %vm3072_vm13, %v4315_v46, %v4255_v62 }
 0x5bb   : > { %4580 = vmatmul.mubr.bf16.gmra.mxu0 %v4331_v15 }
 0x5bc   : > { %v4279_v30 = vpop.permute.xlu0 %4278 }
 0x5bd   : > { %v4347_v51 = vsel %vm1812_vm3, %v4182_v38, %v4279_v30  ;;  %v4267_v23 = vpop.permute.xlu1 %4266 }
 0x5be   : > { %v4334_v20 = vsel %vm3138_vm15, %v4323_v63, %v4267_v23 }
 0x5c0   : > { %v4291_v12 = vpop.permute.xlu0 %4290 }
 0x5c1   : > { %v4355_v7 = vsel %vm3072_vm13, %v4347_v51, %v4291_v12 }
 0x5c4   : > { %v4303_v6 = vpop.permute.xlu0 %4302 }
 0x5c5   : > { %v4366_v44 = vsel %vm3138_vm15, %v4355_v7, %v4303_v6 }
 0x5c6   : > { %4587 = vmatprep.mubr.bf16.mxu0 %v4366_v44 }
 0x5c7   : > { %4588 = vmatmul.mubr.bf16.gmra.mxu0 %v4334_v20 }
 0x5c8   : > { %5529 = vmatprep.mubr.msk.bf16.mxu0 %vm1812_vm3, %v7527_v8  ;;  %v5689_v8 = vld [vmem:[%s7814_s9] sm:$0xff]  }
 0x5cf   : > { %5530 = vmatmul.mubr.msk.bf16.vlgmr.msra.gmra.mxu0 %vm1812_vm3, %v7551_v14 }
 0x5d0   : > { %5533 = vmatprep.mubr.msk.bf16.mxu0 %vm1812_vm3, %v7575_v45  ;;  %5538 = vmatpush3.bf16.msra.mxu0 %v5688_v18 }
 0x5d1   : > { %5539 = vmatprep.subr.bf16.mxu0 %v5760_v0 }
 0x5d4   : > { %5540 = vmatpush3.bf16.msra.mxu0 %v5689_v8 }
 0x5d7   : > { %5534 = vmatmul.mubr.msk.bf16.gmra.mxu0 %vm1812_vm3, %v4231_v37 }
 0x5d8   : > { %5541 = vmatprep.mubr.msk.bf16.mxu0 %vm5775_vm2, %v5760_v0 }
 0x619   : > { %v5432_v14 = vpop.f32.mrf.mxu0 }
 0x61b   : > { %v5433_v45 = vpop.f32.mrf.mxu0 }
 0x61c   : > { %v5434_v29 = vadd.f32 %v5433_v45, %v5432_v14 }
 0x61d   : > { %v5435_v48 = vpop.f32.mrf.mxu0 }
 0x61e   : > { %v4566_v19 = vadd.f32 %v5434_v29, %v5353_v40 }
 0x61f   : > { %v5436_v38 = vpop.f32.mrf.mxu0 }
 0x620   : > { %v5437_v61 = vadd.f32 %v5436_v38, %v5435_v48 }
 0x622   : > { %v4569_v60 = vadd.f32 %v5437_v61, %v5353_v40 }
 0x658   : > { %v5438_v3 = vpop.f32.mrf.mxu0 }
 0x65a   : > { %v5439_v17 = vpop.f32.mrf.mxu0 }
 0x65b   : > { %v5440_v28 = vadd.f32 %v5439_v17, %v5438_v3 }
 0x65c   : > { %v5441_v59 = vpop.f32.mrf.mxu0 }
 0x65d   : > { %v4574_v9 = vadd.f32 %v5440_v28, %v5353_v40  ;;  %v5691_v28 = vld [vmem:[%s7817_s12] sm:$0xff]  }
 0x65e   : > { %v5442_v22 = vpop.f32.mrf.mxu0 }
 0x65f   : > { %v5443_v35 = vadd.f32 %v5442_v22, %v5441_v59 }
 0x661   : > { %v4577_v41 = vadd.f32 %v5443_v35, %v5353_v40 }
 0x67b   : > { %v5444_v24 = vpop.f32.mrf.mxu0 }
 0x67d   : > { %v5445_v31 = vpop.f32.mrf.mxu0 }
 0x67e   : > { %v5446_v27 = vadd.f32 %v5445_v31, %v5444_v24 }
 0x67f   : > { %v5447_v56 = vpop.f32.mrf.mxu0 }
 0x680   : > { %v4582_v21 = vadd.f32 %v5446_v27, %v5353_v40  ;;  %v4764_v27 = vld [vmem:[%s7816_s11] sm:$0x1] }
 0x681   : > { %v5448_v16 = vpop.f32.mrf.mxu0 }
 0x682   : > { %v5449_v4 = vadd.f32 %v5448_v16, %v5447_v56 }
 0x684   : > { %v4585_v44 = vadd.f32 %v5449_v4, %v5353_v40 }
 0x687   : > { %v5450_v26 = vpop.f32.mrf.mxu0 }
 0x689   : > { %v5451_v25 = vpop.f32.mrf.mxu0 }
 0x68a   : > { %v5452_v49 = vadd.f32 %v5451_v25, %v5450_v26  ;;  %v5690_v25 = vld [vmem:[%s7817_s12 + $0x8] sm:$0xff]  }
 0x68b   : > { %v5453_v47 = vpop.f32.mrf.mxu0  ;;  %5545 = vmatprep.subr.bf16.mxu0 %v5690_v25 }
 0x68c   : > { %v4590_v57 = vadd.f32 %v5452_v49, %v5353_v40 }
 0x68d   : > { %v5454_v58 = vpop.f32.mrf.mxu0 }
 0x68e   : > { %v5455_v55 = vadd.f32 %v5454_v58, %v5453_v47  ;;  %v5376_v47 = vld [vmem:[%s7815_s10] ss:$0 sm:$0xff] }
 0x68f   : > { %v5531_v36 = vpop.f32.mrf.mxu0 }
 0x690   : > { %v4639_v5 = vadd.f32 %v5531_v36, %v4574_v9  ;;  %v4593_v23 = vadd.f32 %v5455_v55, %v5353_v40  ;;  %v4765_v40 = vld [vmem:[%s7816_s11 + $0x1] sm:$0xff] }
 0x691   : > { %v4630_v34 = vpop.f32.mrf.mxu0 }
 0x692   : > { %v4631_v52 = vadd.f32 %v4630_v34, %v4566_v19  ;;  %v4663_v50 = vmax.f32 %v4639_v5, 0.0  ;;  %v4766_v19 = vld [vmem:[%s7816_s11 + $0x9] sm:$0xff] }
 0x693   : > { %v5532_v32 = vpop.f32.mrf.mxu0 }
 0x694   : > { %v4642_v1 = vadd.f32 %v5532_v32, %v4577_v41  ;;  %v4661_v54 = vmax.f32 %v4631_v52, 0.0  ;;  %v4672_v10 = vsel %vm1812_vm3, %v4663_v50, -inf }
 0x695   : > { %v4633_v53 = vpop.f32.mrf.mxu0 }
 0x696   : > { %v4664_v43 = vmax.f32 %v4642_v1, 0.0  ;;  %v4634_v11 = vadd.f32 %v4633_v53, %v4569_v60  ;;  %v4669_v62 = vsel %vm1812_vm3, %v4661_v54, -inf }
 0x697   : > { %v5535_v2 = vpop.f32.mrf.mxu0 }
 0x698   : > { %v4673_v33 = vsel %vm1812_vm3, %v4664_v43, -inf  ;;  %v4662_v13 = vmax.f32 %v4634_v11, 0.0  ;;  %v4655_v39 = vadd.f32 %v5535_v2, %v4590_v57  ;;  %v5380_v57 = vld [vmem:[%s7818_s13] ss:$0 sm:$0xff] }
 0x699   : > { %v4674_v15 = vmax.f32 %v4672_v10, %v4673_v33  ;;  %v4646_v30 = vpop.f32.mrf.mxu0 }
 0x69a   : > { %v4670_v12 = vsel %vm1812_vm3, %v4662_v13, -inf  ;;  %v4647_v51 = vadd.f32 %v4646_v30, %v4582_v21  ;;  %v4667_v6 = vmax.f32 %v4655_v39, 0.0 }
 0x69b   : > { %4682 = vst.msk [vmem:[#allocation7 + $0x8] sm:$0xff] %vm1812_vm3, %v4674_v15  ;;  %v4671_v46 = vmax.f32 %v4669_v62, %v4670_v12  ;;  %v5536_v7 = vpop.f32.mrf.mxu0 }
 0x69c   : > { %v4658_v63 = vadd.f32 %v5536_v7, %v4593_v23  ;;  %v4665_v42 = vmax.f32 %v4647_v51, 0.0  ;;  %v4678_v8 = vsel %vm1812_vm3, %v4667_v6, -inf  ;;  %v5045_v6 = vld [vmem:[%s7819_s14 + $0x18] sm:$0xff] }
 0x69d   : > { %4681 = vst.msk [vmem:[#allocation7] sm:$0xff] %vm1812_vm3, %v4671_v46  ;;  %v4649_v20 = vpop.f32.mrf.mxu0 }
 0x69e   : > { %v4668_v37 = vmax.f32 %v4658_v63, 0.0  ;;  %v4650_v18 = vadd.f32 %v4649_v20, %v4585_v44  ;;  %v4675_v38 = vsel %vm1812_vm3, %v4665_v42, -inf  ;;  %v5044_v63 = vld [vmem:[%s7819_s14 + $0x10] sm:$0xff]  ;;  %v5043_v44 = vld [vmem:[%s7819_s14 + $0x8] sm:$0xff] }
 0x6a0   : > { %v4679_v14 = vsel %vm1812_vm3, %v4668_v37, -inf  ;;  %v4666_v45 = vmax.f32 %v4650_v18, 0.0 }
 0x6a1   : > { %v4680_v48 = vmax.f32 %v4678_v8, %v4679_v14 }
 0x6a2   : > { %v4676_v3 = vsel %vm1812_vm3, %v4666_v45, -inf  ;;  %v5042_v45 = vld [vmem:[%s7819_s14] sm:$0xff] }
 0x6a3   : > { %4684 = vst.msk [vmem:[#allocation7 + $0x18] sm:$0xff] %vm1812_vm3, %v4680_v48  ;;  %v4677_v17 = vmax.f32 %v4675_v38, %v4676_v3  ;;  %v5046_v3 = vld [vmem:[%s7820_s15] sm:$0x1] }
 0x6a4   : > { %v4685_v59 = vld [vmem:[#allocation7] ss:$2 sm:$0xff]  ;;  %v4689_v22 = vld [vmem:[#allocation7 + $0x1] ss:$2 sm:$0xff] }
 0x6a5   : > { %4683 = vst.msk [vmem:[#allocation7 + $0x10] sm:$0xff] %vm1812_vm3, %v4677_v17  ;;  %v4692_v56 = vmax.f32 %v4685_v59, %v4689_v22 }
 0x6ac   : > { %v4687_v24 = vld [vmem:[#allocation7 + $0x10] ss:$2 sm:$0xff]  ;;  %v4691_v31 = vld [vmem:[#allocation7 + $0x11] ss:$2 sm:$0xff] }
 0x6ad   : > { %v4693_v16 = vmax.f32 %v4687_v24, %v4691_v31 }
 0x6af   : > { %v4694_v26 = vpack.c.bf16 %v4693_v16, %v4692_v56 }
 0x6b1   : > { %5542 = vmatmul.mubr.msk.bf16.vlgmr.msra.gmra.mxu0 %vm1812_vm3, %v4694_v26 }
 0x6b2   : > { %5546 = vmatpush3.bf16.msra.mxu0 %v5690_v25 }
 0x6b3   : > { %5547 = vmatprep.subr.bf16.mxu0 %v5691_v28 }
 0x6b6   : > { %5548 = vmatpush3.bf16.msra.mxu0 %v5691_v28  ;;  %v5142_v28 = vld [vmem:[%s7823_s18 + $0x18] sm:$0xff] }
 0x6b7   : > { %5571 = vmatprep.subr.mxu0 %v5760_v0 }
 0x771   : > { %v4755_v29 = vpop.f32.mrf.mxu0 }
 0x772   : > { %v4756_v58 = vadd.f32 %v5376_v47, %v4755_v29  ;;  %v5140_v29 = vld [vmem:[%s7823_s18 + $0x8] sm:$0xff] }
 0x773   : > { %v5543_v35 = vpop.f32.mrf.mxu0 }
 0x774   : > { %v4762_v9 = vmax.f32 %v4756_v58, 0.0  ;;  %v5139_v58 = vld [vmem:[%s7823_s18] sm:$0xff] }
 0x775   : > { %v4758_v36 = vpop.f32.mrf.mxu0 }
 0x776   : > { %v4767_v61 = vadd.f32 %v4765_v40, %v4762_v9  ;;  %v4759_v5 = vadd.f32 %v5376_v47, %v4758_v36  ;;  %v5141_v47 = vld [vmem:[%s7823_s18 + $0x10] sm:$0xff] }
 0x777   : > { %v5544_v49 = vpop.f32.mrf.mxu0 }
 0x778   : > { %v4763_v34 = vmax.f32 %v4759_v5, 0.0  ;;  %v4772_v52 = vrot.slane %v4767_v61, 7  ;;  %v5135_v61 = vld [vmem:[%s7821_s16] sm:$0x1] }
 0x77a   : > { %v4768_v41 = vadd.f32 %v4766_v19, %v4763_v34  ;;  %v4778_v50 = vsel %vm4771_vm4, %v4764_v27, %v4772_v52  ;;  %v5137_v19 = vld [vmem:[%s7822_s17] sm:$0x1] }
 0x77c   : > { %v4773_v32 = vrot.slane %v4768_v41, 7 }
 0x77e   : > { %v4774_v1 = vsel %vm4771_vm4, %v4772_v52, %v4773_v32  ;;  %v4780_v53 = vpack.c.bf16 %v4773_v32, %v4773_v32 }
 0x77f   : > { %v4779_v60 = vpack.c.bf16 %v4774_v1, %v4778_v50 }
 0x781   : > { %5549 = vmatprep.mubr.msk.bf16.mxu0 %vm1812_vm3, %v4779_v60 }
 0x782   : > { %5550 = vmatmul.mubr.msk.bf16.vlgmr.msra.gmra.mxu0 %vm1812_vm3, %v4780_v53 }
 0x783   : > { %5579 = vmatprep.mubr.msk.f32.mxu0 %vm5775_vm2, %v5760_v0  ;;  %5572 = vmatpush3.msra.mxu0 %v5045_v6 }
 0x784   : > { %5573 = vmatprep.subr.mxu0 %v5760_v0 }
 0x785   : > { %5574 = vmatpush3.msra.mxu0 %v5044_v63 }
 0x786   : > { %5575 = vmatprep.subr.mxu0 %v5760_v0 }
 0x787   : > { %5576 = vmatpush3.msra.mxu0 %v5043_v44 }
 0x788   : > { %5577 = vmatprep.subr.mxu0 %v5760_v0 }
 0x789   : > { %5578 = vmatpush3.msra.mxu0 %v5042_v45 }
 0x842   : > { %v5551_v55 = vpop.f32.mrf.mxu0 }
 0x843   : > { %v4853_v54 = vadd.f32 %v5551_v55, %v5380_v57 }
 0x844   : > { %v4844_v43 = vpop.f32.mrf.mxu0 }
 0x845   : > { %4865 = vrot.lane.b32.xlu0 %v4853_v54, %s7890_s30  ;;  %v4845_v4 = vadd.f32 %v5380_v57, %v4844_v43 }
 0x846   : > { %v5552_v11 = vpop.f32.mrf.mxu0 }
 0x848   : > { %v4847_v2 = vpop.f32.mrf.mxu0 }
 0x849   : > { %v4848_v21 = vadd.f32 %v5380_v57, %v4847_v2  ;;  %4861 = vrot.lane.b32.xlu0 %v4845_v4, %s7890_s30 }
 0x84b   : > { %4863 = vrot.lane.b32.xlu1 %v4848_v21, %s7890_s30  ;;  %s621_s30 = scalar_lea.vmem [#allocation8], %s620_s21 }
 0x84c   : > { %s5232_s3 = sshll.u32 %s621_s30, 4  ;;  %s5233_s3 = int_to_ptr.vmem [resolvable:$true] %s5232_s3 }
 0x84d   : > { %p5705_p0 = scmp.lt.s32.totalorder %s5233_s3, %s5703_s1 }
 0x8b7   : > { %v4866_v10 = vpop.permute.xlu0 %4865 }
 0x8b8   : > { %5554 = vmatpush3.xpose.msk.msra.mxu1 %vm1812_vm3, %v4866_v10 }
 0x8b9   : > { %5555 = vmatprep.subr.mxu1 %v5760_v0 }
 0x8bb   : > { %v4862_v13 = vpop.permute.xlu0 %4861 }
 0x8bd   : > { %v4864_v33 = vpop.permute.xlu1 %4863 }
 0x8be   : > { %5556 = vmatpush3.xpose.msk.msra.mxu1 %vm1812_vm3, %v4864_v33 }
 0x8bf   : > { %5557 = vmatprep.subr.mxu1 %v5760_v0 }
 0x8c2   : > { %5558 = vmatpush3.xpose.msk.msra.mxu1 %vm1812_vm3, %v4862_v13 }
 0x8c3   : > { %5562 = vmatprep.subr.mxu1 %v5760_v0 }
 0x8c5   : > { %5560 = vmatmul.mubr.msk.f32.vlgmr.msra.gmra.mxu1 %vm1812_vm3, %v4845_v4 }
 0x8c6   : > { %5568 = vmatprep.mubr.msk.f32.mxu1 %vm5775_vm2, %v5760_v0 }
 0x985   : > { %v4941_v39 = vpop.f32.mrf.mxu1 }
 0x986   : > { %v4945_v15 = vmul.f32 0.17677669, %v4941_v39 }
 0x987   : > { %v5561_v30 = vpop.f32.mrf.mxu1 }
 0x988   : > { %v4947_v62 = vsel %vm4946_vm5, %v4945_v15, -inf }
 0x989   : > { %4948 = vmax.xlane.f32.xlu1 %v4947_v62 }
 0x99a   : > { %4960 = vrot.lane.b32.xlu1 %v4848_v21, %s7893_s0 }
 0x99e   : > { %4958 = vrot.lane.b32.xlu1 %v4845_v4, %s7893_s0 }
 0xa12   : > { %v4949_v12 = vpop.xlane.xlu1 %4948 }
 0xa13   : > { %v4950_v51 = vsub.f32 %v4945_v15, %v4949_v12 }
 0xa15   : > { %v4951_v23 = vmul.f32 1.442695, %v4950_v51 }
 0xa16   : > { %v4961_v42 = vpop.permute.xlu1 %4960 }
 0xa17   : > { %5692 = vpow2.f32 %v4951_v23 }
 0xa1a   : > { %v4959_v18 = vpop.permute.xlu1 %4958 }
 0xa24   : > { %v5693_v46 = vpop.eup %5692 }
 0xa25   : > { %v4953_v7 = vsel %vm4946_vm5, %v5693_v46, 0.0 }
 0xa26   : > { %4954 = vadd.xlane.f32.xlu0 %v4953_v7 }
 0xa3c   : > { %4962 = vrot.lane.b32.xlu0 %v4853_v54, %s7893_s0  ;;  %s5698_s0 = scalar_lea.vmem %s5233_s3, 16 }
 0xa3d   : > { %p5699_p11 = scmp.ne.s32.totalorder %s5233_s3, %s5698_s0  ;;  %p5706_p1 = scmp.lt.s32.totalorder %s5704_s29, %s5698_s0 }
 0xa3f   : > { %p5700_p12 = pnand %p5699_p11, %p5920_p5  ;;  %p5707_p2 = por %p5706_p1, %p5705_p0 }
 0xa41   : > { %p5701_p13 = pneg %p5700_p12 }
 0xa43   : > { %p5708_p3 = pnand %p5707_p2, %p5701_p13 }
 0xaaf   : > { %v4955_v20 = vpop.xlane.xlu0 %4954 }
 0xab0   : > { %5694 = vrcp.f32 %v4955_v20 }
 0xab3   : > { %v4963_v37 = vpop.permute.xlu0 %4962 }
 0xab4   : > { %5563 = vmatpush3.msk.msra.mxu1 %vm4771_vm4, %v4963_v37 }
 0xab5   : > { %5564 = vmatprep.subr.mxu1 %v5760_v0 }
 0xab6   : > { %5565 = vmatpush3.msra.mxu1 %v4961_v42 }
 0xab7   : > { %5566 = vmatprep.subr.mxu1 %v5760_v0 }
 0xab8   : > { %5567 = vmatpush3.msra.mxu1 %v4959_v18 }
 0xab9   : > { %5582 = vmatprep.subr.mxu1 %v5760_v0 }
 0xabd   : > { %v5695_v8 = vpop.eup %5694 }
 0xabe   : > { %v4957_v14 = vmul.f32 %v5695_v8, %v5693_v46 }
 0xac0   : > { %5569 = vmatmul.mubr.msk.f32.vlgmr.msra.gmra.mxu1 %vm4966_vm6, %v4957_v14 }
 0xac1   : > { %5590 = vmatprep.mubr.msk.f32.mxu1 %vm5775_vm2, %v5760_v0  ;;  %5583 = vmatpush3.msra.mxu1 %v5142_v28 }
 0xac2   : > { %5584 = vmatprep.subr.mxu1 %v5760_v0 }
 0xac3   : > { %5585 = vmatpush3.msra.mxu1 %v5141_v47 }
 0xac4   : > { %5586 = vmatprep.subr.mxu1 %v5760_v0 }
 0xac5   : > { %5587 = vmatpush3.msra.mxu1 %v5140_v29 }
 0xac6   : > { %5588 = vmatprep.subr.mxu1 %v5760_v0  ;;  %v5143_v0 = vld [vmem:[%s7824_s19] sm:$0x1] }
 0xac7   : > { %5589 = vmatpush3.msra.mxu1 %v5139_v58 }
 0xb80   : > { %v5038_v48 = vpop.f32.mrf.mxu1 }
 0xb81   : > { %5580 = vmatmul.mubr.msk.f32.vlgmr.msra.gmra.mxu0 %vm1812_vm3, %v5038_v48 }
 0xb82   : > { %v5570_v38 = vpop.f32.mrf.mxu1 }
 0xc41   : > { %v5116_v17 = vpop.f32.mrf.mxu0 }
 0xc42   : > { %v5117_v59 = vadd.f32 %v5116_v17, %v5046_v3 }
 0xc43   : > { %v5581_v22 = vpop.f32.mrf.mxu0 }
 0xc44   : > { %v5121_v24 = vsel %vm5120_vm7, %v5117_v59, 0.0 }
 0xc45   : > { %5122 = vadd.xlane.f32.xlu0 %v5121_v24 }
 0xcce   : > { %v5123_v31 = vpop.xlane.xlu0 %5122 }
 0xccf   : > { %v5125_v56 = vmul.f32 0.03125, %v5123_v31 }
 0xcd1   : > { %v5126_v16 = vsub.f32 %v5117_v59, %v5125_v56 }
 0xcd3   : > { %v5127_v26 = vmul.f32 %v5126_v16, %v5126_v16 }
 0xcd5   : > { %v5128_v25 = vsel %vm5120_vm7, %v5127_v26, 0.0 }
 0xcd6   : > { %5129 = vadd.xlane.f32.xlu1 %v5128_v25 }
 0xd5f   : > { %v5130_v40 = vpop.xlane.xlu1 %5129 }
 0xd60   : > { %v5131_v35 = vmul.f32 0.03125, %v5130_v40 }
 0xd62   : > { %v5132_v9 = vadd.f32 1e-05, %v5131_v35 }
 0xd64   : > { %5696 = vrsqrt.f32 %v5132_v9 }
 0xd71   : > { %v5697_v36 = vpop.eup %5696 }
 0xd72   : > { %v5134_v5 = vmul.f32 %v5697_v36, %v5126_v16 }
 0xd74   : > { %v5136_v49 = vmul.f32 %v5135_v61, %v5134_v5 }
 0xd76   : > { %v5138_v34 = vadd.f32 %v5137_v19, %v5136_v49 }
 0xd78   : > { %5591 = vmatmul.mubr.msk.f32.vlgmr.msra.gmra.mxu1 %vm1812_vm3, %v5138_v34 }
 0xe38   : > { %v5213_v52 = vpop.f32.mrf.mxu1 }
 0xe39   : > { %v5214_v41 = vadd.f32 %v5213_v52, %v5143_v0 }
 0xe3a   : > { %v5592_v27 = vpop.f32.mrf.mxu1 }
 0xe3b   : > { %5218 = vst.msk [vmem:[%s621_s30] sm:$0x1] %vm5217_vm8, %v5214_v41 }
 0xe3c   : > { %5711 = shalt.err (!%p5708_p3)
}
 0xe3d   : > { %s5712_s25 = scalar_lea.hbm %s7770_s5, 16  ;;  %s5716_s27 = scalar_lea.hbm %s7825_s20, 32 }
 0xe3e   : > { %p5713_p4 = scmp.ne.s32.totalorder %s7770_s5, %s5712_s25  ;;  %p5717_p9 = scmp.lt.s32.totalorder %s7770_s5, %s7825_s20 }
 0xe3f   : > { %p5718_p10 = scmp.lt.s32.totalorder %s5716_s27, %s5712_s25 }
 0xe40   : > { %p5714_p7 = pnand %p5713_p4, %p5920_p5 }
 0xe41   : > { %p5719_p11 = por %p5718_p10, %p5717_p9 }
 0xe42   : > { %p5715_p8 = pneg %p5714_p7 }
 0xe44   : > { %p5720_p12 = pnand %p5719_p11, %p5715_p8 }
 0xe46   : > { %5723 = shalt.err (!%p5720_p12)
}
 0xe47   : > { %5594 = dma.vmem_to_hbm [thread:$0]  (%p5920_p5), %s5233_s3, 16, %s7770_s5, %s5220_s6  }
 0xe48 PF: > { %s7895_s26 = sld [smem:[#allocation11_spill]]  ;;  %p5600_p13 = scmp.ge.s32.totalorder %s5758_s24, 2 }
 0xe4a   : > { %p5597_p0 = pnand %p5600_p13, %p5924_p6 }
 0xe4c   : > { %p5598_p1 = pneg %p5597_p0 }
 0xe4e   : > { %s5244_s2 = sand.u32 1, %s7895_s26  }
 0xe4f   : > { %s5245_s1 = scalar_lea.sflag [#allocation9], %s5244_s2 }
 0xe50   : > { %5741 = dma.done.wait (%p5598_p1), %s5245_s1, 16  }
 0xe51   : > { %5743 = vsyncadd (%p5598_p1), %s5245_s1, 4294967280  ;;  %s7897_s24 = sld [smem:[#allocation13_spill]]  ;;  %s7900_s1 = smov %s5750_s22 }
 0xe52   : > { %s7898_s29 = sld [smem:[#allocation12_spill]] }
 0xe53   : > { %s7899_s23 = sld [smem:[#allocation14_spill]] }
 0xe57   : > { %p30_p2 = scmp.ge.s32.totalorder %s7897_s24, 4  }
 0xe58   : > { %s7901_s22 = smov %s7898_s29 }
 0xe59   :  { %32 = sbr.rel (!%p30_p2) target bundleno = 11 (0xb), region = 161 }
 0xe5e   :  { %5249 = vsyncpa [#allocation9], 1 }
 0xe5f   :  { %5251 = vsyncpa [#allocation9 + $0x1], 1 }

</bundles_post_ra>
